<compile_context>
chip_gen: v7x
topology: tpu7x:2x2x1
jax: 0.10.0
libtpu: 0.0.40
codegen_flags: <defaults>
</compile_context>

<pallas_src>
import functools
import numpy as np
import jax
import jax.numpy as jnp
from jax.experimental import pallas as pl
from jax.experimental.pallas import tpu as pltpu

CPAD = 128     # every internal channel dim padded to one full lane width
STEM_C = 8     # stem input channels padded 3 -> 8


# ---------------------------------------------------------------------------
# Pallas kernels (single grid step, full-array blocks, f32 accumulation)
# ---------------------------------------------------------------------------
def _gemm_bias_act_kernel(a_ref, w_ref, b_ref, o_ref, *, relu):
    """o = act(A @ W + b); one deep-K MXU dot, lane-dense (N = 128) output."""
    acc = jnp.dot(a_ref[...], w_ref[...], preferred_element_type=jnp.float32)
    y = acc + b_ref[...]
    if relu:
        y = jnp.maximum(y, 0.0)
    o_ref[...] = y.astype(o_ref.dtype)


def _aspp_kernel(a1_ref, a2_ref, w1_ref, w2_ref, wp1_ref, wp2_ref,
                 b1_ref, b2_ref, bp_ref, o_ref):
    """Fused ASPP: 1x1 branch, dilated-3x3 branch and the concat+1x1
    projection.  bp_ref is the projection bias with the (spatially constant)
    global-pool branch contribution pre-folded per output row."""
    b1 = jnp.dot(a1_ref[...], w1_ref[...], preferred_element_type=jnp.float32)
    b1 = jnp.maximum(b1 + b1_ref[...], 0.0)
    b2 = jnp.dot(a2_ref[...], w2_ref[...], preferred_element_type=jnp.float32)
    b2 = jnp.maximum(b2 + b2_ref[...], 0.0)
    acc = jnp.dot(b1.astype(jnp.bfloat16), wp1_ref[...],
                  preferred_element_type=jnp.float32)
    acc += jnp.dot(b2.astype(jnp.bfloat16), wp2_ref[...],
                   preferred_element_type=jnp.float32)
    y = jnp.maximum(acc + bp_ref[...], 0.0)
    o_ref[...] = y.astype(o_ref.dtype)


def _dec_cls_kernel(a_ref, wd_ref, wc_ref, bd_ref, bc_ref, o_ref):
    """Fused decoder 3x3 conv (+ReLU) and classifier 1x1 conv (no ReLU)."""
    d = jnp.dot(a_ref[...], wd_ref[...], preferred_element_type=jnp.float32)
    d = jnp.maximum(d + bd_ref[...], 0.0)
    y = jnp.dot(d.astype(jnp.bfloat16), wc_ref[...],
                preferred_element_type=jnp.float32)
    o_ref[...] = (y + bc_ref[...]).astype(o_ref.dtype)


def _full_spec(shape):
    return pl.BlockSpec(shape, lambda i: (0,) * len(shape))


def _call(kernel, out_shape, operands):
    # tm = M, single grid step: M <= 512 everywhere, splitting M is pure
    # per-step overhead on 1-TC chips and never meets the M>=512 & K>=128 bar
    # that would make a cross-TC split worthwhile on v7x.
    return pl.pallas_call(
        kernel,
        out_shape=out_shape,
        grid=(1,),
        in_specs=[_full_spec(op.shape) for op in operands],
        out_specs=_full_spec(out_shape.shape),
        compiler_params=pltpu.CompilerParams(
            dimension_semantics=("arbitrary",)),
    )(*operands)


def gemm_bias_act(a, w, bias, relu=True, out_dtype=jnp.bfloat16):
    M, K = a.shape
    Kw, N = w.shape
    assert K == Kw, (K, Kw)
    return _call(
        functools.partial(_gemm_bias_act_kernel, relu=relu),
        jax.ShapeDtypeStruct((M, N), out_dtype),
        (a, w, bias.astype(jnp.float32).reshape(1, N)),
    )


# ---------------------------------------------------------------------------
# im2col: one bf16 (M, K_total) operand per conv (taps x pieces along K)
# ---------------------------------------------------------------------------
def _im2col(xs, kh, kw, stride=1, padding=0, dilation=1):
    """xs: list of NHWC tensors (implicit channel concat).  Column order is
    tap-major, then piece, then channel — matching the weight stacking."""
    B, H, W, _ = xs[0].shape
    if padding:
        xs = [jnp.pad(x, ((0, 0), (padding, padding), (padding, padding), (0, 0)))
              for x in xs]
    hp, wp = H + 2 * padding, W + 2 * padding
    ho = (hp - (dilation * (kh - 1) + 1)) // stride + 1
    wo = (wp - (dilation * (kw - 1) + 1)) // stride + 1
    cols = []
    for t in range(kh * kw):
        i, j = divmod(t, kw)
        for x in xs:
            sl = x[:,
                   i * dilation: i * dilation + stride * (ho - 1) + 1: stride,
                   j * dilation: j * dilation + stride * (wo - 1) + 1: stride,
                   :]
            cols.append(sl.reshape(B * ho * wo, x.shape[-1]))
    a = jnp.concatenate(cols, axis=-1) if len(cols) > 1 else cols[0]
    return a.astype(jnp.bfloat16), (B, ho, wo)


def conv2d(xs, p, stride=1, padding=0, dilation=1, relu=True,
           out_dtype=jnp.bfloat16):
    a, (B, ho, wo) = _im2col(xs, p["kh"], p["kw"], stride, padding, dilation)
    y = gemm_bias_act(a, p["w"], p["b"], relu=relu, out_dtype=out_dtype)
    return y.reshape(B, ho, wo, CPAD)


# ---------------------------------------------------------------------------
# Bilinear resize (align_corners=True) as a 2-tap lerp — pure VPU glue.
# ---------------------------------------------------------------------------
def _lerp_coeffs(n_out, n_in):
    if n_out > 1:
        src = np.arange(n_out) * (n_in - 1) / (n_out - 1)
    else:
        src = np.zeros((n_out,), np.float64)
    i0 = np.clip(np.floor(src).astype(np.int32), 0, n_in - 1)
    i1 = np.minimum(i0 + 1, n_in - 1)
    w = (src - i0).astype(np.float32)
    return jnp.asarray(i0), jnp.asarray(i1), jnp.asarray(w)


def bilinear_resize(x, out_h, out_w):
    """NHWC -> NHWC, bilinear, align_corners=True (matches F.interpolate)."""
    B, H, W, C = x.shape
    x = x.astype(jnp.float32)
    i0, i1, wh = _lerp_coeffs(out_h, H)
    j0, j1, ww = _lerp_coeffs(out_w, W)
    wh = wh[None, :, None, None]
    ww = ww[None, None, :, None]
    xh = x[:, i0] * (1.0 - wh) + x[:, i1] * wh
    return xh[:, :, j0] * (1.0 - ww) + xh[:, :, j1] * ww


# ---------------------------------------------------------------------------
# Deterministic synthetic parameters (conv + folded eval-mode BatchNorm).
# Weights are stacked ONCE here along K (taps x concat pieces), zero-padded to
# the 128-lane layout and cast to bf16 — nothing is reshaped at runtime.
# ---------------------------------------------------------------------------
def _conv_params(key, kh, kw, cin_real, cout, cin_pad=None, classifier=False):
    if isinstance(cin_real, int):
        cin_real = (cin_real,)
    if cin_pad is None:
        cin_pad = tuple(CPAD for _ in cin_real)
    elif isinstance(cin_pad, int):
        cin_pad = (cin_pad,)
    cin_tot = sum(cin_real)
    kw_, ks, kb = jax.random.split(key, 3)
    w = jax.random.normal(kw_, (kh, kw, cin_tot, cout), jnp.float32)
    w = w / np.sqrt(kh * kw * cin_tot)
    if classifier:
        scale = jnp.ones((cout,), jnp.float32)
        bias = 0.01 * jax.random.normal(kb, (cout,), jnp.float32)
    else:
        scale = 1.0 + 0.1 * jax.random.normal(ks, (cout,), jnp.float32)
        bias = 0.1 * jax.random.normal(kb, (cout,), jnp.float32)
    w = w * scale  # fold frozen (eval-mode) BN scale into the weights
    # TODO(synk): a real checkpoint fold also needs running mean/var folded
    #             into both the scale and the bias; synthetic weights only
    #             carry the scale fold.

    blocks = []
    for i in range(kh):
        for j in range(kw):
            lo = 0
            for cr, cp in zip(cin_real, cin_pad):
                blk = jnp.zeros((cp, CPAD), jnp.float32)
                blk = blk.at[:cr, :cout].set(w[i, j, lo:lo + cr, :])
                blocks.append(blk)
                lo += cr
    w_stk = jnp.concatenate(blocks, axis=0).astype(jnp.bfloat16)   # (K_total, 128)
    b_pad = jnp.zeros((CPAD,), jnp.float32).at[:cout].set(bias)
    return {"w": w_stk, "b": b_pad, "kh": kh, "kw": kw, "cout": cout}


def init_params(key, num_classes):
    ks = jax.random.split(key, 10)
    return {
        "num_classes": num_classes,
        # backbone (simplified, frozen)
        "bb1": _conv_params(ks[0], 3, 3, 3, 16, cin_pad=STEM_C),
        "bb2": _conv_params(ks[1], 3, 3, 16, 24),
        "bb3": _conv_params(ks[2], 3, 3, 24, 32),
        # ASPP
        "aspp1": _conv_params(ks[3], 1, 1, 32, 32),
        "aspp2": _conv_params(ks[4], 3, 3, 32, 32),
        "aspp_pool": _conv_params(ks[5], 1, 1, 32, 32),
        "aspp_proj": _conv_params(ks[6], 1, 1, (32, 32, 32), 32),   # b1|b2|gp
        # decoder
        "dec_low": _conv_params(ks[7], 1, 1, 24, 16),
        "dec_conv": _conv_params(ks[8], 3, 3, (32, 16), 32),        # a_up|low_p
        "cls": _conv_params(ks[9], 1, 1, 32, num_classes, classifier=True),
    }


# ---------------------------------------------------------------------------
# Stage forwards
# ---------------------------------------------------------------------------
def aspp_forward(params, hi):
    B, H, W, _ = hi.shape
    p1, p2 = params["aspp1"], params["aspp2"]
    pp, pproj = params["aspp_pool"], params["aspp_proj"]

    a1, _ = _im2col([hi], 1, 1)                            # (M, 128)
    a2, _ = _im2col([hi], 3, 3, padding=2, dilation=2)     # (M, 9*128)
    M = a1.shape[0]

    # Image-pool branch: a (B,128) GEMM — far below pallas_call fixed cost, so
    # it stays in XLA.  After the align_corners resize from (1,1) it is
    # spatially constant, so its projection term is an additive per-row bias.
    pool = jnp.mean(hi.astype(jnp.float32), axis=(1, 2))
    pool = jnp.maximum(
        jnp.dot(pool.astype(jnp.bfloat16), pp["w"],
                preferred_element_type=jnp.float32) + pp["b"], 0.0)

    wp = pproj["w"]                                        # (3*128, 128)
    wp1, wp2, wgp = wp[:CPAD], wp[CPAD:2 * CPAD], wp[2 * CPAD:]
    gp_term = jnp.dot(pool.astype(jnp.bfloat16), wgp,
                      preferred_element_type=jnp.float32)  # (B, 128)
    bp = gp_term[:, None, :] + pproj["b"][None, None, :]
    bp = jnp.broadcast_to(bp, (B, H * W, CPAD)).reshape(M, CPAD)

    out = _call(
        _aspp_kernel,
        jax.ShapeDtypeStruct((M, CPAD), jnp.bfloat16),
        (a1, a2, p1["w"], p2["w"], wp1, wp2,
         p1["b"].reshape(1, CPAD), p2["b"].reshape(1, CPAD), bp),
    )
    return out.reshape(B, H, W, CPAD)


def decoder_forward(params, a, low):
    B, H, W, _ = low.shape
    low_p = conv2d([low], params["dec_low"])               # 1x1 + ReLU (Pallas)
    a_up = bilinear_resize(a, H, W)                        # 4x4 -> 8x8
    ad, (_, ho, wo) = _im2col([a_up, low_p], 3, 3, padding=1)
    M = ad.shape[0]
    pd, pc = params["dec_conv"], params["cls"]
    logits = _call(
        _dec_cls_kernel,
        jax.ShapeDtypeStruct((M, CPAD), jnp.float32),
        (ad, pd["w"], pc["w"],
         pd["b"].reshape(1, CPAD), pc["b"].reshape(1, CPAD)),
    )
    return logits.reshape(B, ho, wo, CPAD)[..., :params["num_classes"]]


def deeplab_forward(params, x_nchw):
    x = jnp.transpose(x_nchw, (0, 2, 3, 1)).astype(jnp.float32)  # NCHW -> NHWC
    B, H, W, cin = x.shape
    assert cin <= STEM_C
    x = jnp.pad(x, ((0, 0), (0, 0), (0, 0), (0, STEM_C - cin)))

    # backbone -> (high-level feature, low-level feature)
    f1 = conv2d([x], params["bb1"], stride=2, padding=1)     # (B,16,16,128)
    low = conv2d([f1], params["bb2"], stride=2, padding=1)   # (B, 8, 8,128)
    hi = conv2d([low], params["bb3"], stride=2, padding=1)   # (B, 4, 4,128)

    a = aspp_forward(params, hi)                             # fused ASPP
    logits = decoder_forward(params, a, low)                 # fused decoder+cls

    out = bilinear_resize(logits, H, W)                      # align_corners=True
    return jnp.transpose(out, (0, 3, 1, 2))                  # NHWC -> NCHW


def deeplab_common_forward(params, x_nchw):
    # TODO(synk): reference DeepLabCommon.forward returns None; we return the
    # contained DeepLab segmentation output (the only defined compute).
    return deeplab_forward(params, x_nchw)


if __name__ == "__main__":
    num_classes = 6
    key = jax.random.PRNGKey(0)
    kx, kp = jax.random.split(key)
    x = jax.random.normal(kx, (2, 3, 32, 32), jnp.float32)   # NCHW, like PyTorch
    params = init_params(kp, num_classes)

    fwd = jax.jit(lambda inp: deeplab_common_forward(params, inp))
    out = jax.block_until_ready(fwd(x))
    assert out.shape == (2, num_classes, 32, 32), out.shape
    assert out.dtype == jnp.float32
    assert bool(jnp.all(jnp.isfinite(out)))
    print("KERNEL_OK")
</pallas_src>

<mosaic_0001>
module attributes {stable_mosaic.version = 11 : i64} {
  func.func @_gemm_bias_act_kernel(%arg0: i32, %arg1: memref<512x72xbf16, #tpu.memory_space<vmem>>, %arg2: memref<72x128xbf16, #tpu.memory_space<vmem>>, %arg3: memref<1x128xf32, #tpu.memory_space<vmem>>, %arg4: memref<512x128xbf16, #tpu.memory_space<vmem>>) attributes {dimension_semantics = [#tpu.dimension_semantics<arbitrary>], iteration_bounds = array<i64: 1>, scalar_prefetch = 0 : i64, scratch_operands = 0 : i64, tpu.core_type = #tpu.core_type<tc>, window_params = [{pipeline_mode = #tpu.pipeline_mode<synchronous>, transform_indices = @transform_0, window_bounds = array<i64: 512, 72>}, {pipeline_mode = #tpu.pipeline_mode<synchronous>, transform_indices = @transform_1, window_bounds = array<i64: 72, 128>}, {pipeline_mode = #tpu.pipeline_mode<synchronous>, transform_indices = @transform_2, window_bounds = array<i64: 1, 128>}, {pipeline_mode = #tpu.pipeline_mode<synchronous>, transform_indices = @transform_3, window_bounds = array<i64: 512, 128>}]} {
    %c0 = arith.constant 0 : index
    %c0_0 = arith.constant 0 : index
    %0 = vector.load %arg1[%c0, %c0_0] : memref<512x72xbf16, #tpu.memory_space<vmem>>, vector<512x72xbf16>
    %c0_1 = arith.constant 0 : index
    %c0_2 = arith.constant 0 : index
    %1 = vector.load %arg2[%c0_1, %c0_2] : memref<72x128xbf16, #tpu.memory_space<vmem>>, vector<72x128xbf16>
    %cst = arith.constant dense<0.000000e+00> : vector<512x128xf32>
    %2 = tpu.matmul %0, %1, %cst {dimension_numbers = #tpu.dot_dimension_numbers<[1], [0], [0], [1], [0, 0, 1, 1], [], []>} : vector<512x72xbf16>, vector<72x128xbf16>, vector<512x128xf32> -> vector<512x128xf32>
    %c0_3 = arith.constant 0 : index
    %c0_4 = arith.constant 0 : index
    %3 = vector.load %arg3[%c0_3, %c0_4] : memref<1x128xf32, #tpu.memory_space<vmem>>, vector<1x128xf32>
    %4 = vector.broadcast %3 : vector<1x128xf32> to vector<512x128xf32>
    %5 = arith.addf %2, %4 : vector<512x128xf32>
    %cst_5 = arith.constant 0.000000e+00 : f32
    %6 = vector.broadcast %cst_5 : f32 to vector<512x128xf32>
    %7 = arith.maximumf %5, %6 : vector<512x128xf32>
    %8 = arith.truncf %7 : vector<512x128xf32> to vector<512x128xbf16>
    %c0_6 = arith.constant 0 : index
    %c0_7 = arith.constant 0 : index
    %9 = vector.load %arg4[%c0_6, %c0_7] : memref<512x128xbf16, #tpu.memory_space<vmem>>, vector<512x128xbf16>
    tpu.vector_store %arg4[%c0_6, %c0_7], %8 {strides = array<i32>} : memref<512x128xbf16, #tpu.memory_space<vmem>>, vector<512x128xbf16>,
    return
  }
  func.func @transform_0(%arg0: i32) -> (i32, i32) {
    %c0_i32 = arith.constant 0 : i32
    %c0_i32_0 = arith.constant 0 : i32
    %c0_i32_1 = arith.constant 0 : i32
    return %c0_i32, %c0_i32_0 : i32, i32
  }
  func.func @transform_1(%arg0: i32) -> (i32, i32) {
    %c0_i32 = arith.constant 0 : i32
    %c0_i32_0 = arith.constant 0 : i32
    %c0_i32_1 = arith.constant 0 : i32
    return %c0_i32, %c0_i32_0 : i32, i32
  }
  func.func @transform_2(%arg0: i32) -> (i32, i32) {
    %c0_i32 = arith.constant 0 : i32
    %c0_i32_0 = arith.constant 0 : i32
    %c0_i32_1 = arith.constant 0 : i32
    return %c0_i32, %c0_i32_0 : i32, i32
  }
  func.func @transform_3(%arg0: i32) -> (i32, i32) {
    %c0_i32 = arith.constant 0 : i32
    %c0_i32_0 = arith.constant 0 : i32
    %c0_i32_1 = arith.constant 0 : i32
    return %c0_i32, %c0_i32_0 : i32, i32
  }
}

module attributes {stable_mosaic.version = 11 : i64} {
  func.func @_gemm_bias_act_kernel(%arg0: i32, %arg1: memref<128x1152xbf16, #tpu.memory_space<vmem>>, %arg2: memref<1152x128xbf16, #tpu.memory_space<vmem>>, %arg3: memref<1x128xf32, #tpu.memory_space<vmem>>, %arg4: memref<128x128xbf16, #tpu.memory_space<vmem>>) attributes {dimension_semantics = [#tpu.dimension_semantics<arbitrary>], iteration_bounds = array<i64: 1>, scalar_prefetch = 0 : i64, scratch_operands = 0 : i64, tpu.core_type = #tpu.core_type<tc>, window_params = [{pipeline_mode = #tpu.pipeline_mode<synchronous>, transform_indices = @transform_0, window_bounds = array<i64: 128, 1152>}, {pipeline_mode = #tpu.pipeline_mode<synchronous>, transform_indices = @transform_1, window_bounds = array<i64: 1152, 128>}, {pipeline_mode = #tpu.pipeline_mode<synchronous>, transform_indices = @transform_2, window_bounds = array<i64: 1, 128>}, {pipeline_mode = #tpu.pipeline_mode<synchronous>, transform_indices = @transform_3, window_bounds = array<i64: 128, 128>}]} {
    %c0 = arith.constant 0 : index
    %c0_0 = arith.constant 0 : index
    %0 = vector.load %arg1[%c0, %c0_0] : memref<128x1152xbf16, #tpu.memory_space<vmem>>, vector<128x1152xbf16>
    %c0_1 = arith.constant 0 : index
    %c0_2 = arith.constant 0 : index
    %1 = vector.load %arg2[%c0_1, %c0_2] : memref<1152x128xbf16, #tpu.memory_space<vmem>>, vector<1152x128xbf16>
    %cst = arith.constant dense<0.000000e+00> : vector<128x128xf32>
    %2 = tpu.matmul %0, %1, %cst {dimension_numbers = #tpu.dot_dimension_numbers<[1], [0], [0], [1], [0, 0, 1, 1], [], []>} : vector<128x1152xbf16>, vector<1152x128xbf16>, vector<128x128xf32> -> vector<128x128xf32>
    %c0_3 = arith.constant 0 : index
    %c0_4 = arith.constant 0 : index
    %3 = vector.load %arg3[%c0_3, %c0_4] : memref<1x128xf32, #tpu.memory_space<vmem>>, vector<1x128xf32>
    %4 = vector.broadcast %3 : vector<1x128xf32> to vector<128x128xf32>
    %5 = arith.addf %2, %4 : vector<128x128xf32>
    %cst_5 = arith.constant 0.000000e+00 : f32
    %6 = vector.broadcast %cst_5 : f32 to vector<128x128xf32>
    %7 = arith.maximumf %5, %6 : vector<128x128xf32>
    %8 = arith.truncf %7 : vector<128x128xf32> to vector<128x128xbf16>
    %c0_6 = arith.constant 0 : index
    %c0_7 = arith.constant 0 : index
    %9 = vector.load %arg4[%c0_6, %c0_7] : memref<128x128xbf16, #tpu.memory_space<vmem>>, vector<128x128xbf16>
    tpu.vector_store %arg4[%c0_6, %c0_7], %8 {strides = array<i32>} : memref<128x128xbf16, #tpu.memory_space<vmem>>, vector<128x128xbf16>,
    return
  }
  func.func @transform_0(%arg0: i32) -> (i32, i32) {
    %c0_i32 = arith.constant 0 : i32
    %c0_i32_0 = arith.constant 0 : i32
    %c0_i32_1 = arith.constant 0 : i32
    return %c0_i32, %c0_i32_0 : i32, i32
  }
  func.func @transform_1(%arg0: i32) -> (i32, i32) {
    %c0_i32 = arith.constant 0 : i32
    %c0_i32_0 = arith.constant 0 : i32
    %c0_i32_1 = arith.constant 0 : i32
    return %c0_i32, %c0_i32_0 : i32, i32
  }
  func.func @transform_2(%arg0: i32) -> (i32, i32) {
    %c0_i32 = arith.constant 0 : i32
    %c0_i32_0 = arith.constant 0 : i32
    %c0_i32_1 = arith.constant 0 : i32
    return %c0_i32, %c0_i32_0 : i32, i32
  }
  func.func @transform_3(%arg0: i32) -> (i32, i32) {
    %c0_i32 = arith.constant 0 : i32
    %c0_i32_0 = arith.constant 0 : i32
    %c0_i32_1 = arith.constant 0 : i32
    return %c0_i32, %c0_i32_0 : i32, i32
  }
}

module attributes {stable_mosaic.version = 11 : i64} {
  func.func @_aspp_kernel(%arg0: i32, %arg1: memref<32x128xbf16, #tpu.memory_space<vmem>>, %arg2: memref<32x1152xbf16, #tpu.memory_space<vmem>>, %arg3: memref<128x128xbf16, #tpu.memory_space<vmem>>, %arg4: memref<1152x128xbf16, #tpu.memory_space<vmem>>, %arg5: memref<128x128xbf16, #tpu.memory_space<vmem>>, %arg6: memref<128x128xbf16, #tpu.memory_space<vmem>>, %arg7: memref<1x128xf32, #tpu.memory_space<vmem>>, %arg8: memref<1x128xf32, #tpu.memory_space<vmem>>, %arg9: memref<32x128xf32, #tpu.memory_space<vmem>>, %arg10: memref<32x128xbf16, #tpu.memory_space<vmem>>) attributes {dimension_semantics = [#tpu.dimension_semantics<arbitrary>], iteration_bounds = array<i64: 1>, scalar_prefetch = 0 : i64, scratch_operands = 0 : i64, tpu.core_type = #tpu.core_type<tc>, window_params = [{pipeline_mode = #tpu.pipeline_mode<synchronous>, transform_indices = @transform_0, window_bounds = array<i64: 32, 128>}, {pipeline_mode = #tpu.pipeline_mode<synchronous>, transform_indices = @transform_1, window_bounds = array<i64: 32, 1152>}, {pipeline_mode = #tpu.pipeline_mode<synchronous>, transform_indices = @transform_2, window_bounds = array<i64: 128, 128>}, {pipeline_mode = #tpu.pipeline_mode<synchronous>, transform_indices = @transform_3, window_bounds = array<i64: 1152, 128>}, {pipeline_mode = #tpu.pipeline_mode<synchronous>, transform_indices = @transform_4, window_bounds = array<i64: 128, 128>}, {pipeline_mode = #tpu.pipeline_mode<synchronous>, transform_indices = @transform_5, window_bounds = array<i64: 128, 128>}, {pipeline_mode = #tpu.pipeline_mode<synchronous>, transform_indices = @transform_6, window_bounds = array<i64: 1, 128>}, {pipeline_mode = #tpu.pipeline_mode<synchronous>, transform_indices = @transform_7, window_bounds = array<i64: 1, 128>}, {pipeline_mode = #tpu.pipeline_mode<synchronous>, transform_indices = @transform_8, window_bounds = array<i64: 32, 128>}, {pipeline_mode = #tpu.pipeline_mode<synchronous>, transform_indices = @transform_9, window_bounds = array<i64: 32, 128>}]} {
    %c0 = arith.constant 0 : index
    %c0_0 = arith.constant 0 : index
    %0 = vector.load %arg1[%c0, %c0_0] : memref<32x128xbf16, #tpu.memory_space<vmem>>, vector<32x128xbf16>
    %c0_1 = arith.constant 0 : index
    %c0_2 = arith.constant 0 : index
    %1 = vector.load %arg3[%c0_1, %c0_2] : memref<128x128xbf16, #tpu.memory_space<vmem>>, vector<128x128xbf16>
    %cst = arith.constant dense<0.000000e+00> : vector<32x128xf32>
    %2 = tpu.matmul %0, %1, %cst {dimension_numbers = #tpu.dot_dimension_numbers<[1], [0], [0], [1], [0, 0, 1, 1], [], []>} : vector<32x128xbf16>, vector<128x128xbf16>, vector<32x128xf32> -> vector<32x128xf32>
    %c0_3 = arith.constant 0 : index
    %c0_4 = arith.constant 0 : index
    %3 = vector.load %arg7[%c0_3, %c0_4] : memref<1x128xf32, #tpu.memory_space<vmem>>, vector<1x128xf32>
    %4 = vector.broadcast %3 : vector<1x128xf32> to vector<32x128xf32>
    %5 = arith.addf %2, %4 : vector<32x128xf32>
    %cst_5 = arith.constant 0.000000e+00 : f32
    %6 = vector.broadcast %cst_5 : f32 to vector<32x128xf32>
    %7 = arith.maximumf %5, %6 : vector<32x128xf32>
    %c0_6 = arith.constant 0 : index
    %c0_7 = arith.constant 0 : index
    %8 = vector.load %arg2[%c0_6, %c0_7] : memref<32x1152xbf16, #tpu.memory_space<vmem>>, vector<32x1152xbf16>
    %c0_8 = arith.constant 0 : index
    %c0_9 = arith.constant 0 : index
    %9 = vector.load %arg4[%c0_8, %c0_9] : memref<1152x128xbf16, #tpu.memory_space<vmem>>, vector<1152x128xbf16>
    %cst_10 = arith.constant dense<0.000000e+00> : vector<32x128xf32>
    %10 = tpu.matmul %8, %9, %cst_10 {dimension_numbers = #tpu.dot_dimension_numbers<[1], [0], [0], [1], [0, 0, 1, 1], [], []>} : vector<32x1152xbf16>, vector<1152x128xbf16>, vector<32x128xf32> -> vector<32x128xf32>
    %c0_11 = arith.constant 0 : index
    %c0_12 = arith.constant 0 : index
    %11 = vector.load %arg8[%c0_11, %c0_12] : memref<1x128xf32, #tpu.memory_space<vmem>>, vector<1x128xf32>
    %12 = vector.broadcast %11 : vector<1x128xf32> to vector<32x128xf32>
    %13 = arith.addf %10, %12 : vector<32x128xf32>
    %cst_13 = arith.constant 0.000000e+00 : f32
    %14 = vector.broadcast %cst_13 : f32 to vector<32x128xf32>
    %15 = arith.maximumf %13, %14 : vector<32x128xf32>
    %16 = arith.truncf %7 : vector<32x128xf32> to vector<32x128xbf16>
    %c0_14 = arith.constant 0 : index
    %c0_15 = arith.constant 0 : index
    %17 = vector.load %arg5[%c0_14, %c0_15] : memref<128x128xbf16, #tpu.memory_space<vmem>>, vector<128x128xbf16>
    %cst_16 = arith.constant dense<0.000000e+00> : vector<32x128xf32>
    %18 = tpu.matmul %16, %17, %cst_16 {dimension_numbers = #tpu.dot_dimension_numbers<[1], [0], [0], [1], [0, 0, 1, 1], [], []>} : vector<32x128xbf16>, vector<128x128xbf16>, vector<32x128xf32> -> vector<32x128xf32>
    %19 = arith.truncf %15 : vector<32x128xf32> to vector<32x128xbf16>
    %c0_17 = arith.constant 0 : index
    %c0_18 = arith.constant 0 : index
    %20 = vector.load %arg6[%c0_17, %c0_18] : memref<128x128xbf16, #tpu.memory_space<vmem>>, vector<128x128xbf16>
    %cst_19 = arith.constant dense<0.000000e+00> : vector<32x128xf32>
    %21 = tpu.matmul %19, %20, %cst_19 {dimension_numbers = #tpu.dot_dimension_numbers<[1], [0], [0], [1], [0, 0, 1, 1], [], []>} : vector<32x128xbf16>, vector<128x128xbf16>, vector<32x128xf32> -> vector<32x128xf32>
    %22 = arith.addf %18, %21 : vector<32x128xf32>
    %c0_20 = arith.constant 0 : index
    %c0_21 = arith.constant 0 : index
    %23 = vector.load %arg9[%c0_20, %c0_21] : memref<32x128xf32, #tpu.memory_space<vmem>>, vector<32x128xf32>
    %24 = arith.addf %22, %23 : vector<32x128xf32>
    %cst_22 = arith.constant 0.000000e+00 : f32
    %25 = vector.broadcast %cst_22 : f32 to vector<32x128xf32>
    %26 = arith.maximumf %24, %25 : vector<32x128xf32>
    %27 = arith.truncf %26 : vector<32x128xf32> to vector<32x128xbf16>
    %c0_23 = arith.constant 0 : index
    %c0_24 = arith.constant 0 : index
    %28 = vector.load %arg10[%c0_23, %c0_24] : memref<32x128xbf16, #tpu.memory_space<vmem>>, vector<32x128xbf16>
    tpu.vector_store %arg10[%c0_23, %c0_24], %27 {strides = array<i32>} : memref<32x128xbf16, #tpu.memory_space<vmem>>, vector<32x128xbf16>,
    return
  }
  func.func @transform_0(%arg0: i32) -> (i32, i32) {
    %c0_i32 = arith.constant 0 : i32
    %c0_i32_0 = arith.constant 0 : i32
    %c0_i32_1 = arith.constant 0 : i32
    return %c0_i32, %c0_i32_0 : i32, i32
  }
  func.func @transform_1(%arg0: i32) -> (i32, i32) {
    %c0_i32 = arith.constant 0 : i32
    %c0_i32_0 = arith.constant 0 : i32
    %c0_i32_1 = arith.constant 0 : i32
    return %c0_i32, %c0_i32_0 : i32, i32
  }
  func.func @transform_2(%arg0: i32) -> (i32, i32) {
    %c0_i32 = arith.constant 0 : i32
    %c0_i32_0 = arith.constant 0 : i32
    %c0_i32_1 = arith.constant 0 : i32
    return %c0_i32, %c0_i32_0 : i32, i32
  }
  func.func @transform_3(%arg0: i32) -> (i32, i32) {
    %c0_i32 = arith.constant 0 : i32
    %c0_i32_0 = arith.constant 0 : i32
    %c0_i32_1 = arith.constant 0 : i32
    return %c0_i32, %c0_i32_0 : i32, i32
  }
  func.func @transform_4(%arg0: i32) -> (i32, i32) {
    %c0_i32 = arith.constant 0 : i32
    %c0_i32_0 = arith.constant 0 : i32
    %c0_i32_1 = arith.constant 0 : i32
    return %c0_i32, %c0_i32_0 : i32, i32
  }
  func.func @transform_5(%arg0: i32) -> (i32, i32) {
    %c0_i32 = arith.constant 0 : i32
    %c0_i32_0 = arith.constant 0 : i32
    %c0_i32_1 = arith.constant 0 : i32
    return %c0_i32, %c0_i32_0 : i32, i32
  }
  func.func @transform_6(%arg0: i32) -> (i32, i32) {
    %c0_i32 = arith.constant 0 : i32
    %c0_i32_0 = arith.constant 0 : i32
    %c0_i32_1 = arith.constant 0 : i32
    return %c0_i32, %c0_i32_0 : i32, i32
  }
  func.func @transform_7(%arg0: i32) -> (i32, i32) {
    %c0_i32 = arith.constant 0 : i32
    %c0_i32_0 = arith.constant 0 : i32
    %c0_i32_1 = arith.constant 0 : i32
    return %c0_i32, %c0_i32_0 : i32, i32
  }
  func.func @transform_8(%arg0: i32) -> (i32, i32) {
    %c0_i32 = arith.constant 0 : i32
    %c0_i32_0 = arith.constant 0 : i32
    %c0_i32_1 = arith.constant 0 : i32
    return %c0_i32, %c0_i32_0 : i32, i32
  }
  func.func @transform_9(%arg0: i32) -> (i32, i32) {
    %c0_i32 = arith.constant 0 : i32
    %c0_i32_0 = arith.constant 0 : i32
    %c0_i32_1 = arith.constant 0 : i32
    return %c0_i32, %c0_i32_0 : i32, i32
  }
}

module attributes {stable_mosaic.version = 11 : i64} {
  func.func @_gemm_bias_act_kernel(%arg0: i32, %arg1: memref<32x1152xbf16, #tpu.memory_space<vmem>>, %arg2: memref<1152x128xbf16, #tpu.memory_space<vmem>>, %arg3: memref<1x128xf32, #tpu.memory_space<vmem>>, %arg4: memref<32x128xbf16, #tpu.memory_space<vmem>>) attributes {dimension_semantics = [#tpu.dimension_semantics<arbitrary>], iteration_bounds = array<i64: 1>, scalar_prefetch = 0 : i64, scratch_operands = 0 : i64, tpu.core_type = #tpu.core_type<tc>, window_params = [{pipeline_mode = #tpu.pipeline_mode<synchronous>, transform_indices = @transform_0, window_bounds = array<i64: 32, 1152>}, {pipeline_mode = #tpu.pipeline_mode<synchronous>, transform_indices = @transform_1, window_bounds = array<i64: 1152, 128>}, {pipeline_mode = #tpu.pipeline_mode<synchronous>, transform_indices = @transform_2, window_bounds = array<i64: 1, 128>}, {pipeline_mode = #tpu.pipeline_mode<synchronous>, transform_indices = @transform_3, window_bounds = array<i64: 32, 128>}]} {
    %c0 = arith.constant 0 : index
    %c0_0 = arith.constant 0 : index
    %0 = vector.load %arg1[%c0, %c0_0] : memref<32x1152xbf16, #tpu.memory_space<vmem>>, vector<32x1152xbf16>
    %c0_1 = arith.constant 0 : index
    %c0_2 = arith.constant 0 : index
    %1 = vector.load %arg2[%c0_1, %c0_2] : memref<1152x128xbf16, #tpu.memory_space<vmem>>, vector<1152x128xbf16>
    %cst = arith.constant dense<0.000000e+00> : vector<32x128xf32>
    %2 = tpu.matmul %0, %1, %cst {dimension_numbers = #tpu.dot_dimension_numbers<[1], [0], [0], [1], [0, 0, 1, 1], [], []>} : vector<32x1152xbf16>, vector<1152x128xbf16>, vector<32x128xf32> -> vector<32x128xf32>
    %c0_3 = arith.constant 0 : index
    %c0_4 = arith.constant 0 : index
    %3 = vector.load %arg3[%c0_3, %c0_4] : memref<1x128xf32, #tpu.memory_space<vmem>>, vector<1x128xf32>
    %4 = vector.broadcast %3 : vector<1x128xf32> to vector<32x128xf32>
    %5 = arith.addf %2, %4 : vector<32x128xf32>
    %cst_5 = arith.constant 0.000000e+00 : f32
    %6 = vector.broadcast %cst_5 : f32 to vector<32x128xf32>
    %7 = arith.maximumf %5, %6 : vector<32x128xf32>
    %8 = arith.truncf %7 : vector<32x128xf32> to vector<32x128xbf16>
    %c0_6 = arith.constant 0 : index
    %c0_7 = arith.constant 0 : index
    %9 = vector.load %arg4[%c0_6, %c0_7] : memref<32x128xbf16, #tpu.memory_space<vmem>>, vector<32x128xbf16>
    tpu.vector_store %arg4[%c0_6, %c0_7], %8 {strides = array<i32>} : memref<32x128xbf16, #tpu.memory_space<vmem>>, vector<32x128xbf16>,
    return
  }
  func.func @transform_0(%arg0: i32) -> (i32, i32) {
    %c0_i32 = arith.constant 0 : i32
    %c0_i32_0 = arith.constant 0 : i32
    %c0_i32_1 = arith.constant 0 : i32
    return %c0_i32, %c0_i32_0 : i32, i32
  }
  func.func @transform_1(%arg0: i32) -> (i32, i32) {
    %c0_i32 = arith.constant 0 : i32
    %c0_i32_0 = arith.constant 0 : i32
    %c0_i32_1 = arith.constant 0 : i32
    return %c0_i32, %c0_i32_0 : i32, i32
  }
  func.func @transform_2(%arg0: i32) -> (i32, i32) {
    %c0_i32 = arith.constant 0 : i32
    %c0_i32_0 = arith.constant 0 : i32
    %c0_i32_1 = arith.constant 0 : i32
    return %c0_i32, %c0_i32_0 : i32, i32
  }
  func.func @transform_3(%arg0: i32) -> (i32, i32) {
    %c0_i32 = arith.constant 0 : i32
    %c0_i32_0 = arith.constant 0 : i32
    %c0_i32_1 = arith.constant 0 : i32
    return %c0_i32, %c0_i32_0 : i32, i32
  }
}

module attributes {stable_mosaic.version = 11 : i64} {
  func.func @_gemm_bias_act_kernel(%arg0: i32, %arg1: memref<128x128xbf16, #tpu.memory_space<vmem>>, %arg2: memref<128x128xbf16, #tpu.memory_space<vmem>>, %arg3: memref<1x128xf32, #tpu.memory_space<vmem>>, %arg4: memref<128x128xbf16, #tpu.memory_space<vmem>>) attributes {dimension_semantics = [#tpu.dimension_semantics<arbitrary>], iteration_bounds = array<i64: 1>, scalar_prefetch = 0 : i64, scratch_operands = 0 : i64, tpu.core_type = #tpu.core_type<tc>, window_params = [{pipeline_mode = #tpu.pipeline_mode<synchronous>, transform_indices = @transform_0, window_bounds = array<i64: 128, 128>}, {pipeline_mode = #tpu.pipeline_mode<synchronous>, transform_indices = @transform_1, window_bounds = array<i64: 128, 128>}, {pipeline_mode = #tpu.pipeline_mode<synchronous>, transform_indices = @transform_2, window_bounds = array<i64: 1, 128>}, {pipeline_mode = #tpu.pipeline_mode<synchronous>, transform_indices = @transform_3, window_bounds = array<i64: 128, 128>}]} {
    %c0 = arith.constant 0 : index
    %c0_0 = arith.constant 0 : index
    %0 = vector.load %arg1[%c0, %c0_0] : memref<128x128xbf16, #tpu.memory_space<vmem>>, vector<128x128xbf16>
    %c0_1 = arith.constant 0 : index
    %c0_2 = arith.constant 0 : index
    %1 = vector.load %arg2[%c0_1, %c0_2] : memref<128x128xbf16, #tpu.memory_space<vmem>>, vector<128x128xbf16>
    %cst = arith.constant dense<0.000000e+00> : vector<128x128xf32>
    %2 = tpu.matmul %0, %1, %cst {dimension_numbers = #tpu.dot_dimension_numbers<[1], [0], [0], [1], [0, 0, 1, 1], [], []>} : vector<128x128xbf16>, vector<128x128xbf16>, vector<128x128xf32> -> vector<128x128xf32>
    %c0_3 = arith.constant 0 : index
    %c0_4 = arith.constant 0 : index
    %3 = vector.load %arg3[%c0_3, %c0_4] : memref<1x128xf32, #tpu.memory_space<vmem>>, vector<1x128xf32>
    %4 = vector.broadcast %3 : vector<1x128xf32> to vector<128x128xf32>
    %5 = arith.addf %2, %4 : vector<128x128xf32>
    %cst_5 = arith.constant 0.000000e+00 : f32
    %6 = vector.broadcast %cst_5 : f32 to vector<128x128xf32>
    %7 = arith.maximumf %5, %6 : vector<128x128xf32>
    %8 = arith.truncf %7 : vector<128x128xf32> to vector<128x128xbf16>
    %c0_6 = arith.constant 0 : index
    %c0_7 = arith.constant 0 : index
    %9 = vector.load %arg4[%c0_6, %c0_7] : memref<128x128xbf16, #tpu.memory_space<vmem>>, vector<128x128xbf16>
    tpu.vector_store %arg4[%c0_6, %c0_7], %8 {strides = array<i32>} : memref<128x128xbf16, #tpu.memory_space<vmem>>, vector<128x128xbf16>,
    return
  }
  func.func @transform_0(%arg0: i32) -> (i32, i32) {
    %c0_i32 = arith.constant 0 : i32
    %c0_i32_0 = arith.constant 0 : i32
    %c0_i32_1 = arith.constant 0 : i32
    return %c0_i32, %c0_i32_0 : i32, i32
  }
  func.func @transform_1(%arg0: i32) -> (i32, i32) {
    %c0_i32 = arith.constant 0 : i32
    %c0_i32_0 = arith.constant 0 : i32
    %c0_i32_1 = arith.constant 0 : i32
    return %c0_i32, %c0_i32_0 : i32, i32
  }
  func.func @transform_2(%arg0: i32) -> (i32, i32) {
    %c0_i32 = arith.constant 0 : i32
    %c0_i32_0 = arith.constant 0 : i32
    %c0_i32_1 = arith.constant 0 : i32
    return %c0_i32, %c0_i32_0 : i32, i32
  }
  func.func @transform_3(%arg0: i32) -> (i32, i32) {
    %c0_i32 = arith.constant 0 : i32
    %c0_i32_0 = arith.constant 0 : i32
    %c0_i32_1 = arith.constant 0 : i32
    return %c0_i32, %c0_i32_0 : i32, i32
  }
}

module attributes {stable_mosaic.version = 11 : i64} {
  func.func @_dec_cls_kernel(%arg0: i32, %arg1: memref<128x2304xbf16, #tpu.memory_space<vmem>>, %arg2: memref<2304x128xbf16, #tpu.memory_space<vmem>>, %arg3: memref<128x128xbf16, #tpu.memory_space<vmem>>, %arg4: memref<1x128xf32, #tpu.memory_space<vmem>>, %arg5: memref<1x128xf32, #tpu.memory_space<vmem>>, %arg6: memref<128x128xf32, #tpu.memory_space<vmem>>) attributes {dimension_semantics = [#tpu.dimension_semantics<arbitrary>], iteration_bounds = array<i64: 1>, scalar_prefetch = 0 : i64, scratch_operands = 0 : i64, tpu.core_type = #tpu.core_type<tc>, window_params = [{pipeline_mode = #tpu.pipeline_mode<synchronous>, transform_indices = @transform_0, window_bounds = array<i64: 128, 2304>}, {pipeline_mode = #tpu.pipeline_mode<synchronous>, transform_indices = @transform_1, window_bounds = array<i64: 2304, 128>}, {pipeline_mode = #tpu.pipeline_mode<synchronous>, transform_indices = @transform_2, window_bounds = array<i64: 128, 128>}, {pipeline_mode = #tpu.pipeline_mode<synchronous>, transform_indices = @transform_3, window_bounds = array<i64: 1, 128>}, {pipeline_mode = #tpu.pipeline_mode<synchronous>, transform_indices = @transform_4, window_bounds = array<i64: 1, 128>}, {pipeline_mode = #tpu.pipeline_mode<synchronous>, transform_indices = @transform_5, window_bounds = array<i64: 128, 128>}]} {
    %c0 = arith.constant 0 : index
    %c0_0 = arith.constant 0 : index
    %0 = vector.load %arg1[%c0, %c0_0] : memref<128x2304xbf16, #tpu.memory_space<vmem>>, vector<128x2304xbf16>
    %c0_1 = arith.constant 0 : index
    %c0_2 = arith.constant 0 : index
    %1 = vector.load %arg2[%c0_1, %c0_2] : memref<2304x128xbf16, #tpu.memory_space<vmem>>, vector<2304x128xbf16>
    %cst = arith.constant dense<0.000000e+00> : vector<128x128xf32>
    %2 = tpu.matmul %0, %1, %cst {dimension_numbers = #tpu.dot_dimension_numbers<[1], [0], [0], [1], [0, 0, 1, 1], [], []>} : vector<128x2304xbf16>, vector<2304x128xbf16>, vector<128x128xf32> -> vector<128x128xf32>
    %c0_3 = arith.constant 0 : index
    %c0_4 = arith.constant 0 : index
    %3 = vector.load %arg4[%c0_3, %c0_4] : memref<1x128xf32, #tpu.memory_space<vmem>>, vector<1x128xf32>
    %4 = vector.broadcast %3 : vector<1x128xf32> to vector<128x128xf32>
    %5 = arith.addf %2, %4 : vector<128x128xf32>
    %cst_5 = arith.constant 0.000000e+00 : f32
    %6 = vector.broadcast %cst_5 : f32 to vector<128x128xf32>
    %7 = arith.maximumf %5, %6 : vector<128x128xf32>
    %8 = arith.truncf %7 : vector<128x128xf32> to vector<128x128xbf16>
    %c0_6 = arith.constant 0 : index
    %c0_7 = arith.constant 0 : index
    %9 = vector.load %arg3[%c0_6, %c0_7] : memref<128x128xbf16, #tpu.memory_space<vmem>>, vector<128x128xbf16>
    %cst_8 = arith.constant dense<0.000000e+00> : vector<128x128xf32>
    %10 = tpu.matmul %8, %9, %cst_8 {dimension_numbers = #tpu.dot_dimension_numbers<[1], [0], [0], [1], [0, 0, 1, 1], [], []>} : vector<128x128xbf16>, vector<128x128xbf16>, vector<128x128xf32> -> vector<128x128xf32>
    %c0_9 = arith.constant 0 : index
    %c0_10 = arith.constant 0 : index
    %11 = vector.load %arg5[%c0_9, %c0_10] : memref<1x128xf32, #tpu.memory_space<vmem>>, vector<1x128xf32>
    %12 = vector.broadcast %11 : vector<1x128xf32> to vector<128x128xf32>
    %13 = arith.addf %10, %12 : vector<128x128xf32>
    %c0_11 = arith.constant 0 : index
    %c0_12 = arith.constant 0 : index
    %14 = vector.load %arg6[%c0_11, %c0_12] : memref<128x128xf32, #tpu.memory_space<vmem>>, vector<128x128xf32>
    tpu.vector_store %arg6[%c0_11, %c0_12], %13 {strides = array<i32>} : memref<128x128xf32, #tpu.memory_space<vmem>>, vector<128x128xf32>,
    return
  }
  func.func @transform_0(%arg0: i32) -> (i32, i32) {
    %c0_i32 = arith.constant 0 : i32
    %c0_i32_0 = arith.constant 0 : i32
    %c0_i32_1 = arith.constant 0 : i32
    return %c0_i32, %c0_i32_0 : i32, i32
  }
  func.func @transform_1(%arg0: i32) -> (i32, i32) {
    %c0_i32 = arith.constant 0 : i32
    %c0_i32_0 = arith.constant 0 : i32
    %c0_i32_1 = arith.constant 0 : i32
    return %c0_i32, %c0_i32_0 : i32, i32
  }
  func.func @transform_2(%arg0: i32) -> (i32, i32) {
    %c0_i32 = arith.constant 0 : i32
    %c0_i32_0 = arith.constant 0 : i32
    %c0_i32_1 = arith.constant 0 : i32
    return %c0_i32, %c0_i32_0 : i32, i32
  }
  func.func @transform_3(%arg0: i32) -> (i32, i32) {
    %c0_i32 = arith.constant 0 : i32
    %c0_i32_0 = arith.constant 0 : i32
    %c0_i32_1 = arith.constant 0 : i32
    return %c0_i32, %c0_i32_0 : i32, i32
  }
  func.func @transform_4(%arg0: i32) -> (i32, i32) {
    %c0_i32 = arith.constant 0 : i32
    %c0_i32_0 = arith.constant 0 : i32
    %c0_i32_1 = arith.constant 0 : i32
    return %c0_i32, %c0_i32_0 : i32, i32
  }
  func.func @transform_5(%arg0: i32) -> (i32, i32) {
    %c0_i32 = arith.constant 0 : i32
    %c0_i32_0 = arith.constant 0 : i32
    %c0_i32_1 = arith.constant 0 : i32
    return %c0_i32, %c0_i32_0 : i32, i32
  }
}

</mosaic_0001>

<bundles_post_ra>
// kernel: _lambda_.6
= control target key start
LH: loop header
LB: loop body
LE: loop exit
PB: predicated region body
PF: predicated region fallthrough
CT: control target
= control target key end

     0   :  { %vm282_vm0 = vcmask 588800   ;;  %vm379_vm1 = vcmask 1043456   ;;  %s1937_s1 = inlined_call_operand.vmem [shape: bf16[72,128], index: 1, kind: input, shape index: {}]   ;;  %s1938_s0 = inlined_call_operand.vmem [shape: bf16[512,72], index: 0, kind: input, shape index: {}]   ;;  %s1939_s2 = inlined_call_operand.vmem [shape: f32[1,128], index: 2, kind: input, shape index: {}]   ;;  %s1940_s3 = inlined_call_operand.vmem [shape: bf16[512,128], index: 3, kind: output, shape index: {}]  }
   0x1   :  { %v1572_v0 = vld [vmem:[%s1937_s1] sm:$0xff]   ;;  %v1573_v1 = vld [vmem:[%s1937_s1 + $0x8] sm:$0xff]   ;;  %v1574_v2 = vld [vmem:[%s1937_s1 + $0x10] sm:$0xff]  }
   0x2   :  { %1486 = vmatprep.subr.bf16.mxu0 %v1572_v0  ;;  %1560 = vmatprep.subr.bf16.mxu1 %v1572_v0  ;;  %v1577_v3 = vld [vmem:[%s1938_s0] sm:$0xff]   ;;  %v1575_v5 = vld [vmem:[%s1937_s1 + $0x18] sm:$0xff]   ;;  %v1579_v8 = vld [vmem:[%s1938_s0 + $0x8] sm:$0xff]  }
   0x3   :  { %1487 = vmatpush3.bf16.msra.mxu0 %v1572_v0  ;;  %1565 = vmatpush3.bf16.msra.mxu1 %v1572_v0  ;;  %v1578_v4 = vld [vmem:[%s1938_s0 + $0x80] sm:$0xff]   ;;  %v1580_v9 = vld [vmem:[%s1938_s0 + $0x88] sm:$0xff]   ;;  %v1581_v10 = vld [vmem:[%s1938_s0 + $0x10] sm:$0xff]  }
   0x4   :  { %1488 = vmatprep.subr.bf16.mxu0 %v1573_v1  ;;  %1561 = vmatprep.subr.bf16.mxu1 %v1573_v1  ;;  %v1576_v6 = vld [vmem:[%s1937_s1 + $0x20] ss:$0 sps:$4 sm:$0xff]   ;;  %v1582_v11 = vld [vmem:[%s1938_s0 + $0x90] sm:$0xff]   ;;  %v1583_v12 = vld [vmem:[%s1938_s0 + $0x18] sm:$0xff]  }
   0x5   :  { %1496 = vmatprep.mubr.msk.bf16.mxu0 %vm282_vm0, %v1577_v3  ;;  %1528 = vmatprep.mubr.msk.bf16.mxu1 %vm282_vm0, %v1578_v4  ;;  %v381_v7 = vsel %vm379_vm1, %v1576_v6, 0  ;;  %v1584_v13 = vld [vmem:[%s1938_s0 + $0x98] sm:$0xff]   ;;  %v1585_v14 = vld [vmem:[%s1938_s0 + $0x20] sm:$0xff]   ;;  %v1587_v16 = vld [vmem:[%s1938_s0 + $0x28] sm:$0xff]  }
   0x6   :  { %v1586_v15 = vld [vmem:[%s1938_s0 + $0xa0] sm:$0xff]   ;;  %v1588_v17 = vld [vmem:[%s1938_s0 + $0xa8] sm:$0xff]   ;;  %v1589_v18 = vld [vmem:[%s1938_s0 + $0x30] sm:$0xff]  }
   0x7   :  { %1489 = vmatpush3.bf16.msra.mxu0 %v1573_v1  ;;  %1566 = vmatpush3.bf16.msra.mxu1 %v1573_v1  ;;  %v1590_v19 = vld [vmem:[%s1938_s0 + $0xb0] sm:$0xff]   ;;  %v1591_v20 = vld [vmem:[%s1938_s0 + $0x38] sm:$0xff]   ;;  %v1593_v22 = vld [vmem:[%s1938_s0 + $0x40] sm:$0xff]  }
   0x8   :  { %1490 = vmatprep.subr.bf16.mxu0 %v1574_v2  ;;  %1562 = vmatprep.subr.bf16.mxu1 %v1574_v2  ;;  %v1592_v21 = vld [vmem:[%s1938_s0 + $0xb8] sm:$0xff]   ;;  %v1594_v23 = vld [vmem:[%s1938_s0 + $0xc0] sm:$0xff]   ;;  %v1595_v24 = vld [vmem:[%s1938_s0 + $0x48] sm:$0xff]  }
   0x9   :  { %v1596_v25 = vld [vmem:[%s1938_s0 + $0xc8] sm:$0xff]   ;;  %v1597_v26 = vld [vmem:[%s1938_s0 + $0x50] sm:$0xff]   ;;  %v1599_v28 = vld [vmem:[%s1938_s0 + $0x58] sm:$0xff]  }
   0xa   :  { %v1598_v27 = vld [vmem:[%s1938_s0 + $0xd0] sm:$0xff]   ;;  %v1600_v29 = vld [vmem:[%s1938_s0 + $0xd8] sm:$0xff]   ;;  %v1601_v30 = vld [vmem:[%s1938_s0 + $0x60] sm:$0xff]  }
   0xb   :  { %1491 = vmatpush3.bf16.msra.mxu0 %v1574_v2  ;;  %1567 = vmatpush3.bf16.msra.mxu1 %v1574_v2  ;;  %v1602_v31 = vld [vmem:[%s1938_s0 + $0xe0] sm:$0xff]   ;;  %v1603_v32 = vld [vmem:[%s1938_s0 + $0x68] sm:$0xff]   ;;  %v1605_v34 = vld [vmem:[%s1938_s0 + $0x70] sm:$0xff]  }
   0xc   :  { %1492 = vmatprep.subr.bf16.mxu0 %v1575_v5  ;;  %1563 = vmatprep.subr.bf16.mxu1 %v1575_v5  ;;  %v1604_v33 = vld [vmem:[%s1938_s0 + $0xe8] sm:$0xff]   ;;  %v1606_v35 = vld [vmem:[%s1938_s0 + $0xf0] sm:$0xff]   ;;  %v1607_v36 = vld [vmem:[%s1938_s0 + $0x78] sm:$0xff]  }
   0xd   :  { %v1608_v37 = vld [vmem:[%s1938_s0 + $0xf8] sm:$0xff]   ;;  %v1775_v38 = vld [vmem:[%s1939_s2] ss:$0 sm:$0xff] }
   0xf   :  { %1493 = vmatpush3.bf16.msra.mxu0 %v1575_v5  ;;  %1568 = vmatpush3.bf16.msra.mxu1 %v1575_v5 }
  0x10   :  { %1570 = vmatprep.subr.msk.bf16.mxu0 %vm379_vm1, %v1576_v6  ;;  %1571 = vmatprep.subr.msk.bf16.mxu1 %vm379_vm1, %v1576_v6 }
  0x13   :  { %1495 = vmatpush3.bf16.msra.mxu0 %v381_v7  ;;  %1569 = vmatpush3.bf16.msra.mxu1 %v381_v7 }
  0x16   :  { %1497 = vmatmul.mubr.msk.bf16.vlgmr.msra.gmra.mrb[0].mxu0 %vm282_vm0, %v1579_v8  ;;  %1529 = vmatmul.mubr.msk.bf16.vlgmr.msra.gmra.mrb[0].mxu1 %vm282_vm0, %v1580_v9 }
  0x17   :  { %1500 = vmatprep.mubr.msk.bf16.mxu0 %vm282_vm0, %v1581_v10  ;;  %1532 = vmatprep.mubr.msk.bf16.mxu1 %vm282_vm0, %v1582_v11 }
  0x1e   :  { %1501 = vmatmul.mubr.msk.bf16.gmra.mrb[4].mxu0 %vm282_vm0, %v1583_v12  ;;  %1533 = vmatmul.mubr.msk.bf16.gmra.mrb[4].mxu1 %vm282_vm0, %v1584_v13 }
  0x1f   :  { %1504 = vmatprep.mubr.msk.bf16.mxu0 %vm282_vm0, %v1585_v14  ;;  %1536 = vmatprep.mubr.msk.bf16.mxu1 %vm282_vm0, %v1586_v15 }
  0x26   :  { %1505 = vmatmul.mubr.msk.bf16.gmra.mrb[8].mxu0 %vm282_vm0, %v1587_v16  ;;  %1537 = vmatmul.mubr.msk.bf16.gmra.mrb[8].mxu1 %vm282_vm0, %v1588_v17 }
  0x27   :  { %1508 = vmatprep.mubr.msk.bf16.mxu0 %vm282_vm0, %v1589_v18  ;;  %1540 = vmatprep.mubr.msk.bf16.mxu1 %vm282_vm0, %v1590_v19 }
  0x2e   :  { %1509 = vmatmul.mubr.msk.bf16.gmra.mrb[12].mxu0 %vm282_vm0, %v1591_v20  ;;  %1541 = vmatmul.mubr.msk.bf16.gmra.mrb[12].mxu1 %vm282_vm0, %v1592_v21 }
  0x2f   :  { %1512 = vmatprep.mubr.msk.bf16.mxu0 %vm282_vm0, %v1593_v22  ;;  %1544 = vmatprep.mubr.msk.bf16.mxu1 %vm282_vm0, %v1594_v23 }
  0x36   :  { %1513 = vmatmul.mubr.msk.bf16.gmra.mrb[16].mxu0 %vm282_vm0, %v1595_v24  ;;  %1545 = vmatmul.mubr.msk.bf16.gmra.mrb[16].mxu1 %vm282_vm0, %v1596_v25 }
  0x37   :  { %1516 = vmatprep.mubr.msk.bf16.mxu0 %vm282_vm0, %v1597_v26  ;;  %1548 = vmatprep.mubr.msk.bf16.mxu1 %vm282_vm0, %v1598_v27 }
  0x3e   :  { %1517 = vmatmul.mubr.msk.bf16.gmra.mrb[20].mxu0 %vm282_vm0, %v1599_v28  ;;  %1549 = vmatmul.mubr.msk.bf16.gmra.mrb[20].mxu1 %vm282_vm0, %v1600_v29 }
  0x3f   :  { %1520 = vmatprep.mubr.msk.bf16.mxu0 %vm282_vm0, %v1601_v30  ;;  %1552 = vmatprep.mubr.msk.bf16.mxu1 %vm282_vm0, %v1602_v31 }
  0x46   :  { %1521 = vmatmul.mubr.msk.bf16.gmra.mrb[24].mxu0 %vm282_vm0, %v1603_v32  ;;  %1553 = vmatmul.mubr.msk.bf16.gmra.mrb[24].mxu1 %vm282_vm0, %v1604_v33 }
  0x47   :  { %1524 = vmatprep.mubr.msk.bf16.mxu0 %vm282_vm0, %v1605_v34  ;;  %1556 = vmatprep.mubr.msk.bf16.mxu1 %vm282_vm0, %v1606_v35 }
  0x4e   :  { %1525 = vmatmul.mubr.msk.bf16.gmra.mrb[28].mxu0 %vm282_vm0, %v1607_v36  ;;  %1557 = vmatmul.mubr.msk.bf16.gmra.mrb[28].mxu1 %vm282_vm0, %v1608_v37 }
  0xe9   :  { %v1498_v39 = vpop.f32.mrb[0].mxu0  ;;  %v1530_v40 = vpop.f32.mrb[0].mxu1 }
  0xea   :  { %v426_v41 = vadd.f32 %v1498_v39, %v1775_v38  ;;  %v554_v42 = vadd.f32 %v1530_v40, %v1775_v38  ;;  %v417_v43 = vpop.f32.mrb[1].mxu0  ;;  %v545_v44 = vpop.f32.mrb[1].mxu1 }
  0xeb   :  { %v418_v45 = vadd.f32 %v1775_v38, %v417_v43  ;;  %v546_v46 = vadd.f32 %v1775_v38, %v545_v44  ;;  %v1499_v47 = vpop.f32.mrb[2].mxu0  ;;  %v1531_v48 = vpop.f32.mrb[2].mxu1 }
  0xec   :  { %v429_v49 = vadd.f32 %v1499_v47, %v1775_v38  ;;  %v557_v50 = vadd.f32 %v1531_v48, %v1775_v38  ;;  %v420_v51 = vpop.f32.mrb[3].mxu0  ;;  %v548_v52 = vpop.f32.mrb[3].mxu1  ;;  %v674_v55 = vmax.f32 %v426_v41, 0.0  ;;  %v706_v56 = vmax.f32 %v554_v42, 0.0 }
  0xed   :  { %v421_v53 = vadd.f32 %v1775_v38, %v420_v51  ;;  %v549_v54 = vadd.f32 %v1775_v38, %v548_v52  ;;  %v672_v59 = vmax.f32 %v418_v45, 0.0  ;;  %v704_v60 = vmax.f32 %v546_v46, 0.0 }
  0xee   :  { %v675_v57 = vmax.f32 %v429_v49, 0.0  ;;  %v707_v58 = vmax.f32 %v557_v50, 0.0 }
  0xef   :  { %v673_v61 = vmax.f32 %v421_v53, 0.0  ;;  %v705_v62 = vmax.f32 %v549_v54, 0.0 }
  0xf0   :  { %v1266_v63 = vpack.c.bf16 %v675_v57, %v674_v55  ;;  %v1346_v0 = vpack.c.bf16 %v707_v58, %v706_v56 }
  0xf1   :  { %v1261_v1 = vpack.c.bf16 %v673_v61, %v672_v59  ;;  %v1341_v2 = vpack.c.bf16 %v705_v62, %v704_v60  ;;  %v1502_v3 = vpop.f32.mrb[4].mxu0  ;;  %v1534_v4 = vpop.f32.mrb[4].mxu1 }
  0xf2   :  { %1418 = vst [vmem:[%s1940_s3 + $0x8] sm:$0xff] %v1266_v63   ;;  %1434 = vst [vmem:[%s1940_s3 + $0x88] sm:$0xff] %v1346_v0   ;;  %v442_v5 = vadd.f32 %v1502_v3, %v1775_v38  ;;  %v570_v6 = vadd.f32 %v1534_v4, %v1775_v38  ;;  %v433_v7 = vpop.f32.mrb[5].mxu0  ;;  %v561_v8 = vpop.f32.mrb[5].mxu1 }
  0xf3   :  { %1262 = vst [vmem:[%s1940_s3] sm:$0xff] %v1261_v1   ;;  %1433 = vst [vmem:[%s1940_s3 + $0x80] sm:$0xff] %v1341_v2   ;;  %v434_v9 = vadd.f32 %v1775_v38, %v433_v7  ;;  %v562_v10 = vadd.f32 %v1775_v38, %v561_v8  ;;  %v1503_v11 = vpop.f32.mrb[6].mxu0  ;;  %v1535_v12 = vpop.f32.mrb[6].mxu1 }
  0xf4   :  { %v445_v13 = vadd.f32 %v1503_v11, %v1775_v38  ;;  %v573_v14 = vadd.f32 %v1535_v12, %v1775_v38  ;;  %v436_v15 = vpop.f32.mrb[7].mxu0  ;;  %v564_v16 = vpop.f32.mrb[7].mxu1  ;;  %v678_v19 = vmax.f32 %v442_v5, 0.0  ;;  %v710_v20 = vmax.f32 %v570_v6, 0.0 }
  0xf5   :  { %v437_v17 = vadd.f32 %v1775_v38, %v436_v15  ;;  %v565_v18 = vadd.f32 %v1775_v38, %v564_v16  ;;  %v676_v23 = vmax.f32 %v434_v9, 0.0  ;;  %v708_v24 = vmax.f32 %v562_v10, 0.0 }
  0xf6   :  { %v679_v21 = vmax.f32 %v445_v13, 0.0  ;;  %v711_v22 = vmax.f32 %v573_v14, 0.0 }
  0xf7   :  { %v677_v25 = vmax.f32 %v437_v17, 0.0  ;;  %v709_v26 = vmax.f32 %v565_v18, 0.0 }
  0xf8   :  { %v1276_v27 = vpack.c.bf16 %v679_v21, %v678_v19  ;;  %v1356_v28 = vpack.c.bf16 %v711_v22, %v710_v20 }
  0xf9   :  { %v1271_v29 = vpack.c.bf16 %v677_v25, %v676_v23  ;;  %v1351_v30 = vpack.c.bf16 %v709_v26, %v708_v24  ;;  %v1506_v31 = vpop.f32.mrb[8].mxu0  ;;  %v1538_v32 = vpop.f32.mrb[8].mxu1 }
  0xfa   :  { %1420 = vst [vmem:[%s1940_s3 + $0x18] sm:$0xff] %v1276_v27   ;;  %1436 = vst [vmem:[%s1940_s3 + $0x98] sm:$0xff] %v1356_v28   ;;  %v458_v33 = vadd.f32 %v1506_v31, %v1775_v38  ;;  %v586_v34 = vadd.f32 %v1538_v32, %v1775_v38  ;;  %v449_v35 = vpop.f32.mrb[9].mxu0  ;;  %v577_v36 = vpop.f32.mrb[9].mxu1 }
  0xfb   :  { %1419 = vst [vmem:[%s1940_s3 + $0x10] sm:$0xff] %v1271_v29   ;;  %1435 = vst [vmem:[%s1940_s3 + $0x90] sm:$0xff] %v1351_v30   ;;  %v450_v37 = vadd.f32 %v1775_v38, %v449_v35  ;;  %v578_v39 = vadd.f32 %v1775_v38, %v577_v36  ;;  %v1507_v40 = vpop.f32.mrb[10].mxu0  ;;  %v1539_v41 = vpop.f32.mrb[10].mxu1 }
  0xfc   :  { %v461_v42 = vadd.f32 %v1507_v40, %v1775_v38  ;;  %v589_v43 = vadd.f32 %v1539_v41, %v1775_v38  ;;  %v452_v44 = vpop.f32.mrb[11].mxu0  ;;  %v580_v45 = vpop.f32.mrb[11].mxu1  ;;  %v682_v48 = vmax.f32 %v458_v33, 0.0  ;;  %v714_v49 = vmax.f32 %v586_v34, 0.0 }
  0xfd   :  { %v453_v46 = vadd.f32 %v1775_v38, %v452_v44  ;;  %v581_v47 = vadd.f32 %v1775_v38, %v580_v45  ;;  %v680_v52 = vmax.f32 %v450_v37, 0.0  ;;  %v712_v53 = vmax.f32 %v578_v39, 0.0 }
  0xfe   :  { %v683_v50 = vmax.f32 %v461_v42, 0.0  ;;  %v715_v51 = vmax.f32 %v589_v43, 0.0 }
  0xff   :  { %v681_v54 = vmax.f32 %v453_v46, 0.0  ;;  %v713_v55 = vmax.f32 %v581_v47, 0.0 }
 0x100   :  { %v1286_v56 = vpack.c.bf16 %v683_v50, %v682_v48  ;;  %v1366_v57 = vpack.c.bf16 %v715_v51, %v714_v49 }
 0x101   :  { %v1281_v58 = vpack.c.bf16 %v681_v54, %v680_v52  ;;  %v1361_v59 = vpack.c.bf16 %v713_v55, %v712_v53  ;;  %v1510_v60 = vpop.f32.mrb[12].mxu0  ;;  %v1542_v61 = vpop.f32.mrb[12].mxu1 }
 0x102   :  { %1422 = vst [vmem:[%s1940_s3 + $0x28] sm:$0xff] %v1286_v56   ;;  %1438 = vst [vmem:[%s1940_s3 + $0xa8] sm:$0xff] %v1366_v57   ;;  %v474_v62 = vadd.f32 %v1510_v60, %v1775_v38  ;;  %v602_v63 = vadd.f32 %v1542_v61, %v1775_v38  ;;  %v465_v0 = vpop.f32.mrb[13].mxu0  ;;  %v593_v1 = vpop.f32.mrb[13].mxu1 }
 0x103   :  { %1421 = vst [vmem:[%s1940_s3 + $0x20] sm:$0xff] %v1281_v58   ;;  %1437 = vst [vmem:[%s1940_s3 + $0xa0] sm:$0xff] %v1361_v59   ;;  %v466_v2 = vadd.f32 %v1775_v38, %v465_v0  ;;  %v594_v3 = vadd.f32 %v1775_v38, %v593_v1  ;;  %v1511_v4 = vpop.f32.mrb[14].mxu0  ;;  %v1543_v5 = vpop.f32.mrb[14].mxu1 }
 0x104   :  { %v477_v6 = vadd.f32 %v1511_v4, %v1775_v38  ;;  %v605_v7 = vadd.f32 %v1543_v5, %v1775_v38  ;;  %v468_v8 = vpop.f32.mrb[15].mxu0  ;;  %v596_v9 = vpop.f32.mrb[15].mxu1  ;;  %v686_v12 = vmax.f32 %v474_v62, 0.0  ;;  %v718_v13 = vmax.f32 %v602_v63, 0.0 }
 0x105   :  { %v469_v10 = vadd.f32 %v1775_v38, %v468_v8  ;;  %v597_v11 = vadd.f32 %v1775_v38, %v596_v9  ;;  %v684_v16 = vmax.f32 %v466_v2, 0.0  ;;  %v716_v17 = vmax.f32 %v594_v3, 0.0 }
 0x106   :  { %v687_v14 = vmax.f32 %v477_v6, 0.0  ;;  %v719_v15 = vmax.f32 %v605_v7, 0.0 }
 0x107   :  { %v685_v18 = vmax.f32 %v469_v10, 0.0  ;;  %v717_v19 = vmax.f32 %v597_v11, 0.0 }
 0x108   :  { %v1296_v20 = vpack.c.bf16 %v687_v14, %v686_v12  ;;  %v1376_v21 = vpack.c.bf16 %v719_v15, %v718_v13 }
 0x109   :  { %v1291_v22 = vpack.c.bf16 %v685_v18, %v684_v16  ;;  %v1371_v23 = vpack.c.bf16 %v717_v19, %v716_v17  ;;  %v1514_v24 = vpop.f32.mrb[16].mxu0  ;;  %v1546_v25 = vpop.f32.mrb[16].mxu1 }
 0x10a   :  { %1424 = vst [vmem:[%s1940_s3 + $0x38] sm:$0xff] %v1296_v20   ;;  %1440 = vst [vmem:[%s1940_s3 + $0xb8] sm:$0xff] %v1376_v21   ;;  %v490_v26 = vadd.f32 %v1514_v24, %v1775_v38  ;;  %v618_v27 = vadd.f32 %v1546_v25, %v1775_v38  ;;  %v481_v28 = vpop.f32.mrb[17].mxu0  ;;  %v609_v29 = vpop.f32.mrb[17].mxu1 }
 0x10b   :  { %1423 = vst [vmem:[%s1940_s3 + $0x30] sm:$0xff] %v1291_v22   ;;  %1439 = vst [vmem:[%s1940_s3 + $0xb0] sm:$0xff] %v1371_v23   ;;  %v482_v30 = vadd.f32 %v1775_v38, %v481_v28  ;;  %v610_v31 = vadd.f32 %v1775_v38, %v609_v29  ;;  %v1515_v32 = vpop.f32.mrb[18].mxu0  ;;  %v1547_v33 = vpop.f32.mrb[18].mxu1 }
 0x10c   :  { %v493_v34 = vadd.f32 %v1515_v32, %v1775_v38  ;;  %v621_v35 = vadd.f32 %v1547_v33, %v1775_v38  ;;  %v484_v36 = vpop.f32.mrb[19].mxu0  ;;  %v612_v37 = vpop.f32.mrb[19].mxu1  ;;  %v690_v41 = vmax.f32 %v490_v26, 0.0  ;;  %v722_v42 = vmax.f32 %v618_v27, 0.0 }
 0x10d   :  { %v485_v39 = vadd.f32 %v1775_v38, %v484_v36  ;;  %v613_v40 = vadd.f32 %v1775_v38, %v612_v37  ;;  %v688_v45 = vmax.f32 %v482_v30, 0.0  ;;  %v720_v46 = vmax.f32 %v610_v31, 0.0 }
 0x10e   :  { %v691_v43 = vmax.f32 %v493_v34, 0.0  ;;  %v723_v44 = vmax.f32 %v621_v35, 0.0 }
 0x10f   :  { %v689_v47 = vmax.f32 %v485_v39, 0.0  ;;  %v721_v48 = vmax.f32 %v613_v40, 0.0 }
 0x110   :  { %v1306_v49 = vpack.c.bf16 %v691_v43, %v690_v41  ;;  %v1386_v50 = vpack.c.bf16 %v723_v44, %v722_v42 }
 0x111   :  { %v1301_v51 = vpack.c.bf16 %v689_v47, %v688_v45  ;;  %v1381_v52 = vpack.c.bf16 %v721_v48, %v720_v46  ;;  %v1518_v53 = vpop.f32.mrb[20].mxu0  ;;  %v1550_v54 = vpop.f32.mrb[20].mxu1 }
 0x112   :  { %1426 = vst [vmem:[%s1940_s3 + $0x48] sm:$0xff] %v1306_v49   ;;  %1442 = vst [vmem:[%s1940_s3 + $0xc8] sm:$0xff] %v1386_v50   ;;  %v506_v55 = vadd.f32 %v1518_v53, %v1775_v38  ;;  %v634_v56 = vadd.f32 %v1550_v54, %v1775_v38  ;;  %v497_v57 = vpop.f32.mrb[21].mxu0  ;;  %v625_v58 = vpop.f32.mrb[21].mxu1 }
 0x113   :  { %1425 = vst [vmem:[%s1940_s3 + $0x40] sm:$0xff] %v1301_v51   ;;  %1441 = vst [vmem:[%s1940_s3 + $0xc0] sm:$0xff] %v1381_v52   ;;  %v498_v59 = vadd.f32 %v1775_v38, %v497_v57  ;;  %v626_v60 = vadd.f32 %v1775_v38, %v625_v58  ;;  %v1519_v61 = vpop.f32.mrb[22].mxu0  ;;  %v1551_v62 = vpop.f32.mrb[22].mxu1 }
 0x114   :  { %v509_v63 = vadd.f32 %v1519_v61, %v1775_v38  ;;  %v637_v0 = vadd.f32 %v1551_v62, %v1775_v38  ;;  %v500_v1 = vpop.f32.mrb[23].mxu0  ;;  %v628_v2 = vpop.f32.mrb[23].mxu1  ;;  %v694_v5 = vmax.f32 %v506_v55, 0.0  ;;  %v726_v6 = vmax.f32 %v634_v56, 0.0 }
 0x115   :  { %v501_v3 = vadd.f32 %v1775_v38, %v500_v1  ;;  %v629_v4 = vadd.f32 %v1775_v38, %v628_v2  ;;  %v692_v9 = vmax.f32 %v498_v59, 0.0  ;;  %v724_v10 = vmax.f32 %v626_v60, 0.0 }
 0x116   :  { %v695_v7 = vmax.f32 %v509_v63, 0.0  ;;  %v727_v8 = vmax.f32 %v637_v0, 0.0 }
 0x117   :  { %v693_v11 = vmax.f32 %v501_v3, 0.0  ;;  %v725_v12 = vmax.f32 %v629_v4, 0.0 }
 0x118   :  { %v1316_v13 = vpack.c.bf16 %v695_v7, %v694_v5  ;;  %v1396_v14 = vpack.c.bf16 %v727_v8, %v726_v6 }
 0x119   :  { %v1311_v15 = vpack.c.bf16 %v693_v11, %v692_v9  ;;  %v1391_v16 = vpack.c.bf16 %v725_v12, %v724_v10  ;;  %v1522_v17 = vpop.f32.mrb[24].mxu0  ;;  %v1554_v18 = vpop.f32.mrb[24].mxu1 }
 0x11a   :  { %1428 = vst [vmem:[%s1940_s3 + $0x58] sm:$0xff] %v1316_v13   ;;  %1444 = vst [vmem:[%s1940_s3 + $0xd8] sm:$0xff] %v1396_v14   ;;  %v522_v19 = vadd.f32 %v1522_v17, %v1775_v38  ;;  %v650_v20 = vadd.f32 %v1554_v18, %v1775_v38  ;;  %v513_v21 = vpop.f32.mrb[25].mxu0  ;;  %v641_v22 = vpop.f32.mrb[25].mxu1 }
 0x11b   :  { %1427 = vst [vmem:[%s1940_s3 + $0x50] sm:$0xff] %v1311_v15   ;;  %1443 = vst [vmem:[%s1940_s3 + $0xd0] sm:$0xff] %v1391_v16   ;;  %v514_v23 = vadd.f32 %v1775_v38, %v513_v21  ;;  %v642_v24 = vadd.f32 %v1775_v38, %v641_v22  ;;  %v1523_v25 = vpop.f32.mrb[26].mxu0  ;;  %v1555_v26 = vpop.f32.mrb[26].mxu1 }
 0x11c   :  { %v525_v27 = vadd.f32 %v1523_v25, %v1775_v38  ;;  %v653_v28 = vadd.f32 %v1555_v26, %v1775_v38  ;;  %v516_v29 = vpop.f32.mrb[27].mxu0  ;;  %v644_v30 = vpop.f32.mrb[27].mxu1  ;;  %v698_v33 = vmax.f32 %v522_v19, 0.0  ;;  %v730_v34 = vmax.f32 %v650_v20, 0.0 }
 0x11d   :  { %v517_v31 = vadd.f32 %v1775_v38, %v516_v29  ;;  %v645_v32 = vadd.f32 %v1775_v38, %v644_v30  ;;  %v696_v37 = vmax.f32 %v514_v23, 0.0  ;;  %v728_v39 = vmax.f32 %v642_v24, 0.0 }
 0x11e   :  { %v699_v35 = vmax.f32 %v525_v27, 0.0  ;;  %v731_v36 = vmax.f32 %v653_v28, 0.0 }
 0x11f   :  { %v697_v40 = vmax.f32 %v517_v31, 0.0  ;;  %v729_v41 = vmax.f32 %v645_v32, 0.0 }
 0x120   :  { %v1326_v42 = vpack.c.bf16 %v699_v35, %v698_v33  ;;  %v1406_v43 = vpack.c.bf16 %v731_v36, %v730_v34 }
 0x121   :  { %v1321_v44 = vpack.c.bf16 %v697_v40, %v696_v37  ;;  %v1401_v45 = vpack.c.bf16 %v729_v41, %v728_v39  ;;  %v1526_v46 = vpop.f32.mrb[28].mxu0  ;;  %v1558_v47 = vpop.f32.mrb[28].mxu1 }
 0x122   :  { %1430 = vst [vmem:[%s1940_s3 + $0x68] sm:$0xff] %v1326_v42   ;;  %1446 = vst [vmem:[%s1940_s3 + $0xe8] sm:$0xff] %v1406_v43   ;;  %v538_v48 = vadd.f32 %v1526_v46, %v1775_v38  ;;  %v666_v49 = vadd.f32 %v1558_v47, %v1775_v38  ;;  %v529_v50 = vpop.f32.mrb[29].mxu0  ;;  %v657_v51 = vpop.f32.mrb[29].mxu1 }
 0x123   :  { %1429 = vst [vmem:[%s1940_s3 + $0x60] sm:$0xff] %v1321_v44   ;;  %1445 = vst [vmem:[%s1940_s3 + $0xe0] sm:$0xff] %v1401_v45   ;;  %v530_v52 = vadd.f32 %v1775_v38, %v529_v50  ;;  %v658_v53 = vadd.f32 %v1775_v38, %v657_v51  ;;  %v1527_v54 = vpop.f32.mrb[30].mxu0  ;;  %v1559_v55 = vpop.f32.mrb[30].mxu1 }
 0x124   :  { %v541_v56 = vadd.f32 %v1527_v54, %v1775_v38  ;;  %v669_v57 = vadd.f32 %v1559_v55, %v1775_v38  ;;  %v532_v58 = vpop.f32.mrb[31].mxu0  ;;  %v660_v59 = vpop.f32.mrb[31].mxu1  ;;  %v702_v62 = vmax.f32 %v538_v48, 0.0  ;;  %v734_v63 = vmax.f32 %v666_v49, 0.0 }
 0x125   :  { %v533_v60 = vadd.f32 %v1775_v38, %v532_v58  ;;  %v661_v61 = vadd.f32 %v1775_v38, %v660_v59  ;;  %v700_v2 = vmax.f32 %v530_v52, 0.0  ;;  %v732_v3 = vmax.f32 %v658_v53, 0.0 }
 0x126   :  { %v703_v0 = vmax.f32 %v541_v56, 0.0  ;;  %v735_v1 = vmax.f32 %v669_v57, 0.0 }
 0x127   :  { %v701_v4 = vmax.f32 %v533_v60, 0.0  ;;  %v733_v5 = vmax.f32 %v661_v61, 0.0 }
 0x128   :  { %v1336_v6 = vpack.c.bf16 %v703_v0, %v702_v62  ;;  %v1416_v7 = vpack.c.bf16 %v735_v1, %v734_v63 }
 0x129   :  { %v1331_v8 = vpack.c.bf16 %v701_v4, %v700_v2  ;;  %v1411_v9 = vpack.c.bf16 %v733_v5, %v732_v3 }
 0x12a   :  { %1432 = vst [vmem:[%s1940_s3 + $0x78] sm:$0xff] %v1336_v6   ;;  %1448 = vst [vmem:[%s1940_s3 + $0xf8] sm:$0xff] %v1416_v7  }
 0x12b   :  { %1431 = vst [vmem:[%s1940_s3 + $0x70] sm:$0xff] %v1331_v8   ;;  %1447 = vst [vmem:[%s1940_s3 + $0xf0] sm:$0xff] %v1411_v9  }

// kernel: _lambda_.7
= control target key start
LH: loop header
LB: loop body
LE: loop exit
PB: predicated region body
PF: predicated region fallthrough
CT: control target
= control target key end

     0   :  { %s2926_s1 = inlined_call_operand.vmem [shape: bf16[1152,128], index: 1, kind: input, shape index: {}]   ;;  %s2927_s0 = inlined_call_operand.vmem [shape: bf16[128,1152], index: 0, kind: input, shape index: {}]   ;;  %s2928_s2 = inlined_call_operand.vmem [shape: f32[1,128], index: 2, kind: input, shape index: {}]   ;;  %s2929_s3 = inlined_call_operand.vmem [shape: bf16[128,128], index: 3, kind: output, shape index: {}]  }
   0x1   :  { %v2175_v0 = vld [vmem:[%s2926_s1 + $0x40] sm:$0xff]   ;;  %v2179_v4 = vld [vmem:[%s2926_s1 + $0x48] sm:$0xff]   ;;  %v2183_v8 = vld [vmem:[%s2926_s1 + $0x50] sm:$0xff]  }
   0x2   :  { %v2176_v1 = vld [vmem:[%s2926_s1 + $0xc0] sm:$0xff]   ;;  %1855 = vmatprep.subr.bf16.mxu0 %v2175_v0  ;;  %v2180_v5 = vld [vmem:[%s2926_s1 + $0xc8] sm:$0xff]   ;;  %v2184_v9 = vld [vmem:[%s2926_s1 + $0xd0] sm:$0xff]  }
   0x3   :  { %v2177_v2 = vld [vmem:[%s2926_s1] sm:$0xff]   ;;  %1919 = vmatprep.subr.bf16.mxu1 %v2176_v1  ;;  %v2181_v6 = vld [vmem:[%s2926_s1 + $0x8] sm:$0xff]   ;;  %v2185_v10 = vld [vmem:[%s2926_s1 + $0x10] sm:$0xff]  }
   0x4   :  { %v2178_v3 = vld [vmem:[%s2926_s1 + $0x80] sm:$0xff]   ;;  %1856 = vmatpush3.bf16.msra.mxu0 %v2177_v2  ;;  %v2182_v7 = vld [vmem:[%s2926_s1 + $0x88] sm:$0xff]   ;;  %v2186_v11 = vld [vmem:[%s2926_s1 + $0x90] sm:$0xff]  }
   0x5   :  { %1920 = vmatpush3.bf16.msra.mxu1 %v2178_v3  ;;  %1857 = vmatprep.subr.bf16.mxu0 %v2179_v4  ;;  %v2187_v12 = vld [vmem:[%s2926_s1 + $0x58] sm:$0xff]   ;;  %v2191_v16 = vld [vmem:[%s2926_s1 + $0x60] sm:$0xff]   ;;  %v2195_v20 = vld [vmem:[%s2926_s1 + $0x68] sm:$0xff]  }
   0x6   :  { %1921 = vmatprep.subr.bf16.mxu1 %v2180_v5  ;;  %v2188_v13 = vld [vmem:[%s2926_s1 + $0xd8] sm:$0xff]   ;;  %v2192_v17 = vld [vmem:[%s2926_s1 + $0xe0] sm:$0xff]   ;;  %v2196_v21 = vld [vmem:[%s2926_s1 + $0xe8] sm:$0xff]  }
   0x7   :  { %v2189_v14 = vld [vmem:[%s2926_s1 + $0x18] sm:$0xff]   ;;  %v2193_v18 = vld [vmem:[%s2926_s1 + $0x20] sm:$0xff]   ;;  %v2197_v22 = vld [vmem:[%s2926_s1 + $0x28] sm:$0xff]  }
   0x8   :  { %1858 = vmatpush3.bf16.msra.mxu0 %v2181_v6  ;;  %v2190_v15 = vld [vmem:[%s2926_s1 + $0x98] sm:$0xff]   ;;  %v2194_v19 = vld [vmem:[%s2926_s1 + $0xa0] sm:$0xff]   ;;  %v2198_v23 = vld [vmem:[%s2926_s1 + $0xa8] sm:$0xff]  }
   0x9   :  { %1922 = vmatpush3.bf16.msra.mxu1 %v2182_v7  ;;  %1859 = vmatprep.subr.bf16.mxu0 %v2183_v8  ;;  %v2199_v24 = vld [vmem:[%s2926_s1 + $0x70] sm:$0xff]   ;;  %v2203_v28 = vld [vmem:[%s2926_s1 + $0x78] sm:$0xff]   ;;  %v2207_v32 = vld [vmem:[%s2927_s0] ss:$36 sps:$4 sm:$0xff]  }
   0xa   :  { %1923 = vmatprep.subr.bf16.mxu1 %v2184_v9  ;;  %v2200_v25 = vld [vmem:[%s2926_s1 + $0xf0] sm:$0xff]   ;;  %v2204_v29 = vld [vmem:[%s2926_s1 + $0xf8] sm:$0xff]   ;;  %v2209_v33 = vld [vmem:[%s2927_s0 + $0x4] ss:$36 sps:$4 sm:$0xff]  }
   0xb   :  { %v2201_v26 = vld [vmem:[%s2926_s1 + $0x30] sm:$0xff]   ;;  %v2205_v30 = vld [vmem:[%s2926_s1 + $0x38] sm:$0xff]   ;;  %v2210_v34 = vld [vmem:[%s2927_s0 + $0x8] ss:$36 sps:$4 sm:$0xff]   ;;  %1078 = vmatprep.mubr.bf16.mxu0 %v2209_v33 }
   0xc   :  { %1860 = vmatpush3.bf16.msra.mxu0 %v2185_v10  ;;  %v2202_v27 = vld [vmem:[%s2926_s1 + $0xb0] sm:$0xff]   ;;  %v2206_v31 = vld [vmem:[%s2926_s1 + $0xb8] sm:$0xff]   ;;  %v2213_v36 = vld [vmem:[%s2926_s1 + $0x140] sm:$0xff]  }
   0xd   :  { %1924 = vmatpush3.bf16.msra.mxu1 %v2186_v11  ;;  %1861 = vmatprep.subr.bf16.mxu0 %v2187_v12  ;;  %v2212_v35 = vld [vmem:[%s2927_s0 + $0xc] ss:$36 sps:$4 sm:$0xff]   ;;  %v2214_v37 = vld [vmem:[%s2926_s1 + $0x1c0] sm:$0xff]   ;;  %v2219_v41 = vld [vmem:[%s2927_s0 + $0x54] ss:$36 sps:$4 sm:$0xff]  }
   0xe   :  { %1925 = vmatprep.subr.bf16.mxu1 %v2188_v13  ;;  %1175 = vmatprep.mubr.bf16.mxu1 %v2212_v35  ;;  %v2215_v38 = vld [vmem:[%s2926_s1 + $0x100] sm:$0xff]   ;;  %v2217_v40 = vld [vmem:[%s2927_s0 + $0x4c] ss:$36 sps:$4 sm:$0xff]   ;;  %v2227_v48 = vld [vmem:[%s2927_s0 + $0x94] ss:$36 sps:$4 sm:$0xff]  }
   0xf   :  { %v2216_v39 = vld [vmem:[%s2926_s1 + $0x180] sm:$0xff]   ;;  %v2221_v42 = vld [vmem:[%s2927_s0 + $0x48] ss:$36 sps:$4 sm:$0xff]   ;;  %v2222_v43 = vld [vmem:[%s2927_s0 + $0x50] ss:$36 sps:$4 sm:$0xff]  }
  0x10   :  { %1862 = vmatpush3.bf16.msra.mxu0 %v2189_v14  ;;  %v2223_v44 = vld [vmem:[%s2926_s1 + $0x148] sm:$0xff]   ;;  %v2229_v49 = vld [vmem:[%s2927_s0 + $0x9c] ss:$36 sps:$4 sm:$0xff]   ;;  %v2231_v50 = vld [vmem:[%s2927_s0 + $0x90] ss:$36 sps:$4 sm:$0xff]  }
  0x11   :  { %1926 = vmatpush3.bf16.msra.mxu1 %v2190_v15  ;;  %1863 = vmatprep.subr.bf16.mxu0 %v2191_v16  ;;  %v2224_v45 = vld [vmem:[%s2926_s1 + $0x1c8] sm:$0xff]   ;;  %v2232_v51 = vld [vmem:[%s2927_s0 + $0x98] ss:$36 sps:$4 sm:$0xff]   ;;  %v2233_v52 = vld [vmem:[%s2926_s1 + $0x150] sm:$0xff]  }
  0x12   :  { %1927 = vmatprep.subr.bf16.mxu1 %v2192_v17  ;;  %v2225_v46 = vld [vmem:[%s2926_s1 + $0x108] sm:$0xff]   ;;  %v2234_v53 = vld [vmem:[%s2926_s1 + $0x1d0] sm:$0xff]   ;;  %v2237_v56 = vld [vmem:[%s2927_s0 + $0xdc] ss:$36 sps:$4 sm:$0xff]  }
  0x13   :  { %v2226_v47 = vld [vmem:[%s2926_s1 + $0x188] sm:$0xff]   ;;  %v2235_v54 = vld [vmem:[%s2926_s1 + $0x110] sm:$0xff]   ;;  %v2241_v58 = vld [vmem:[%s2927_s0 + $0xd8] ss:$36 sps:$4 sm:$0xff]  }
  0x14   :  { %1864 = vmatpush3.bf16.msra.mxu0 %v2193_v18  ;;  %v2236_v55 = vld [vmem:[%s2926_s1 + $0x190] sm:$0xff]   ;;  %v2239_v57 = vld [vmem:[%s2927_s0 + $0xe4] ss:$36 sps:$4 sm:$0xff]   ;;  %v2243_v60 = vld [vmem:[%s2926_s1 + $0x158] sm:$0xff]  }
  0x15   :  { %1928 = vmatpush3.bf16.msra.mxu1 %v2194_v19  ;;  %1865 = vmatprep.subr.bf16.mxu0 %v2195_v20  ;;  %v2242_v59 = vld [vmem:[%s2927_s0 + $0xe0] ss:$36 sps:$4 sm:$0xff]   ;;  %v2244_v61 = vld [vmem:[%s2926_s1 + $0x1d8] sm:$0xff]   ;;  %v2249_v1 = vld [vmem:[%s2927_s0 + $0x12c] ss:$36 sps:$4 sm:$0xff]  }
  0x16   :  { %1929 = vmatprep.subr.bf16.mxu1 %v2196_v21  ;;  %v2245_v62 = vld [vmem:[%s2926_s1 + $0x118] sm:$0xff]   ;;  %v2247_v0 = vld [vmem:[%s2927_s0 + $0x124] ss:$36 sps:$4 sm:$0xff]   ;;  %v2257_v8 = vld [vmem:[%s2927_s0 + $0x16c] ss:$36 sps:$4 sm:$0xff]  }
  0x17   :  { %v2246_v63 = vld [vmem:[%s2926_s1 + $0x198] sm:$0xff]   ;;  %v2251_v2 = vld [vmem:[%s2927_s0 + $0x120] ss:$36 sps:$4 sm:$0xff]   ;;  %v2252_v4 = vld [vmem:[%s2927_s0 + $0x128] ss:$36 sps:$4 sm:$0xff]  }
  0x18   :  { %1866 = vmatpush3.bf16.msra.mxu0 %v2197_v22  ;;  %v2253_v3 = vld [vmem:[%s2926_s1 + $0x160] sm:$0xff]   ;;  %v2259_v9 = vld [vmem:[%s2927_s0 + $0x174] ss:$36 sps:$4 sm:$0xff]   ;;  %v2263_v10 = vld [vmem:[%s2926_s1 + $0x168] sm:$0xff]  }
  0x19   :  { %1930 = vmatpush3.bf16.msra.mxu1 %v2198_v23  ;;  %1867 = vmatprep.subr.bf16.mxu0 %v2199_v24  ;;  %v2254_v5 = vld [vmem:[%s2926_s1 + $0x1e0] sm:$0xff]   ;;  %v2264_v11 = vld [vmem:[%s2926_s1 + $0x1e8] sm:$0xff]   ;;  %v2262_v15 = vld [vmem:[%s2927_s0 + $0x170] ss:$36 sps:$4 sm:$0xff]  }
  0x1a   :  { %1931 = vmatprep.subr.bf16.mxu1 %v2200_v25  ;;  %v2255_v6 = vld [vmem:[%s2926_s1 + $0x120] sm:$0xff]   ;;  %v2261_v12 = vld [vmem:[%s2927_s0 + $0x168] ss:$36 sps:$4 sm:$0xff]   ;;  %v2267_v16 = vld [vmem:[%s2927_s0 + $0x1b4] ss:$36 sps:$4 sm:$0xff]  }
  0x1b   :  { %v2256_v7 = vld [vmem:[%s2926_s1 + $0x1a0] sm:$0xff]   ;;  %v2265_v13 = vld [vmem:[%s2926_s1 + $0x128] sm:$0xff]   ;;  %v2273_v18 = vld [vmem:[%s2926_s1 + $0x170] sm:$0xff]  }
  0x1c   :  { %1868 = vmatpush3.bf16.msra.mxu0 %v2201_v26  ;;  %v2266_v14 = vld [vmem:[%s2926_s1 + $0x1a8] sm:$0xff]   ;;  %v2269_v17 = vld [vmem:[%s2927_s0 + $0x1bc] ss:$36 sps:$4 sm:$0xff]   ;;  %v2274_v19 = vld [vmem:[%s2926_s1 + $0x1f0] sm:$0xff]  }
  0x1d   :  { %1932 = vmatpush3.bf16.msra.mxu1 %v2202_v27  ;;  %1869 = vmatprep.subr.bf16.mxu0 %v2203_v28  ;;  %v2275_v20 = vld [vmem:[%s2926_s1 + $0x130] sm:$0xff]   ;;  %v2272_v23 = vld [vmem:[%s2927_s0 + $0x1b8] ss:$36 sps:$4 sm:$0xff]   ;;  %v2279_v25 = vld [vmem:[%s2927_s0 + $0x204] ss:$36 sps:$4 sm:$0xff]  }
  0x1e   :  { %1933 = vmatprep.subr.bf16.mxu1 %v2204_v29  ;;  %v2276_v21 = vld [vmem:[%s2926_s1 + $0x1b0] sm:$0xff]   ;;  %v2277_v24 = vld [vmem:[%s2927_s0 + $0x1fc] ss:$36 sps:$4 sm:$0xff]  }
  0x1f   :  { %v2271_v22 = vld [vmem:[%s2927_s0 + $0x1b0] ss:$36 sps:$4 sm:$0xff]   ;;  %v2283_v26 = vld [vmem:[%s2926_s1 + $0x178] sm:$0xff]  }
  0x20   :  { %1870 = vmatpush3.bf16.msra.mxu0 %v2205_v30  ;;  %v2284_v27 = vld [vmem:[%s2926_s1 + $0x1f8] sm:$0xff]   ;;  %v2287_v35 = vld [vmem:[%s2927_s0 + $0x10] ss:$36 sps:$4 sm:$0xff]  }
  0x21   :  { %1934 = vmatpush3.bf16.msra.mxu1 %v2206_v31  ;;  %1983 = vmatprep.subr.bf16.mxu0 %v2213_v36  ;;  %v2285_v28 = vld [vmem:[%s2926_s1 + $0x138] sm:$0xff]   ;;  %v2282_v31 = vld [vmem:[%s2927_s0 + $0x200] ss:$36 sps:$4 sm:$0xff]  }
  0x22   :  { %2047 = vmatprep.subr.bf16.mxu1 %v2214_v37  ;;  %v2286_v29 = vld [vmem:[%s2926_s1 + $0x1b8] sm:$0xff]  }
  0x23   :  { %1079 = vmatmul.mubr.bf16.vlgmr.msra.gmra.mrb[0].mxu0 %v2207_v32  ;;  %v2281_v30 = vld [vmem:[%s2927_s0 + $0x1f8] ss:$36 sps:$4 sm:$0xff]   ;;  %v2293_v32 = vld [vmem:[%s2926_s1 + $0x200] sm:$0xff]  }
  0x24   :  { %1176 = vmatmul.mubr.bf16.vlgmr.msra.gmra.mrb[0].mxu1 %v2210_v34  ;;  %1984 = vmatpush3.bf16.msra.mxu0 %v2215_v38  ;;  %v2289_v33 = vld [vmem:[%s2927_s0 + $0x14] ss:$36 sps:$4 sm:$0xff]   ;;  %v2292_v34 = vld [vmem:[%s2927_s0 + $0x1c] ss:$36 sps:$4 sm:$0xff]   ;;  %v2296_v38 = vld [vmem:[%s2927_s0 + $0x64] ss:$36 sps:$4 sm:$0xff]  }
  0x25   :  { %2048 = vmatpush3.bf16.msra.mxu1 %v2216_v39  ;;  %1086 = vmatprep.mubr.bf16.mxu0 %v2217_v40  ;;  %v2290_v36 = vld [vmem:[%s2927_s0 + $0x18] ss:$36 sps:$4 sm:$0xff]   ;;  %v2300_v39 = vld [vmem:[%s2926_s1 + $0x208] sm:$0xff]   ;;  %v2307_v40 = vld [vmem:[%s2926_s1 + $0x210] sm:$0xff]  }
  0x26   :  { %1183 = vmatprep.mubr.bf16.mxu1 %v2219_v41  ;;  %1985 = vmatprep.subr.bf16.mxu0 %v2223_v44  ;;  %v2294_v37 = vld [vmem:[%s2927_s0 + $0x5c] ss:$36 sps:$4 sm:$0xff]   ;;  %v2303_v44 = vld [vmem:[%s2927_s0 + $0xac] ss:$36 sps:$4 sm:$0xff]  }
  0x27   :  { %2049 = vmatprep.subr.bf16.mxu1 %v2224_v45  ;;  %v2298_v41 = vld [vmem:[%s2927_s0 + $0x58] ss:$36 sps:$4 sm:$0xff]  }
  0x28   :  { %1986 = vmatpush3.bf16.msra.mxu0 %v2225_v46  ;;  %v2314_v45 = vld [vmem:[%s2926_s1 + $0x218] sm:$0xff]   ;;  %v2321_v46 = vld [vmem:[%s2926_s1 + $0x220] sm:$0xff]  }
  0x29   :  { %2050 = vmatpush3.bf16.msra.mxu1 %v2226_v47  ;;  %1987 = vmatprep.subr.bf16.mxu0 %v2233_v52  ;;  %v2305_v47 = vld [vmem:[%s2927_s0 + $0xa0] ss:$36 sps:$4 sm:$0xff]   ;;  %v2312_v52 = vld [vmem:[%s2927_s0 + $0xe8] ss:$36 sps:$4 sm:$0xff]  }
  0x2a   :  { %2051 = vmatprep.subr.bf16.mxu1 %v2234_v53  ;;  %v2335_v53 = vld [vmem:[%s2926_s1 + $0x230] sm:$0xff]  }
  0x2b   :  { %1087 = vmatmul.mubr.bf16.gmra.mrb[4].mxu0 %v2221_v42  ;;  %v2299_v42 = vld [vmem:[%s2927_s0 + $0x60] ss:$36 sps:$4 sm:$0xff]  }
  0x2c   :  { %1184 = vmatmul.mubr.bf16.gmra.mrb[4].mxu1 %v2222_v43  ;;  %1094 = vmatprep.mubr.bf16.mxu0 %v2227_v48  ;;  %v2301_v43 = vld [vmem:[%s2927_s0 + $0xa4] ss:$36 sps:$4 sm:$0xff]  }
  0x2d   :  { %1191 = vmatprep.mubr.bf16.mxu1 %v2229_v49  ;;  %1988 = vmatpush3.bf16.msra.mxu0 %v2235_v54  ;;  %v2306_v48 = vld [vmem:[%s2927_s0 + $0xa8] ss:$36 sps:$4 sm:$0xff]   ;;  %v2313_v54 = vld [vmem:[%s2927_s0 + $0xf0] ss:$36 sps:$4 sm:$0xff]  }
  0x2e   :  { %2052 = vmatpush3.bf16.msra.mxu1 %v2236_v55  ;;  %1989 = vmatprep.subr.bf16.mxu0 %v2243_v60  ;;  %v2308_v49 = vld [vmem:[%s2927_s0 + $0xec] ss:$36 sps:$4 sm:$0xff]   ;;  %v2315_v55 = vld [vmem:[%s2927_s0 + $0x134] ss:$36 sps:$4 sm:$0xff]   ;;  %v2322_v60 = vld [vmem:[%s2927_s0 + $0x17c] ss:$36 sps:$4 sm:$0xff]  }
  0x2f   :  { %2053 = vmatprep.subr.bf16.mxu1 %v2244_v61  ;;  %v2324_v61 = vld [vmem:[%s2927_s0 + $0x184] ss:$36 sps:$4 sm:$0xff]  }
  0x31   :  { %1990 = vmatpush3.bf16.msra.mxu0 %v2245_v62  ;;  %v2326_v62 = vld [vmem:[%s2927_s0 + $0x178] ss:$36 sps:$4 sm:$0xff]  }
  0x32   :  { %2054 = vmatpush3.bf16.msra.mxu1 %v2246_v63  ;;  %1991 = vmatprep.subr.bf16.mxu0 %v2253_v3  ;;  %v2327_v63 = vld [vmem:[%s2927_s0 + $0x180] ss:$36 sps:$4 sm:$0xff]   ;;  %v2334_v3 = vld [vmem:[%s2927_s0 + $0x1c8] ss:$36 sps:$4 sm:$0xff]  }
  0x33   :  { %1095 = vmatmul.mubr.bf16.gmra.mrb[8].mxu0 %v2231_v50  ;;  %2055 = vmatprep.subr.bf16.mxu1 %v2254_v5  ;;  %v2310_v50 = vld [vmem:[%s2927_s0 + $0xf4] ss:$36 sps:$4 sm:$0xff]  }
  0x34   :  { %1192 = vmatmul.mubr.bf16.gmra.mrb[8].mxu1 %v2232_v51  ;;  %1102 = vmatprep.mubr.bf16.mxu0 %v2237_v56  ;;  %v2328_v51 = vld [vmem:[%s2926_s1 + $0x228] sm:$0xff]   ;;  %v2317_v56 = vld [vmem:[%s2927_s0 + $0x13c] ss:$36 sps:$4 sm:$0xff]   ;;  %v2338_v5 = vld [vmem:[%s2927_s0 + $0x214] ss:$36 sps:$4 sm:$0xff]  }
  0x35   :  { %1199 = vmatprep.mubr.bf16.mxu1 %v2239_v57  ;;  %1992 = vmatpush3.bf16.msra.mxu0 %v2255_v6  ;;  %v2342_v57 = vld [vmem:[%s2926_s1 + $0x238] sm:$0xff]   ;;  %v2340_v6 = vld [vmem:[%s2927_s0 + $0x208] ss:$36 sps:$4 sm:$0xff]  }
  0x36   :  { %2056 = vmatpush3.bf16.msra.mxu1 %v2256_v7  ;;  %1993 = vmatprep.subr.bf16.mxu0 %v2263_v10  ;;  %v2341_v7 = vld [vmem:[%s2927_s0 + $0x210] ss:$36 sps:$4 sm:$0xff]   ;;  %v2345_v10 = vld [vmem:[%s2927_s0 + $0x68] ss:$36 sps:$4 sm:$0xff]  }
  0x37   :  { %2057 = vmatprep.subr.bf16.mxu1 %v2264_v11  ;;  %v2346_v11 = vld [vmem:[%s2927_s0 + $0x188] ss:$36 sps:$4 sm:$0xff]  }
  0x39   :  { %1994 = vmatpush3.bf16.msra.mxu0 %v2265_v13  ;;  %v2348_v13 = vld [vmem:[%s2927_s0 + $0x1d0] ss:$36 sps:$4 sm:$0xff]  }
  0x3a   :  { %2058 = vmatpush3.bf16.msra.mxu1 %v2266_v14  ;;  %1995 = vmatprep.subr.bf16.mxu0 %v2273_v18  ;;  %v2349_v14 = vld [vmem:[%s2927_s0 + $0xf8] ss:$36 sps:$4 sm:$0xff]   ;;  %v2806_v18 = vld [vmem:[%s2928_s2] ss:$0 sm:$0xff] }
  0x3b   :  { %1103 = vmatmul.mubr.bf16.gmra.mrb[12].mxu0 %v2241_v58  ;;  %2059 = vmatprep.subr.bf16.mxu1 %v2274_v19  ;;  %v2319_v58 = vld [vmem:[%s2927_s0 + $0x130] ss:$36 sps:$4 sm:$0xff]  }
  0x3c   :  { %1200 = vmatmul.mubr.bf16.gmra.mrb[12].mxu1 %v2242_v59  ;;  %1110 = vmatprep.mubr.bf16.mxu0 %v2247_v0  ;;  %v2320_v59 = vld [vmem:[%s2927_s0 + $0x138] ss:$36 sps:$4 sm:$0xff]   ;;  %v2329_v0 = vld [vmem:[%s2927_s0 + $0x1c4] ss:$36 sps:$4 sm:$0xff]  }
  0x3d   :  { %1207 = vmatprep.mubr.bf16.mxu1 %v2249_v1  ;;  %1996 = vmatpush3.bf16.msra.mxu0 %v2275_v20  ;;  %v2331_v1 = vld [vmem:[%s2927_s0 + $0x1cc] ss:$36 sps:$4 sm:$0xff]  }
  0x3e   :  { %2060 = vmatpush3.bf16.msra.mxu1 %v2276_v21  ;;  %1997 = vmatprep.subr.bf16.mxu0 %v2283_v26 }
  0x3f   :  { %2061 = vmatprep.subr.bf16.mxu1 %v2284_v27 }
  0x41   :  { %1998 = vmatpush3.bf16.msra.mxu0 %v2285_v28 }
  0x42   :  { %2062 = vmatpush3.bf16.msra.mxu1 %v2286_v29  ;;  %2127 = vmatprep.subr.bf16.mxu0 %v2293_v32 }
  0x43   :  { %1111 = vmatmul.mubr.bf16.gmra.mrb[16].mxu0 %v2251_v2  ;;  %2159 = vmatprep.subr.bf16.mxu1 %v2293_v32  ;;  %v2333_v2 = vld [vmem:[%s2927_s0 + $0x1c0] ss:$36 sps:$4 sm:$0xff]  }
  0x44   :  { %1208 = vmatmul.mubr.bf16.gmra.mrb[16].mxu1 %v2252_v4  ;;  %1118 = vmatprep.mubr.bf16.mxu0 %v2257_v8  ;;  %v2336_v4 = vld [vmem:[%s2927_s0 + $0x20c] ss:$36 sps:$4 sm:$0xff]   ;;  %v2343_v8 = vld [vmem:[%s2927_s0 + $0x20] ss:$36 sps:$4 sm:$0xff]  }
  0x45   :  { %1215 = vmatprep.mubr.bf16.mxu1 %v2259_v9  ;;  %v2344_v9 = vld [vmem:[%s2927_s0 + $0x140] ss:$36 sps:$4 sm:$0xff]  }
  0x4b   :  { %1119 = vmatmul.mubr.bf16.gmra.mrb[20].mxu0 %v2261_v12  ;;  %v2347_v12 = vld [vmem:[%s2927_s0 + $0xb0] ss:$36 sps:$4 sm:$0xff]  }
  0x4c   :  { %1216 = vmatmul.mubr.bf16.gmra.mrb[20].mxu1 %v2262_v15  ;;  %1126 = vmatprep.mubr.bf16.mxu0 %v2267_v16  ;;  %v2350_v15 = vld [vmem:[%s2927_s0 + $0x218] ss:$36 sps:$4 sm:$0xff]  }
  0x4d   :  { %1223 = vmatprep.mubr.bf16.mxu1 %v2269_v17 }
  0x53   :  { %1127 = vmatmul.mubr.bf16.gmra.mrb[24].mxu0 %v2271_v22 }
  0x54   :  { %1224 = vmatmul.mubr.bf16.gmra.mrb[24].mxu1 %v2272_v23  ;;  %1134 = vmatprep.mubr.bf16.mxu0 %v2277_v24 }
  0x55   :  { %1231 = vmatprep.mubr.bf16.mxu1 %v2279_v25 }
  0x5b   :  { %1135 = vmatmul.mubr.bf16.gmra.mrb[28].mxu0 %v2281_v30 }
  0x5c   :  { %1232 = vmatmul.mubr.bf16.gmra.mrb[28].mxu1 %v2282_v31  ;;  %1272 = vmatprep.mubr.bf16.mxu0 %v2289_v33 }
  0x5d   :  { %1369 = vmatprep.mubr.bf16.mxu1 %v2292_v34 }
  0x63   :  { %1273 = vmatmul.mubr.bf16.vlgmr.msra.gmra.mrb[32].mxu0 %v2287_v35 }
  0x64   :  { %1370 = vmatmul.mubr.bf16.vlgmr.msra.gmra.mrb[32].mxu1 %v2290_v36  ;;  %2128 = vmatpush3.bf16.msra.mxu0 %v2293_v32 }
  0x65   :  { %2167 = vmatpush3.bf16.msra.mxu1 %v2293_v32  ;;  %1280 = vmatprep.mubr.bf16.mxu0 %v2294_v37 }
  0x66   :  { %1377 = vmatprep.mubr.bf16.mxu1 %v2296_v38  ;;  %2129 = vmatprep.subr.bf16.mxu0 %v2300_v39 }
  0x67   :  { %2160 = vmatprep.subr.bf16.mxu1 %v2300_v39 }
  0x68   :  { %2130 = vmatpush3.bf16.msra.mxu0 %v2300_v39 }
  0x69   :  { %2168 = vmatpush3.bf16.msra.mxu1 %v2300_v39  ;;  %2131 = vmatprep.subr.bf16.mxu0 %v2307_v40 }
  0x6a   :  { %2161 = vmatprep.subr.bf16.mxu1 %v2307_v40 }
  0x6b   :  { %1281 = vmatmul.mubr.bf16.gmra.mrb[36].mxu0 %v2298_v41 }
  0x6c   :  { %1378 = vmatmul.mubr.bf16.gmra.mrb[36].mxu1 %v2299_v42  ;;  %1288 = vmatprep.mubr.bf16.mxu0 %v2301_v43 }
  0x6d   :  { %1385 = vmatprep.mubr.bf16.mxu1 %v2303_v44  ;;  %2132 = vmatpush3.bf16.msra.mxu0 %v2307_v40 }
  0x6e   :  { %2169 = vmatpush3.bf16.msra.mxu1 %v2307_v40  ;;  %2133 = vmatprep.subr.bf16.mxu0 %v2314_v45 }
  0x6f   :  { %2162 = vmatprep.subr.bf16.mxu1 %v2314_v45 }
  0x71   :  { %2134 = vmatpush3.bf16.msra.mxu0 %v2314_v45 }
  0x72   :  { %2170 = vmatpush3.bf16.msra.mxu1 %v2314_v45  ;;  %2135 = vmatprep.subr.bf16.mxu0 %v2321_v46 }
  0x73   :  { %1289 = vmatmul.mubr.bf16.gmra.mrb[40].mxu0 %v2305_v47  ;;  %2163 = vmatprep.subr.bf16.mxu1 %v2321_v46 }
  0x74   :  { %1386 = vmatmul.mubr.bf16.gmra.mrb[40].mxu1 %v2306_v48  ;;  %1296 = vmatprep.mubr.bf16.mxu0 %v2308_v49 }
  0x75   :  { %1393 = vmatprep.mubr.bf16.mxu1 %v2310_v50  ;;  %2136 = vmatpush3.bf16.msra.mxu0 %v2321_v46 }
  0x76   :  { %2171 = vmatpush3.bf16.msra.mxu1 %v2321_v46  ;;  %2137 = vmatprep.subr.bf16.mxu0 %v2328_v51 }
  0x77   :  { %2164 = vmatprep.subr.bf16.mxu1 %v2328_v51 }
  0x79   :  { %2138 = vmatpush3.bf16.msra.mxu0 %v2328_v51 }
  0x7a   :  { %2172 = vmatpush3.bf16.msra.mxu1 %v2328_v51  ;;  %2139 = vmatprep.subr.bf16.mxu0 %v2335_v53 }
  0x7b   :  { %1297 = vmatmul.mubr.bf16.gmra.mrb[44].mxu0 %v2312_v52  ;;  %2165 = vmatprep.subr.bf16.mxu1 %v2335_v53 }
  0x7c   :  { %1394 = vmatmul.mubr.bf16.gmra.mrb[44].mxu1 %v2313_v54  ;;  %1304 = vmatprep.mubr.bf16.mxu0 %v2315_v55 }
  0x7d   :  { %1401 = vmatprep.mubr.bf16.mxu1 %v2317_v56  ;;  %2140 = vmatpush3.bf16.msra.mxu0 %v2335_v53 }
  0x7e   :  { %2173 = vmatpush3.bf16.msra.mxu1 %v2335_v53  ;;  %2141 = vmatprep.subr.bf16.mxu0 %v2342_v57 }
  0x7f   :  { %2166 = vmatprep.subr.bf16.mxu1 %v2342_v57 }
  0x81   :  { %2142 = vmatpush3.bf16.msra.mxu0 %v2342_v57 }
  0x82   :  { %2174 = vmatpush3.bf16.msra.mxu1 %v2342_v57 }
  0x83   :  { %1305 = vmatmul.mubr.bf16.gmra.mrb[48].mxu0 %v2319_v58 }
  0x84   :  { %1402 = vmatmul.mubr.bf16.gmra.mrb[48].mxu1 %v2320_v59  ;;  %1312 = vmatprep.mubr.bf16.mxu0 %v2322_v60 }
  0x85   :  { %1409 = vmatprep.mubr.bf16.mxu1 %v2324_v61 }
  0x8b   :  { %1313 = vmatmul.mubr.bf16.gmra.mrb[52].mxu0 %v2326_v62 }
  0x8c   :  { %1410 = vmatmul.mubr.bf16.gmra.mrb[52].mxu1 %v2327_v63  ;;  %1320 = vmatprep.mubr.bf16.mxu0 %v2329_v0 }
  0x8d   :  { %1417 = vmatprep.mubr.bf16.mxu1 %v2331_v1 }
  0x93   :  { %1321 = vmatmul.mubr.bf16.gmra.mrb[56].mxu0 %v2333_v2 }
  0x94   :  { %1418 = vmatmul.mubr.bf16.gmra.mrb[56].mxu1 %v2334_v3  ;;  %1328 = vmatprep.mubr.bf16.mxu0 %v2336_v4 }
  0x95   :  { %1425 = vmatprep.mubr.bf16.mxu1 %v2338_v5 }
  0x9b   :  { %1329 = vmatmul.mubr.bf16.gmra.mrb[60].mxu0 %v2340_v6 }
  0x9c   :  { %1426 = vmatmul.mubr.bf16.gmra.mrb[60].mxu1 %v2341_v7  ;;  %2143 = vmatprep.mubr.bf16.mxu0 %v2343_v8 }
  0x9d   :  { %2151 = vmatprep.mubr.bf16.mxu1 %v2344_v9 }
  0xa3   :  { %2144 = vmatmul.mubr.bf16.vlgmr.msra.gmra.mrb[64].mxu0 %v2345_v10 }
  0xa4   :  { %2152 = vmatmul.mubr.bf16.vlgmr.msra.gmra.mrb[64].mxu1 %v2346_v11  ;;  %2147 = vmatprep.mubr.bf16.mxu0 %v2347_v12 }
  0xa5   :  { %2155 = vmatprep.mubr.bf16.mxu1 %v2348_v13 }
  0xab   :  { %2148 = vmatmul.mubr.bf16.gmra.mrb[68].mxu0 %v2349_v14 }
  0xac   :  { %2156 = vmatmul.mubr.bf16.gmra.mrb[68].mxu1 %v2350_v15 }
  0xf6   :  { %v1871_v16 = vpop.f32.mrb[0].mxu0 }
  0xf7   :  { %v1935_v17 = vpop.f32.mrb[0].mxu1  ;;  %v1872_v19 = vpop.f32.mrb[1].mxu0 }
  0xf8   :  { %v1873_v20 = vadd.f32 %v1872_v19, %v1871_v16  ;;  %v1936_v21 = vpop.f32.mrb[1].mxu1  ;;  %v1874_v22 = vpop.f32.mrb[2].mxu0 }
  0xf9   :  { %v1937_v23 = vadd.f32 %v1936_v21, %v1935_v17  ;;  %v1938_v24 = vpop.f32.mrb[2].mxu1  ;;  %v1875_v25 = vpop.f32.mrb[3].mxu0 }
  0xfa   :  { %v1081_v26 = vadd.f32 %v1873_v20, %v2806_v18  ;;  %v1876_v27 = vadd.f32 %v1875_v25, %v1874_v22  ;;  %v1939_v28 = vpop.f32.mrb[3].mxu1 }
  0xfb   :  { %v1940_v29 = vadd.f32 %v1939_v28, %v1938_v24 }
  0xfc   :  { %v2809_v30 = vadd.f32 %v1937_v23, %v1081_v26  ;;  %v1084_v31 = vadd.f32 %v1876_v27, %v2806_v18 }
  0xfe   :  { %v2812_v32 = vadd.f32 %v1940_v29, %v1084_v31  ;;  %v1877_v33 = vpop.f32.mrb[4].mxu0 }
  0xff   :  { %v1941_v34 = vpop.f32.mrb[4].mxu1  ;;  %v1878_v35 = vpop.f32.mrb[5].mxu0 }
 0x100   :  { %v1879_v36 = vadd.f32 %v1878_v35, %v1877_v33  ;;  %v1942_v37 = vpop.f32.mrb[5].mxu1  ;;  %v1880_v38 = vpop.f32.mrb[6].mxu0 }
 0x101   :  { %v1943_v39 = vadd.f32 %v1942_v37, %v1941_v34  ;;  %v1944_v40 = vpop.f32.mrb[6].mxu1  ;;  %v1881_v41 = vpop.f32.mrb[7].mxu0 }
 0x102   :  { %v1089_v42 = vadd.f32 %v1879_v36, %v2806_v18  ;;  %v1882_v43 = vadd.f32 %v1881_v41, %v1880_v38  ;;  %v1945_v44 = vpop.f32.mrb[7].mxu1 }
 0x103   :  { %v1946_v45 = vadd.f32 %v1945_v44, %v1944_v40 }
 0x104   :  { %v2815_v46 = vadd.f32 %v1943_v39, %v1089_v42  ;;  %v1092_v47 = vadd.f32 %v1882_v43, %v2806_v18 }
 0x106   :  { %v2818_v48 = vadd.f32 %v1946_v45, %v1092_v47  ;;  %v1883_v49 = vpop.f32.mrb[8].mxu0 }
 0x107   :  { %v1947_v50 = vpop.f32.mrb[8].mxu1  ;;  %v1884_v51 = vpop.f32.mrb[9].mxu0 }
 0x108   :  { %v1885_v52 = vadd.f32 %v1884_v51, %v1883_v49  ;;  %v1948_v53 = vpop.f32.mrb[9].mxu1  ;;  %v1886_v54 = vpop.f32.mrb[10].mxu0 }
 0x109   :  { %v1949_v55 = vadd.f32 %v1948_v53, %v1947_v50  ;;  %v1950_v56 = vpop.f32.mrb[10].mxu1  ;;  %v1887_v57 = vpop.f32.mrb[11].mxu0 }
 0x10a   :  { %v1097_v58 = vadd.f32 %v1885_v52, %v2806_v18  ;;  %v1888_v59 = vadd.f32 %v1887_v57, %v1886_v54  ;;  %v1951_v60 = vpop.f32.mrb[11].mxu1 }
 0x10b   :  { %v1952_v61 = vadd.f32 %v1951_v60, %v1950_v56 }
 0x10c   :  { %v2821_v62 = vadd.f32 %v1949_v55, %v1097_v58  ;;  %v1100_v63 = vadd.f32 %v1888_v59, %v2806_v18 }
 0x10e   :  { %v2824_v0 = vadd.f32 %v1952_v61, %v1100_v63  ;;  %v1889_v1 = vpop.f32.mrb[12].mxu0 }
 0x10f   :  { %v1953_v2 = vpop.f32.mrb[12].mxu1  ;;  %v1890_v3 = vpop.f32.mrb[13].mxu0 }
 0x110   :  { %v1891_v4 = vadd.f32 %v1890_v3, %v1889_v1  ;;  %v1954_v5 = vpop.f32.mrb[13].mxu1  ;;  %v1892_v6 = vpop.f32.mrb[14].mxu0 }
 0x111   :  { %v1955_v7 = vadd.f32 %v1954_v5, %v1953_v2  ;;  %v1956_v8 = vpop.f32.mrb[14].mxu1  ;;  %v1893_v9 = vpop.f32.mrb[15].mxu0 }
 0x112   :  { %v1105_v10 = vadd.f32 %v1891_v4, %v2806_v18  ;;  %v1894_v11 = vadd.f32 %v1893_v9, %v1892_v6  ;;  %v1957_v12 = vpop.f32.mrb[15].mxu1 }
 0x113   :  { %v1958_v13 = vadd.f32 %v1957_v12, %v1956_v8 }
 0x114   :  { %v2827_v14 = vadd.f32 %v1955_v7, %v1105_v10  ;;  %v1108_v15 = vadd.f32 %v1894_v11, %v2806_v18 }
 0x116   :  { %v2830_v16 = vadd.f32 %v1958_v13, %v1108_v15  ;;  %v1895_v17 = vpop.f32.mrb[16].mxu0 }
 0x117   :  { %v1959_v19 = vpop.f32.mrb[16].mxu1  ;;  %v1896_v20 = vpop.f32.mrb[17].mxu0 }
 0x118   :  { %v1897_v21 = vadd.f32 %v1896_v20, %v1895_v17  ;;  %v1960_v22 = vpop.f32.mrb[17].mxu1  ;;  %v1898_v23 = vpop.f32.mrb[18].mxu0 }
 0x119   :  { %v1961_v24 = vadd.f32 %v1960_v22, %v1959_v19  ;;  %v1962_v25 = vpop.f32.mrb[18].mxu1  ;;  %v1899_v26 = vpop.f32.mrb[19].mxu0 }
 0x11a   :  { %v1113_v27 = vadd.f32 %v1897_v21, %v2806_v18  ;;  %v1900_v28 = vadd.f32 %v1899_v26, %v1898_v23  ;;  %v1963_v29 = vpop.f32.mrb[19].mxu1 }
 0x11b   :  { %v1964_v31 = vadd.f32 %v1963_v29, %v1962_v25 }
 0x11c   :  { %v2833_v33 = vadd.f32 %v1961_v24, %v1113_v27  ;;  %v1116_v34 = vadd.f32 %v1900_v28, %v2806_v18 }
 0x11e   :  { %v2836_v35 = vadd.f32 %v1964_v31, %v1116_v34  ;;  %v1901_v36 = vpop.f32.mrb[20].mxu0 }
 0x11f   :  { %v1965_v37 = vpop.f32.mrb[20].mxu1  ;;  %v1902_v38 = vpop.f32.mrb[21].mxu0 }
 0x120   :  { %v1903_v39 = vadd.f32 %v1902_v38, %v1901_v36  ;;  %v1966_v40 = vpop.f32.mrb[21].mxu1  ;;  %v1904_v41 = vpop.f32.mrb[22].mxu0 }
 0x121   :  { %v1967_v42 = vadd.f32 %v1966_v40, %v1965_v37  ;;  %v1968_v43 = vpop.f32.mrb[22].mxu1  ;;  %v1905_v44 = vpop.f32.mrb[23].mxu0 }
 0x122   :  { %v1121_v45 = vadd.f32 %v1903_v39, %v2806_v18  ;;  %v1906_v47 = vadd.f32 %v1905_v44, %v1904_v41  ;;  %v1969_v49 = vpop.f32.mrb[23].mxu1 }
 0x123   :  { %v1970_v50 = vadd.f32 %v1969_v49, %v1968_v43 }
 0x124   :  { %v2839_v51 = vadd.f32 %v1967_v42, %v1121_v45  ;;  %v1124_v52 = vadd.f32 %v1906_v47, %v2806_v18 }
 0x126   :  { %v2842_v53 = vadd.f32 %v1970_v50, %v1124_v52  ;;  %v1907_v54 = vpop.f32.mrb[24].mxu0 }
 0x127   :  { %v1971_v55 = vpop.f32.mrb[24].mxu1  ;;  %v1908_v56 = vpop.f32.mrb[25].mxu0 }
 0x128   :  { %v1909_v57 = vadd.f32 %v1908_v56, %v1907_v54  ;;  %v1972_v58 = vpop.f32.mrb[25].mxu1  ;;  %v1910_v59 = vpop.f32.mrb[26].mxu0 }
 0x129   :  { %v1973_v60 = vadd.f32 %v1972_v58, %v1971_v55  ;;  %v1974_v61 = vpop.f32.mrb[26].mxu1  ;;  %v1911_v63 = vpop.f32.mrb[27].mxu0 }
 0x12a   :  { %v1129_v1 = vadd.f32 %v1909_v57, %v2806_v18  ;;  %v1912_v2 = vadd.f32 %v1911_v63, %v1910_v59  ;;  %v1975_v3 = vpop.f32.mrb[27].mxu1 }
 0x12b   :  { %v1976_v4 = vadd.f32 %v1975_v3, %v1974_v61 }
 0x12c   :  { %v2845_v5 = vadd.f32 %v1973_v60, %v1129_v1  ;;  %v1132_v6 = vadd.f32 %v1912_v2, %v2806_v18 }
 0x12e   :  { %v2848_v7 = vadd.f32 %v1976_v4, %v1132_v6  ;;  %v1913_v8 = vpop.f32.mrb[28].mxu0 }
 0x12f   :  { %v1977_v9 = vpop.f32.mrb[28].mxu1  ;;  %v1914_v10 = vpop.f32.mrb[29].mxu0 }
 0x130   :  { %v1915_v11 = vadd.f32 %v1914_v10, %v1913_v8  ;;  %v1978_v12 = vpop.f32.mrb[29].mxu1  ;;  %v1916_v13 = vpop.f32.mrb[30].mxu0 }
 0x131   :  { %v1979_v15 = vadd.f32 %v1978_v12, %v1977_v9  ;;  %v1980_v17 = vpop.f32.mrb[30].mxu1  ;;  %v1917_v19 = vpop.f32.mrb[31].mxu0 }
 0x132   :  { %v1137_v20 = vadd.f32 %v1915_v11, %v2806_v18  ;;  %v1918_v21 = vadd.f32 %v1917_v19, %v1916_v13  ;;  %v1981_v22 = vpop.f32.mrb[31].mxu1 }
 0x133   :  { %v1982_v23 = vadd.f32 %v1981_v22, %v1980_v17 }
 0x134   :  { %v2851_v24 = vadd.f32 %v1979_v15, %v1137_v20  ;;  %v1140_v25 = vadd.f32 %v1918_v21, %v2806_v18 }
 0x136   :  { %v2854_v26 = vadd.f32 %v1982_v23, %v1140_v25  ;;  %v1999_v27 = vpop.f32.mrb[32].mxu0 }
 0x137   :  { %v2063_v28 = vpop.f32.mrb[32].mxu1  ;;  %v2000_v29 = vpop.f32.mrb[33].mxu0 }
 0x138   :  { %v2001_v31 = vadd.f32 %v2000_v29, %v1999_v27  ;;  %v2064_v34 = vpop.f32.mrb[33].mxu1  ;;  %v2002_v36 = vpop.f32.mrb[34].mxu0 }
 0x139   :  { %v2065_v37 = vadd.f32 %v2064_v34, %v2063_v28  ;;  %v2066_v38 = vpop.f32.mrb[34].mxu1  ;;  %v2003_v39 = vpop.f32.mrb[35].mxu0 }
 0x13a   :  { %v1275_v40 = vadd.f32 %v2001_v31, %v2809_v30  ;;  %v2004_v41 = vadd.f32 %v2003_v39, %v2002_v36  ;;  %v2067_v42 = vpop.f32.mrb[35].mxu1 }
 0x13b   :  { %v2068_v43 = vadd.f32 %v2067_v42, %v2066_v38 }
 0x13c   :  { %v1278_v44 = vadd.f32 %v2004_v41, %v2812_v32  ;;  %v2858_v45 = vadd.f32 %v2065_v37, %v1275_v40 }
 0x13e   :  { %v2005_v18 = vpop.f32.mrb[36].mxu0  ;;  %v2860_v47 = vadd.f32 %v2068_v43, %v1278_v44 }
 0x13f   :  { %v2069_v49 = vpop.f32.mrb[36].mxu1  ;;  %v2006_v50 = vpop.f32.mrb[37].mxu0 }
 0x140   :  { %v2007_v52 = vadd.f32 %v2006_v50, %v2005_v18  ;;  %v2070_v54 = vpop.f32.mrb[37].mxu1  ;;  %v2008_v55 = vpop.f32.mrb[38].mxu0 }
 0x141   :  { %v2071_v56 = vadd.f32 %v2070_v54, %v2069_v49  ;;  %v2072_v57 = vpop.f32.mrb[38].mxu1  ;;  %v2009_v58 = vpop.f32.mrb[39].mxu0 }
 0x142   :  { %v1283_v30 = vadd.f32 %v2007_v52, %v2815_v46  ;;  %v2010_v59 = vadd.f32 %v2009_v58, %v2008_v55  ;;  %v2073_v60 = vpop.f32.mrb[39].mxu1 }
 0x143   :  { %v2074_v61 = vadd.f32 %v2073_v60, %v2072_v57 }
 0x144   :  { %v1286_v32 = vadd.f32 %v2010_v59, %v2818_v48  ;;  %v2864_v63 = vadd.f32 %v2071_v56, %v1283_v30 }
 0x146   :  { %v2011_v1 = vpop.f32.mrb[40].mxu0  ;;  %v2866_v2 = vadd.f32 %v2074_v61, %v1286_v32 }
 0x147   :  { %v2075_v3 = vpop.f32.mrb[40].mxu1  ;;  %v2012_v4 = vpop.f32.mrb[41].mxu0 }
 0x148   :  { %v2013_v6 = vadd.f32 %v2012_v4, %v2011_v1  ;;  %v2076_v8 = vpop.f32.mrb[41].mxu1  ;;  %v2014_v9 = vpop.f32.mrb[42].mxu0 }
 0x149   :  { %v2077_v10 = vadd.f32 %v2076_v8, %v2075_v3  ;;  %v2078_v11 = vpop.f32.mrb[42].mxu1  ;;  %v2015_v12 = vpop.f32.mrb[43].mxu0 }
 0x14a   :  { %v1291_v46 = vadd.f32 %v2013_v6, %v2821_v62  ;;  %v2016_v13 = vadd.f32 %v2015_v12, %v2014_v9  ;;  %v2079_v15 = vpop.f32.mrb[43].mxu1 }
 0x14b   :  { %v2080_v17 = vadd.f32 %v2079_v15, %v2078_v11 }
 0x14c   :  { %v1294_v48 = vadd.f32 %v2016_v13, %v2824_v0  ;;  %v2870_v19 = vadd.f32 %v2077_v10, %v1291_v46 }
 0x14e   :  { %v2017_v20 = vpop.f32.mrb[44].mxu0  ;;  %v2872_v21 = vadd.f32 %v2080_v17, %v1294_v48 }
 0x14f   :  { %v2081_v22 = vpop.f32.mrb[44].mxu1  ;;  %v2018_v23 = vpop.f32.mrb[45].mxu0 }
 0x150   :  { %v2019_v25 = vadd.f32 %v2018_v23, %v2017_v20  ;;  %v2082_v27 = vpop.f32.mrb[45].mxu1  ;;  %v2020_v28 = vpop.f32.mrb[46].mxu0 }
 0x151   :  { %v2083_v29 = vadd.f32 %v2082_v27, %v2081_v22  ;;  %v2084_v31 = vpop.f32.mrb[46].mxu1  ;;  %v2021_v34 = vpop.f32.mrb[47].mxu0 }
 0x152   :  { %v1299_v62 = vadd.f32 %v2019_v25, %v2827_v14  ;;  %v2022_v36 = vadd.f32 %v2021_v34, %v2020_v28  ;;  %v2085_v37 = vpop.f32.mrb[47].mxu1 }
 0x153   :  { %v2086_v38 = vadd.f32 %v2085_v37, %v2084_v31 }
 0x154   :  { %v1302_v0 = vadd.f32 %v2022_v36, %v2830_v16  ;;  %v2876_v39 = vadd.f32 %v2083_v29, %v1299_v62 }
 0x156   :  { %v2023_v40 = vpop.f32.mrb[48].mxu0  ;;  %v2878_v41 = vadd.f32 %v2086_v38, %v1302_v0 }
 0x157   :  { %v2087_v42 = vpop.f32.mrb[48].mxu1  ;;  %v2024_v43 = vpop.f32.mrb[49].mxu0 }
 0x158   :  { %v2025_v44 = vadd.f32 %v2024_v43, %v2023_v40  ;;  %v2088_v18 = vpop.f32.mrb[49].mxu1  ;;  %v2026_v49 = vpop.f32.mrb[50].mxu0 }
 0x159   :  { %v2089_v50 = vadd.f32 %v2088_v18, %v2087_v42  ;;  %v2090_v52 = vpop.f32.mrb[50].mxu1  ;;  %v2027_v54 = vpop.f32.mrb[51].mxu0 }
 0x15a   :  { %v1307_v14 = vadd.f32 %v2025_v44, %v2833_v33  ;;  %v2028_v55 = vadd.f32 %v2027_v54, %v2026_v49  ;;  %v2091_v56 = vpop.f32.mrb[51].mxu1 }
 0x15b   :  { %v2092_v57 = vadd.f32 %v2091_v56, %v2090_v52 }
 0x15c   :  { %v1310_v16 = vadd.f32 %v2028_v55, %v2836_v35  ;;  %v1404_v58 = vadd.f32 %v2089_v50, %v1307_v14 }
 0x15e   :  { %v2029_v30 = vpop.f32.mrb[52].mxu0  ;;  %v2882_v59 = vadd.f32 %v2092_v57, %v1310_v16 }
 0x15f   :  { %v2093_v60 = vpop.f32.mrb[52].mxu1  ;;  %v2030_v61 = vpop.f32.mrb[53].mxu0 }
 0x160   :  { %v2031_v32 = vadd.f32 %v2030_v61, %v2029_v30  ;;  %v2094_v1 = vpop.f32.mrb[53].mxu1  ;;  %v2032_v3 = vpop.f32.mrb[54].mxu0 }
 0x161   :  { %v2095_v4 = vadd.f32 %v2094_v1, %v2093_v60  ;;  %v2096_v6 = vpop.f32.mrb[54].mxu1  ;;  %v2033_v8 = vpop.f32.mrb[55].mxu0 }
 0x162   :  { %v1315_v9 = vadd.f32 %v2031_v32, %v2839_v51  ;;  %v2034_v33 = vadd.f32 %v2033_v8, %v2032_v3  ;;  %v2097_v10 = vpop.f32.mrb[55].mxu1 }
 0x163   :  { %v2098_v11 = vadd.f32 %v2097_v10, %v2096_v6 }
 0x164   :  { %v1318_v12 = vadd.f32 %v2034_v33, %v2842_v53  ;;  %v1412_v35 = vadd.f32 %v2095_v4, %v1315_v9 }
 0x166   :  { %v2035_v46 = vpop.f32.mrb[56].mxu0  ;;  %v1415_v13 = vadd.f32 %v2098_v11, %v1318_v12 }
 0x167   :  { %v2099_v15 = vpop.f32.mrb[56].mxu1  ;;  %v2036_v17 = vpop.f32.mrb[57].mxu0 }
 0x168   :  { %v2037_v48 = vadd.f32 %v2036_v17, %v2035_v46  ;;  %v2100_v20 = vpop.f32.mrb[57].mxu1  ;;  %v2038_v22 = vpop.f32.mrb[58].mxu0 }
 0x169   :  { %v2101_v23 = vadd.f32 %v2100_v20, %v2099_v15  ;;  %v2102_v25 = vpop.f32.mrb[58].mxu1  ;;  %v2039_v27 = vpop.f32.mrb[59].mxu0 }
 0x16a   :  { %v1323_v28 = vadd.f32 %v2037_v48, %v2845_v5  ;;  %v2040_v29 = vadd.f32 %v2039_v27, %v2038_v22  ;;  %v2103_v51 = vpop.f32.mrb[59].mxu1 }
 0x16b   :  { %v2104_v31 = vadd.f32 %v2103_v51, %v2102_v25 }
 0x16c   :  { %v1326_v34 = vadd.f32 %v2040_v29, %v2848_v7  ;;  %v1420_v62 = vadd.f32 %v2101_v23, %v1323_v28 }
 0x16e   :  { %v2041_v53 = vpop.f32.mrb[60].mxu0  ;;  %v2888_v36 = vadd.f32 %v2104_v31, %v1326_v34 }
 0x16f   :  { %v2105_v37 = vpop.f32.mrb[60].mxu1  ;;  %v2042_v38 = vpop.f32.mrb[61].mxu0 }
 0x170   :  { %v2043_v0 = vadd.f32 %v2042_v38, %v2041_v53  ;;  %v2106_v40 = vpop.f32.mrb[61].mxu1  ;;  %v2044_v42 = vpop.f32.mrb[62].mxu0 }
 0x171   :  { %v2107_v43 = vadd.f32 %v2106_v40, %v2105_v37  ;;  %v2108_v44 = vpop.f32.mrb[62].mxu1  ;;  %v2045_v18 = vpop.f32.mrb[63].mxu0 }
 0x172   :  { %v1331_v49 = vadd.f32 %v2043_v0, %v2851_v24  ;;  %v2046_v5 = vadd.f32 %v2045_v18, %v2044_v42  ;;  %v2109_v50 = vpop.f32.mrb[63].mxu1 }
 0x173   :  { %v2110_v52 = vadd.f32 %v2109_v50, %v2108_v44 }
 0x174   :  { %v1334_v54 = vadd.f32 %v2046_v5, %v2854_v26  ;;  %v1428_v7 = vadd.f32 %v2107_v43, %v1331_v49 }
 0x176   :  { %v2145_v14 = vpop.f32.mrb[64].mxu0  ;;  %v1431_v55 = vadd.f32 %v2110_v52, %v1334_v54 }
 0x177   :  { %v1477_v56 = vadd.f32 %v2145_v14, %v2864_v63  ;;  %v2153_v57 = vpop.f32.mrb[64].mxu1  ;;  %v1468_v16 = vpop.f32.mrb[65].mxu0 }
 0x178   :  { %v1509_v30 = vadd.f32 %v2153_v57, %v1412_v35  ;;  %v1469_v60 = vadd.f32 %v1468_v16, %v2858_v45  ;;  %v1500_v61 = vpop.f32.mrb[65].mxu1  ;;  %v2146_v32 = vpop.f32.mrb[66].mxu0 }
 0x179   :  { %v1501_v1 = vadd.f32 %v1500_v61, %v1404_v58  ;;  %v1480_v24 = vadd.f32 %v2146_v32, %v2866_v2  ;;  %v2154_v3 = vpop.f32.mrb[66].mxu1  ;;  %v1471_v4 = vpop.f32.mrb[67].mxu0  ;;  %v1533_v9 = vmax.f32 %v1477_v56, 0.0 }
 0x17a   :  { %v1512_v6 = vadd.f32 %v2154_v3, %v1415_v13  ;;  %v1472_v26 = vadd.f32 %v1471_v4, %v2860_v47  ;;  %v1503_v8 = vpop.f32.mrb[67].mxu1  ;;  %v1541_v10 = vmax.f32 %v1509_v30, 0.0  ;;  %v1531_v11 = vmax.f32 %v1469_v60, 0.0 }
 0x17b   :  { %v1534_v33 = vmax.f32 %v1480_v24, 0.0  ;;  %v1504_v63 = vadd.f32 %v1503_v8, %v2882_v59  ;;  %v1539_v45 = vmax.f32 %v1501_v1, 0.0 }
 0x17c   :  { %v1542_v12 = vmax.f32 %v1512_v6, 0.0  ;;  %v1532_v35 = vmax.f32 %v1472_v26, 0.0 }
 0x17d   :  { %v1816_v46 = vpack.c.bf16 %v1534_v33, %v1533_v9  ;;  %v1540_v15 = vmax.f32 %v1504_v63, 0.0 }
 0x17e   :  { %v1836_v58 = vpack.c.bf16 %v1542_v12, %v1541_v10  ;;  %v1811_v17 = vpack.c.bf16 %v1532_v35, %v1531_v11  ;;  %v2149_v2 = vpop.f32.mrb[68].mxu0 }
 0x17f   :  { %1848 = vst [vmem:[%s2929_s3 + $0x8] sm:$0xff] %v1816_v46   ;;  %v1831_v47 = vpack.c.bf16 %v1540_v15, %v1539_v45  ;;  %v1493_v13 = vadd.f32 %v2149_v2, %v2876_v39  ;;  %v2157_v48 = vpop.f32.mrb[68].mxu1  ;;  %v1484_v20 = vpop.f32.mrb[69].mxu0 }
 0x180   :  { %1852 = vst [vmem:[%s2929_s3 + $0x28] sm:$0xff] %v1836_v58   ;;  %1812 = vst [vmem:[%s2929_s3] sm:$0xff] %v1811_v17   ;;  %v1525_v59 = vadd.f32 %v2157_v48, %v1428_v7  ;;  %v1485_v22 = vadd.f32 %v1484_v20, %v2870_v19  ;;  %v1516_v23 = vpop.f32.mrb[69].mxu1  ;;  %v2150_v25 = vpop.f32.mrb[70].mxu0 }
 0x181   :  { %1851 = vst [vmem:[%s2929_s3 + $0x20] sm:$0xff] %v1831_v47   ;;  %v1517_v39 = vadd.f32 %v1516_v23, %v1420_v62  ;;  %v1496_v27 = vadd.f32 %v2150_v25, %v2878_v41  ;;  %v2158_v28 = vpop.f32.mrb[70].mxu1  ;;  %v1487_v29 = vpop.f32.mrb[71].mxu0  ;;  %v1537_v53 = vmax.f32 %v1493_v13, 0.0 }
 0x182   :  { %v1528_v51 = vadd.f32 %v2158_v28, %v1431_v55  ;;  %v1488_v31 = vadd.f32 %v1487_v29, %v2872_v21  ;;  %v1519_v34 = vpop.f32.mrb[71].mxu1  ;;  %v1545_v19 = vmax.f32 %v1525_v59, 0.0  ;;  %v1535_v0 = vmax.f32 %v1485_v22, 0.0 }
 0x183   :  { %v1538_v37 = vmax.f32 %v1496_v27, 0.0  ;;  %v1520_v38 = vadd.f32 %v1519_v34, %v2888_v36  ;;  %v1543_v43 = vmax.f32 %v1517_v39, 0.0 }
 0x184   :  { %v1546_v40 = vmax.f32 %v1528_v51, 0.0  ;;  %v1536_v42 = vmax.f32 %v1488_v31, 0.0 }
 0x185   :  { %v1826_v44 = vpack.c.bf16 %v1538_v37, %v1537_v53  ;;  %v1544_v18 = vmax.f32 %v1520_v38, 0.0 }
 0x186   :  { %v1846_v62 = vpack.c.bf16 %v1546_v40, %v1545_v19  ;;  %v1821_v49 = vpack.c.bf16 %v1536_v42, %v1535_v0 }
 0x187   :  { %1850 = vst [vmem:[%s2929_s3 + $0x18] sm:$0xff] %v1826_v44   ;;  %v1841_v41 = vpack.c.bf16 %v1544_v18, %v1543_v43 }
 0x188   :  { %1854 = vst [vmem:[%s2929_s3 + $0x38] sm:$0xff] %v1846_v62   ;;  %1849 = vst [vmem:[%s2929_s3 + $0x10] sm:$0xff] %v1821_v49  }
 0x189   :  { %1853 = vst [vmem:[%s2929_s3 + $0x30] sm:$0xff] %v1841_v41  }

// kernel: _lambda_.8
= control target key start
LH: loop header
LB: loop body
LE: loop exit
PB: predicated region body
PF: predicated region fallthrough
CT: control target
= control target key end

     0   :  { %s1632_s1 = inlined_call_operand.vmem [shape: bf16[1152,128], index: 1, kind: input, shape index: {}]   ;;  %s1633_s0 = inlined_call_operand.vmem [shape: bf16[32,1152], index: 0, kind: input, shape index: {}]   ;;  %s1634_s2 = inlined_call_operand.vmem [shape: f32[1,128], index: 2, kind: input, shape index: {}]   ;;  %s1635_s3 = inlined_call_operand.vmem [shape: bf16[32,128], index: 3, kind: output, shape index: {}]  }
   0x1   :  { %v1235_v0 = vld [vmem:[%s1632_s1 + $0x40] sm:$0xff]   ;;  %v1239_v4 = vld [vmem:[%s1632_s1 + $0x48] sm:$0xff]   ;;  %v1243_v8 = vld [vmem:[%s1632_s1 + $0x50] sm:$0xff]  }
   0x2   :  { %v1236_v1 = vld [vmem:[%s1632_s1] sm:$0xff]   ;;  %1093 = vmatprep.subr.bf16.mxu0 %v1235_v0  ;;  %v1240_v5 = vld [vmem:[%s1632_s1 + $0x8] sm:$0xff]   ;;  %v1244_v9 = vld [vmem:[%s1632_s1 + $0x10] sm:$0xff]  }
   0x3   :  { %v1237_v2 = vld [vmem:[%s1632_s1 + $0xc0] sm:$0xff]   ;;  %1094 = vmatpush3.bf16.msra.mxu0 %v1236_v1  ;;  %v1241_v6 = vld [vmem:[%s1632_s1 + $0xc8] sm:$0xff]   ;;  %v1245_v10 = vld [vmem:[%s1632_s1 + $0xd0] sm:$0xff]  }
   0x4   :  { %v1238_v3 = vld [vmem:[%s1632_s1 + $0x80] sm:$0xff]   ;;  %1121 = vmatprep.subr.bf16.mxu1 %v1237_v2  ;;  %1095 = vmatprep.subr.bf16.mxu0 %v1239_v4  ;;  %v1242_v7 = vld [vmem:[%s1632_s1 + $0x88] sm:$0xff]   ;;  %v1246_v11 = vld [vmem:[%s1632_s1 + $0x90] sm:$0xff]  }
   0x5   :  { %1122 = vmatpush3.bf16.msra.mxu1 %v1238_v3  ;;  %v1247_v12 = vld [vmem:[%s1632_s1 + $0x58] sm:$0xff]   ;;  %v1251_v16 = vld [vmem:[%s1632_s1 + $0x60] sm:$0xff]   ;;  %v1255_v20 = vld [vmem:[%s1632_s1 + $0x68] sm:$0xff]  }
   0x6   :  { %1123 = vmatprep.subr.bf16.mxu1 %v1241_v6  ;;  %v1248_v13 = vld [vmem:[%s1632_s1 + $0x18] sm:$0xff]   ;;  %v1252_v17 = vld [vmem:[%s1632_s1 + $0x20] sm:$0xff]   ;;  %v1256_v21 = vld [vmem:[%s1632_s1 + $0x28] sm:$0xff]  }
   0x7   :  { %1096 = vmatpush3.bf16.msra.mxu0 %v1240_v5  ;;  %v1249_v14 = vld [vmem:[%s1632_s1 + $0xd8] sm:$0xff]   ;;  %v1253_v18 = vld [vmem:[%s1632_s1 + $0xe0] sm:$0xff]   ;;  %v1257_v22 = vld [vmem:[%s1632_s1 + $0xe8] sm:$0xff]  }
   0x8   :  { %1097 = vmatprep.subr.bf16.mxu0 %v1243_v8  ;;  %v1250_v15 = vld [vmem:[%s1632_s1 + $0x98] sm:$0xff]   ;;  %v1254_v19 = vld [vmem:[%s1632_s1 + $0xa0] sm:$0xff]   ;;  %v1258_v23 = vld [vmem:[%s1632_s1 + $0xa8] sm:$0xff]  }
   0x9   :  { %1124 = vmatpush3.bf16.msra.mxu1 %v1242_v7  ;;  %v1259_v24 = vld [vmem:[%s1632_s1 + $0x70] sm:$0xff]   ;;  %v1263_v28 = vld [vmem:[%s1632_s1 + $0x78] sm:$0xff]   ;;  %v1266_v31 = vld [vmem:[%s1633_s0] ss:$36 sps:$4 sm:$0xff]  }
   0xa   :  { %1125 = vmatprep.subr.bf16.mxu1 %v1245_v10  ;;  %v1260_v25 = vld [vmem:[%s1632_s1 + $0x30] sm:$0xff]   ;;  %v1264_v29 = vld [vmem:[%s1632_s1 + $0x38] sm:$0xff]   ;;  %v1268_v32 = vld [vmem:[%s1633_s0 + $0x4] ss:$36 sps:$4 sm:$0xff]  }
   0xb   :  { %1098 = vmatpush3.bf16.msra.mxu0 %v1244_v9  ;;  %v1261_v26 = vld [vmem:[%s1632_s1 + $0xf0] sm:$0xff]   ;;  %v1265_v30 = vld [vmem:[%s1632_s1 + $0xf8] sm:$0xff]   ;;  %742 = vmatprep.mubr.bf16.mxu0 %v1268_v32  ;;  %v1270_v34 = vld [vmem:[%s1632_s1 + $0x140] sm:$0xff]  }
   0xc   :  { %1099 = vmatprep.subr.bf16.mxu0 %v1247_v12  ;;  %v1262_v27 = vld [vmem:[%s1632_s1 + $0xb0] sm:$0xff]   ;;  %v1269_v33 = vld [vmem:[%s1632_s1 + $0xb8] sm:$0xff]   ;;  %v1271_v35 = vld [vmem:[%s1633_s0 + $0x8] ss:$36 sps:$4 sm:$0xff]  }
   0xd   :  { %1126 = vmatpush3.bf16.msra.mxu1 %v1246_v11  ;;  %v1273_v36 = vld [vmem:[%s1633_s0 + $0xc] ss:$36 sps:$4 sm:$0xff]   ;;  %v1274_v37 = vld [vmem:[%s1632_s1 + $0x100] sm:$0xff]   ;;  %v1285_v48 = vld [vmem:[%s1632_s1 + $0x158] sm:$0xff]  }
   0xe   :  { %1127 = vmatprep.subr.bf16.mxu1 %v1249_v14  ;;  %791 = vmatprep.mubr.bf16.mxu1 %v1273_v36  ;;  %v1275_v38 = vld [vmem:[%s1632_s1 + $0x1c0] sm:$0xff]   ;;  %v1277_v40 = vld [vmem:[%s1632_s1 + $0x148] sm:$0xff]   ;;  %v1281_v44 = vld [vmem:[%s1632_s1 + $0x150] sm:$0xff]  }
   0xf   :  { %1100 = vmatpush3.bf16.msra.mxu0 %v1248_v13  ;;  %v1276_v39 = vld [vmem:[%s1632_s1 + $0x180] sm:$0xff]   ;;  %v1278_v41 = vld [vmem:[%s1632_s1 + $0x108] sm:$0xff]   ;;  %v1282_v45 = vld [vmem:[%s1632_s1 + $0x110] sm:$0xff]  }
  0x10   :  { %1101 = vmatprep.subr.bf16.mxu0 %v1251_v16  ;;  %v1279_v42 = vld [vmem:[%s1632_s1 + $0x1c8] sm:$0xff]   ;;  %v1283_v46 = vld [vmem:[%s1632_s1 + $0x1d0] sm:$0xff]   ;;  %v1286_v49 = vld [vmem:[%s1632_s1 + $0x118] sm:$0xff]  }
  0x11   :  { %1128 = vmatpush3.bf16.msra.mxu1 %v1250_v15  ;;  %v1280_v43 = vld [vmem:[%s1632_s1 + $0x188] sm:$0xff]   ;;  %v1284_v47 = vld [vmem:[%s1632_s1 + $0x190] sm:$0xff]   ;;  %v1287_v50 = vld [vmem:[%s1632_s1 + $0x1d8] sm:$0xff]  }
  0x12   :  { %1129 = vmatprep.subr.bf16.mxu1 %v1253_v18  ;;  %v1288_v51 = vld [vmem:[%s1632_s1 + $0x198] sm:$0xff]   ;;  %v1289_v52 = vld [vmem:[%s1632_s1 + $0x160] sm:$0xff]   ;;  %v1293_v56 = vld [vmem:[%s1632_s1 + $0x168] sm:$0xff]  }
  0x13   :  { %1102 = vmatpush3.bf16.msra.mxu0 %v1252_v17  ;;  %v1290_v53 = vld [vmem:[%s1632_s1 + $0x120] sm:$0xff]   ;;  %v1294_v57 = vld [vmem:[%s1633_s0 + $0x4c] ss:$36 sps:$4 sm:$0xff]   ;;  %v1299_v61 = vld [vmem:[%s1633_s0 + $0x54] ss:$36 sps:$4 sm:$0xff]  }
  0x14   :  { %1103 = vmatprep.subr.bf16.mxu0 %v1255_v20  ;;  %v1291_v54 = vld [vmem:[%s1632_s1 + $0x1e0] sm:$0xff]   ;;  %v1296_v58 = vld [vmem:[%s1632_s1 + $0x128] sm:$0xff]   ;;  %v1302_v63 = vld [vmem:[%s1633_s0 + $0x50] ss:$36 sps:$4 sm:$0xff]  }
  0x15   :  { %1130 = vmatpush3.bf16.msra.mxu1 %v1254_v19  ;;  %v1292_v55 = vld [vmem:[%s1632_s1 + $0x1a0] sm:$0xff]   ;;  %v1297_v59 = vld [vmem:[%s1633_s0 + $0x48] ss:$36 sps:$4 sm:$0xff]   ;;  %v1303_v0 = vld [vmem:[%s1632_s1 + $0x170] sm:$0xff]  }
  0x16   :  { %1131 = vmatprep.subr.bf16.mxu1 %v1257_v22  ;;  %v1298_v60 = vld [vmem:[%s1632_s1 + $0x1e8] sm:$0xff]   ;;  %v1304_v1 = vld [vmem:[%s1632_s1 + $0x130] sm:$0xff]   ;;  %v1307_v4 = vld [vmem:[%s1632_s1 + $0x178] sm:$0xff]  }
  0x17   :  { %1104 = vmatpush3.bf16.msra.mxu0 %v1256_v21  ;;  %v1301_v62 = vld [vmem:[%s1632_s1 + $0x1a8] sm:$0xff]   ;;  %v1305_v2 = vld [vmem:[%s1632_s1 + $0x1f0] sm:$0xff]   ;;  %v1308_v5 = vld [vmem:[%s1632_s1 + $0x138] sm:$0xff]  }
  0x18   :  { %1105 = vmatprep.subr.bf16.mxu0 %v1259_v24  ;;  %v1306_v3 = vld [vmem:[%s1632_s1 + $0x1b0] sm:$0xff]   ;;  %v1309_v6 = vld [vmem:[%s1632_s1 + $0x1f8] sm:$0xff]   ;;  %v1314_v10 = vld [vmem:[%s1632_s1 + $0x200] sm:$0xff]  }
  0x19   :  { %1132 = vmatpush3.bf16.msra.mxu1 %v1258_v23  ;;  %v1310_v7 = vld [vmem:[%s1633_s0 + $0x10] ss:$36 sps:$4 sm:$0xff]   ;;  %v1313_v9 = vld [vmem:[%s1632_s1 + $0x1b8] sm:$0xff]   ;;  %v1318_v13 = vld [vmem:[%s1632_s1 + $0x208] sm:$0xff]  }
  0x1a   :  { %1133 = vmatprep.subr.bf16.mxu1 %v1261_v26  ;;  %v1312_v8 = vld [vmem:[%s1633_s0 + $0x14] ss:$36 sps:$4 sm:$0xff]   ;;  %v1317_v12 = vld [vmem:[%s1633_s0 + $0x1c] ss:$36 sps:$4 sm:$0xff]   ;;  %v1323_v17 = vld [vmem:[%s1633_s0 + $0x64] ss:$36 sps:$4 sm:$0xff]  }
  0x1b   :  { %1106 = vmatpush3.bf16.msra.mxu0 %v1260_v25  ;;  %v1315_v11 = vld [vmem:[%s1633_s0 + $0x18] ss:$36 sps:$4 sm:$0xff]   ;;  %v1322_v16 = vld [vmem:[%s1632_s1 + $0x210] sm:$0xff]   ;;  %v1325_v18 = vld [vmem:[%s1633_s0 + $0x60] ss:$36 sps:$4 sm:$0xff]  }
  0x1c   :  { %1107 = vmatprep.subr.bf16.mxu0 %v1263_v28  ;;  %v1319_v14 = vld [vmem:[%s1633_s0 + $0x5c] ss:$36 sps:$4 sm:$0xff]   ;;  %v1328_v22 = vld [vmem:[%s1632_s1 + $0x228] sm:$0xff]   ;;  %v1329_v23 = vld [vmem:[%s1632_s1 + $0x230] sm:$0xff]  }
  0x1d   :  { %1134 = vmatpush3.bf16.msra.mxu1 %v1262_v27  ;;  %v1321_v15 = vld [vmem:[%s1633_s0 + $0x58] ss:$36 sps:$4 sm:$0xff]   ;;  %v1327_v20 = vld [vmem:[%s1632_s1 + $0x220] sm:$0xff]   ;;  %v1332_v25 = vld [vmem:[%s1633_s0 + $0x68] ss:$36 sps:$4 sm:$0xff]  }
  0x1e   :  { %1135 = vmatprep.subr.bf16.mxu1 %v1265_v30  ;;  %v1326_v19 = vld [vmem:[%s1632_s1 + $0x218] sm:$0xff]   ;;  %v1331_v21 = vld [vmem:[%s1633_s0 + $0x20] ss:$36 sps:$4 sm:$0xff]  }
  0x1f   :  { %1108 = vmatpush3.bf16.msra.mxu0 %v1264_v29  ;;  %v1330_v24 = vld [vmem:[%s1632_s1 + $0x238] sm:$0xff]   ;;  %v983_v27 = vld [vmem:[%s1634_s2] ss:$0 sm:$0xff] }
  0x20   :  { %1149 = vmatprep.subr.bf16.mxu0 %v1270_v34 }
  0x21   :  { %1136 = vmatpush3.bf16.msra.mxu1 %v1269_v33 }
  0x22   :  { %743 = vmatmul.mubr.bf16.vlgmr.msra.gmra.mrb[0].mxu0 %v1266_v31  ;;  %1177 = vmatprep.subr.bf16.mxu1 %v1275_v38 }
  0x23   :  { %1150 = vmatpush3.bf16.msra.mxu0 %v1274_v37  ;;  %750 = vmatprep.mubr.bf16.mxu0 %v1294_v57 }
  0x24   :  { %792 = vmatmul.mubr.bf16.vlgmr.msra.gmra.mrb[0].mxu1 %v1271_v35  ;;  %1151 = vmatprep.subr.bf16.mxu0 %v1277_v40 }
  0x25   :  { %1178 = vmatpush3.bf16.msra.mxu1 %v1276_v39  ;;  %799 = vmatprep.mubr.bf16.mxu1 %v1299_v61 }
  0x26   :  { %1179 = vmatprep.subr.bf16.mxu1 %v1279_v42 }
  0x27   :  { %1152 = vmatpush3.bf16.msra.mxu0 %v1278_v41 }
  0x28   :  { %1153 = vmatprep.subr.bf16.mxu0 %v1281_v44 }
  0x29   :  { %1180 = vmatpush3.bf16.msra.mxu1 %v1280_v43 }
  0x2a   :  { %1181 = vmatprep.subr.bf16.mxu1 %v1283_v46  ;;  %751 = vmatmul.mubr.bf16.gmra.mrb[4].mxu0 %v1297_v59 }
  0x2b   :  { %1154 = vmatpush3.bf16.msra.mxu0 %v1282_v45  ;;  %840 = vmatprep.mubr.bf16.mxu0 %v1312_v8 }
  0x2c   :  { %1155 = vmatprep.subr.bf16.mxu0 %v1285_v48  ;;  %800 = vmatmul.mubr.bf16.gmra.mrb[4].mxu1 %v1302_v63 }
  0x2d   :  { %1182 = vmatpush3.bf16.msra.mxu1 %v1284_v47  ;;  %889 = vmatprep.mubr.bf16.mxu1 %v1317_v12 }
  0x2e   :  { %1183 = vmatprep.subr.bf16.mxu1 %v1287_v50 }
  0x2f   :  { %1156 = vmatpush3.bf16.msra.mxu0 %v1286_v49 }
  0x30   :  { %1157 = vmatprep.subr.bf16.mxu0 %v1289_v52 }
  0x31   :  { %1184 = vmatpush3.bf16.msra.mxu1 %v1288_v51 }
  0x32   :  { %1185 = vmatprep.subr.bf16.mxu1 %v1291_v54 }
  0x33   :  { %1158 = vmatpush3.bf16.msra.mxu0 %v1290_v53 }
  0x34   :  { %1159 = vmatprep.subr.bf16.mxu0 %v1293_v56 }
  0x35   :  { %1186 = vmatpush3.bf16.msra.mxu1 %v1292_v55 }
  0x36   :  { %1187 = vmatprep.subr.bf16.mxu1 %v1298_v60 }
  0x37   :  { %1160 = vmatpush3.bf16.msra.mxu0 %v1296_v58 }
  0x38   :  { %1161 = vmatprep.subr.bf16.mxu0 %v1303_v0 }
  0x39   :  { %1188 = vmatpush3.bf16.msra.mxu1 %v1301_v62 }
  0x3a   :  { %1189 = vmatprep.subr.bf16.mxu1 %v1305_v2 }
  0x3b   :  { %1162 = vmatpush3.bf16.msra.mxu0 %v1304_v1 }
  0x3c   :  { %1163 = vmatprep.subr.bf16.mxu0 %v1307_v4 }
  0x3d   :  { %1190 = vmatpush3.bf16.msra.mxu1 %v1306_v3 }
  0x3e   :  { %1191 = vmatprep.subr.bf16.mxu1 %v1309_v6 }
  0x3f   :  { %1164 = vmatpush3.bf16.msra.mxu0 %v1308_v5 }
  0x40   :  { %1215 = vmatprep.subr.bf16.mxu0 %v1314_v10 }
  0x41   :  { %1192 = vmatpush3.bf16.msra.mxu1 %v1313_v9 }
  0x42   :  { %841 = vmatmul.mubr.bf16.vlgmr.msra.gmra.mrb[8].mxu0 %v1310_v7 }
  0x43   :  { %1216 = vmatpush3.bf16.msra.mxu0 %v1314_v10  ;;  %848 = vmatprep.mubr.bf16.mxu0 %v1319_v14 }
  0x44   :  { %890 = vmatmul.mubr.bf16.vlgmr.msra.gmra.mrb[8].mxu1 %v1315_v11  ;;  %1217 = vmatprep.subr.bf16.mxu0 %v1318_v13 }
  0x45   :  { %897 = vmatprep.mubr.bf16.mxu1 %v1323_v17 }
  0x47   :  { %1218 = vmatpush3.bf16.msra.mxu0 %v1318_v13 }
  0x48   :  { %1219 = vmatprep.subr.bf16.mxu0 %v1322_v16 }
  0x4a   :  { %849 = vmatmul.mubr.bf16.gmra.mrb[12].mxu0 %v1321_v15 }
  0x4b   :  { %1220 = vmatpush3.bf16.msra.mxu0 %v1322_v16  ;;  %1231 = vmatprep.mubr.bf16.mxu0 %v1331_v21 }
  0x4c   :  { %898 = vmatmul.mubr.bf16.gmra.mrb[12].mxu1 %v1325_v18  ;;  %1221 = vmatprep.subr.bf16.mxu0 %v1326_v19 }
  0x4f   :  { %1222 = vmatpush3.bf16.msra.mxu0 %v1326_v19 }
  0x50   :  { %1223 = vmatprep.subr.bf16.mxu0 %v1327_v20 }
  0x53   :  { %1224 = vmatpush3.bf16.msra.mxu0 %v1327_v20 }
  0x54   :  { %1225 = vmatprep.subr.bf16.mxu0 %v1328_v22 }
  0x57   :  { %1226 = vmatpush3.bf16.msra.mxu0 %v1328_v22 }
  0x58   :  { %1227 = vmatprep.subr.bf16.mxu0 %v1329_v23 }
  0x5b   :  { %1228 = vmatpush3.bf16.msra.mxu0 %v1329_v23 }
  0x5c   :  { %1229 = vmatprep.subr.bf16.mxu0 %v1330_v24 }
  0x5f   :  { %1230 = vmatpush3.bf16.msra.mxu0 %v1330_v24 }
  0x62   :  { %1232 = vmatmul.mubr.bf16.vlgmr.msra.gmra.mrb[16].mxu0 %v1332_v25 }
  0xf5   :  { %v1109_v26 = vpop.f32.mrb[0].mxu0 }
  0xf6   :  { %v1110_v28 = vpop.f32.mrb[1].mxu0 }
  0xf7   :  { %v1111_v29 = vadd.f32 %v1110_v28, %v1109_v26  ;;  %v1112_v30 = vpop.f32.mrb[2].mxu0  ;;  %v1137_v31 = vpop.f32.mrb[0].mxu1 }
  0xf8   :  { %v1113_v32 = vpop.f32.mrb[3].mxu0  ;;  %v1138_v35 = vpop.f32.mrb[1].mxu1 }
  0xf9   :  { %v745_v33 = vadd.f32 %v1111_v29, %v983_v27  ;;  %v1114_v34 = vadd.f32 %v1113_v32, %v1112_v30  ;;  %v1139_v36 = vadd.f32 %v1138_v35, %v1137_v31  ;;  %v1140_v37 = vpop.f32.mrb[2].mxu1 }
  0xfa   :  { %v1141_v39 = vpop.f32.mrb[3].mxu1 }
  0xfb   :  { %v748_v38 = vadd.f32 %v1114_v34, %v983_v27  ;;  %v794_v40 = vadd.f32 %v1139_v36, %v745_v33  ;;  %v1142_v41 = vadd.f32 %v1141_v39, %v1140_v37 }
  0xfd   :  { %v797_v42 = vadd.f32 %v1142_v41, %v748_v38  ;;  %v1115_v43 = vpop.f32.mrb[4].mxu0 }
  0xfe   :  { %v1116_v44 = vpop.f32.mrb[5].mxu0 }
  0xff   :  { %v1117_v45 = vadd.f32 %v1116_v44, %v1115_v43  ;;  %v1118_v46 = vpop.f32.mrb[6].mxu0  ;;  %v1143_v47 = vpop.f32.mrb[4].mxu1 }
 0x100   :  { %v1119_v48 = vpop.f32.mrb[7].mxu0  ;;  %v1144_v51 = vpop.f32.mrb[5].mxu1 }
 0x101   :  { %v753_v49 = vadd.f32 %v1117_v45, %v983_v27  ;;  %v1120_v50 = vadd.f32 %v1119_v48, %v1118_v46  ;;  %v1145_v52 = vadd.f32 %v1144_v51, %v1143_v47  ;;  %v1146_v53 = vpop.f32.mrb[6].mxu1 }
 0x102   :  { %v1147_v55 = vpop.f32.mrb[7].mxu1 }
 0x103   :  { %v756_v54 = vadd.f32 %v1120_v50, %v983_v27  ;;  %v802_v56 = vadd.f32 %v1145_v52, %v753_v49  ;;  %v1148_v57 = vadd.f32 %v1147_v55, %v1146_v53 }
 0x105   :  { %v805_v58 = vadd.f32 %v1148_v57, %v756_v54 }
 0x115   :  { %v1165_v59 = vpop.f32.mrb[8].mxu0 }
 0x116   :  { %v1166_v60 = vpop.f32.mrb[9].mxu0 }
 0x117   :  { %v1167_v61 = vadd.f32 %v1166_v60, %v1165_v59  ;;  %v1168_v62 = vpop.f32.mrb[10].mxu0  ;;  %v1193_v63 = vpop.f32.mrb[8].mxu1 }
 0x118   :  { %v1169_v0 = vpop.f32.mrb[11].mxu0  ;;  %v1194_v3 = vpop.f32.mrb[9].mxu1 }
 0x119   :  { %v843_v1 = vadd.f32 %v1167_v61, %v794_v40  ;;  %v1170_v2 = vadd.f32 %v1169_v0, %v1168_v62  ;;  %v1195_v4 = vadd.f32 %v1194_v3, %v1193_v63  ;;  %v1196_v5 = vpop.f32.mrb[10].mxu1 }
 0x11a   :  { %v1197_v7 = vpop.f32.mrb[11].mxu1 }
 0x11b   :  { %v846_v6 = vadd.f32 %v1170_v2, %v797_v42  ;;  %v1198_v8 = vadd.f32 %v1197_v7, %v1196_v5  ;;  %v892_v9 = vadd.f32 %v1195_v4, %v843_v1 }
 0x11d   :  { %v1171_v10 = vpop.f32.mrb[12].mxu0  ;;  %v895_v12 = vadd.f32 %v1198_v8, %v846_v6 }
 0x11e   :  { %v1172_v11 = vpop.f32.mrb[13].mxu0 }
 0x11f   :  { %v1173_v13 = vadd.f32 %v1172_v11, %v1171_v10  ;;  %v1174_v14 = vpop.f32.mrb[14].mxu0  ;;  %v1199_v15 = vpop.f32.mrb[12].mxu1 }
 0x120   :  { %v1175_v16 = vpop.f32.mrb[15].mxu0  ;;  %v1200_v19 = vpop.f32.mrb[13].mxu1 }
 0x121   :  { %v851_v17 = vadd.f32 %v1173_v13, %v802_v56  ;;  %v1176_v18 = vadd.f32 %v1175_v16, %v1174_v14  ;;  %v1201_v20 = vadd.f32 %v1200_v19, %v1199_v15  ;;  %v1202_v21 = vpop.f32.mrb[14].mxu1 }
 0x122   :  { %v1203_v23 = vpop.f32.mrb[15].mxu1 }
 0x123   :  { %v854_v22 = vadd.f32 %v1176_v18, %v805_v58  ;;  %v1204_v24 = vadd.f32 %v1203_v23, %v1202_v21  ;;  %v900_v25 = vadd.f32 %v1201_v20, %v851_v17 }
 0x125   :  { %v903_v26 = vadd.f32 %v1204_v24, %v854_v22 }
 0x135   :  { %v1233_v27 = vpop.f32.mrb[16].mxu0 }
 0x136   :  { %v949_v28 = vadd.f32 %v1233_v27, %v900_v25  ;;  %v940_v29 = vpop.f32.mrb[17].mxu0 }
 0x137   :  { %v941_v30 = vadd.f32 %v940_v29, %v892_v9  ;;  %v1234_v31 = vpop.f32.mrb[18].mxu0 }
 0x138   :  { %v952_v32 = vadd.f32 %v1234_v31, %v903_v26  ;;  %v943_v33 = vpop.f32.mrb[19].mxu0  ;;  %v957_v35 = vmax.f32 %v949_v28, 0.0 }
 0x139   :  { %v944_v34 = vadd.f32 %v943_v33, %v895_v12  ;;  %v955_v37 = vmax.f32 %v941_v30, 0.0 }
 0x13a   :  { %v958_v36 = vmax.f32 %v952_v32, 0.0 }
 0x13b   :  { %v956_v38 = vmax.f32 %v944_v34, 0.0 }
 0x13c   :  { %v1090_v39 = vpack.c.bf16 %v958_v36, %v957_v35 }
 0x13d   :  { %v1085_v40 = vpack.c.bf16 %v956_v38, %v955_v37 }
 0x13e   :  { %1092 = vst [vmem:[%s1635_s3 + $0x8] sm:$0xff] %v1090_v39  }
 0x13f   :  { %1086 = vst [vmem:[%s1635_s3] sm:$0xff] %v1085_v40  }

// kernel: _lambda_.9
= control target key start
LH: loop header
LB: loop body
LE: loop exit
PB: predicated region body
PF: predicated region fallthrough
CT: control target
= control target key end

     0   :  { %s2312_s2 = inlined_call_operand.vmem [shape: bf16[128,128], index: 2, kind: input, shape index: {}]   ;;  %s2313_s0 = inlined_call_operand.vmem [shape: bf16[32,128], index: 0, kind: input, shape index: {}]   ;;  %s2314_s3 = inlined_call_operand.vmem [shape: bf16[1152,128], index: 3, kind: input, shape index: {}]   ;;  %s2315_s1 = inlined_call_operand.vmem [shape: bf16[32,1152], index: 1, kind: input, shape index: {}]   ;;  %s2316_s5 = inlined_call_operand.vmem [shape: bf16[128,128], index: 5, kind: input, shape index: {}]   ;;  %s2317_s4 = inlined_call_operand.vmem [shape: bf16[128,128], index: 4, kind: input, shape index: {}]   ;;  %s2318_s6 = inlined_call_operand.vmem [shape: f32[1,128], index: 6, kind: input, shape index: {}]   ;;  %s2319_s7 = inlined_call_operand.vmem [shape: f32[1,128], index: 7, kind: input, shape index: {}]   ;;  %s2320_s8 = inlined_call_operand.vmem [shape: f32[32,128], index: 8, kind: input, shape index: {}]   ;;  %s2321_s9 = inlined_call_operand.vmem [shape: bf16[32,128], index: 9, kind: output, shape index: {}]  }
   0x1   :  { %v1756_v0 = vld [vmem:[%s2312_s2] sm:$0xff]   ;;  %v1757_v1 = vld [vmem:[%s2312_s2 + $0x8] sm:$0xff]   ;;  %v1758_v2 = vld [vmem:[%s2312_s2 + $0x10] sm:$0xff]  }
   0x2   :  { %1672 = vmatprep.subr.bf16.mxu1 %v1756_v0  ;;  %v1759_v3 = vld [vmem:[%s2312_s2 + $0x18] sm:$0xff]   ;;  %v1764_v4 = vld [vmem:[%s2313_s0] sm:$0xff]   ;;  %v1761_v8 = vld [vmem:[%s2312_s2 + $0x28] sm:$0xff]  }
   0x3   :  { %1673 = vmatpush3.bf16.msra.mxu1 %v1756_v0  ;;  %1688 = vmatprep.mubr.bf16.mxu1 %v1764_v4  ;;  %v1760_v5 = vld [vmem:[%s2312_s2 + $0x20] sm:$0xff]   ;;  %v1772_v9 = vld [vmem:[%s2314_s3 + $0xc8] sm:$0xff]   ;;  %v1762_v11 = vld [vmem:[%s2312_s2 + $0x30] sm:$0xff]  }
   0x4   :  { %1674 = vmatprep.subr.bf16.mxu1 %v1757_v1  ;;  %v1768_v6 = vld [vmem:[%s2314_s3 + $0xc0] sm:$0xff]   ;;  %v1773_v10 = vld [vmem:[%s2314_s3 + $0x88] sm:$0xff]   ;;  %v1776_v12 = vld [vmem:[%s2314_s3 + $0xd0] sm:$0xff]  }
   0x5   :  { %v1769_v7 = vld [vmem:[%s2314_s3 + $0x80] sm:$0xff]   ;;  %1558 = vmatprep.subr.bf16.mxu0 %v1768_v6  ;;  %v1777_v13 = vld [vmem:[%s2314_s3 + $0x90] sm:$0xff]   ;;  %v1763_v14 = vld [vmem:[%s2312_s2 + $0x38] sm:$0xff]  }
   0x6   :  { %1559 = vmatpush3.bf16.msra.mxu0 %v1769_v7  ;;  %v1780_v15 = vld [vmem:[%s2314_s3 + $0xd8] sm:$0xff]   ;;  %v1766_v17 = vld [vmem:[%s2314_s3 + $0x40] sm:$0xff]   ;;  %v1765_v18 = vld [vmem:[%s2313_s0 + $0x8] sm:$0xff]  }
   0x7   :  { %1675 = vmatpush3.bf16.msra.mxu1 %v1757_v1  ;;  %1560 = vmatprep.subr.bf16.mxu0 %v1772_v9  ;;  %v1781_v16 = vld [vmem:[%s2314_s3 + $0x98] sm:$0xff]   ;;  %v1784_v19 = vld [vmem:[%s2314_s3 + $0xe0] sm:$0xff]   ;;  %v1770_v22 = vld [vmem:[%s2314_s3 + $0x48] sm:$0xff]  }
   0x8   :  { %1676 = vmatprep.subr.bf16.mxu1 %v1758_v2  ;;  %v1785_v20 = vld [vmem:[%s2314_s3 + $0xa0] sm:$0xff]   ;;  %v1788_v23 = vld [vmem:[%s2314_s3 + $0xe8] sm:$0xff]   ;;  %v1774_v26 = vld [vmem:[%s2314_s3 + $0x50] sm:$0xff]  }
   0x9   :  { %v1767_v21 = vld [vmem:[%s2314_s3] sm:$0xff]   ;;  %v1789_v24 = vld [vmem:[%s2314_s3 + $0xa8] sm:$0xff]   ;;  %v1792_v27 = vld [vmem:[%s2314_s3 + $0xf0] sm:$0xff]  }
   0xa   :  { %1561 = vmatpush3.bf16.msra.mxu0 %v1773_v10  ;;  %v1771_v25 = vld [vmem:[%s2314_s3 + $0x8] sm:$0xff]   ;;  %v1793_v28 = vld [vmem:[%s2314_s3 + $0xb0] sm:$0xff]   ;;  %v1778_v30 = vld [vmem:[%s2314_s3 + $0x58] sm:$0xff]  }
   0xb   :  { %1677 = vmatpush3.bf16.msra.mxu1 %v1758_v2  ;;  %1562 = vmatprep.subr.bf16.mxu0 %v1776_v12  ;;  %v1775_v29 = vld [vmem:[%s2314_s3 + $0x10] sm:$0xff]   ;;  %v1796_v31 = vld [vmem:[%s2314_s3 + $0xf8] sm:$0xff]   ;;  %v1799_v33 = vld [vmem:[%s2315_s1 + $0x4] ss:$36 sps:$4 sm:$0xff]  }
   0xc   :  { %1678 = vmatprep.subr.bf16.mxu1 %v1759_v3  ;;  %v1779_v32 = vld [vmem:[%s2314_s3 + $0x18] sm:$0xff]   ;;  %v1782_v35 = vld [vmem:[%s2314_s3 + $0x60] sm:$0xff]   ;;  %v1802_v37 = vld [vmem:[%s2315_s1 + $0x8] ss:$36 sps:$4 sm:$0xff]  }
   0xd   :  { %v1800_v34 = vld [vmem:[%s2314_s3 + $0xb8] sm:$0xff]   ;;  %v1783_v36 = vld [vmem:[%s2314_s3 + $0x20] sm:$0xff]   ;;  %v1804_v38 = vld [vmem:[%s2315_s1 + $0xc] ss:$36 sps:$4 sm:$0xff]  }
   0xe   :  { %1563 = vmatpush3.bf16.msra.mxu0 %v1777_v13  ;;  %v1786_v39 = vld [vmem:[%s2314_s3 + $0x68] sm:$0xff]   ;;  %949 = vmatprep.mubr.bf16.mxu0 %v1804_v38  ;;  %v1806_v40 = vld [vmem:[%s2314_s3 + $0x1c0] sm:$0xff]   ;;  %v1790_v43 = vld [vmem:[%s2314_s3 + $0x70] sm:$0xff]  }
   0xf   :  { %1679 = vmatpush3.bf16.msra.mxu1 %v1759_v3  ;;  %1564 = vmatprep.subr.bf16.mxu0 %v1780_v15  ;;  %v1807_v41 = vld [vmem:[%s2314_s3 + $0x180] sm:$0xff]   ;;  %v1787_v42 = vld [vmem:[%s2314_s3 + $0x28] sm:$0xff]   ;;  %v1791_v46 = vld [vmem:[%s2314_s3 + $0x30] sm:$0xff]  }
  0x10   :  { %1680 = vmatprep.subr.bf16.mxu1 %v1760_v5  ;;  %v1810_v44 = vld [vmem:[%s2314_s3 + $0x1c8] sm:$0xff]   ;;  %v1794_v47 = vld [vmem:[%s2314_s3 + $0x78] sm:$0xff]   ;;  %v1814_v48 = vld [vmem:[%s2314_s3 + $0x1d0] sm:$0xff]  }
  0x11   :  { %v1811_v45 = vld [vmem:[%s2314_s3 + $0x188] sm:$0xff]   ;;  %v1815_v49 = vld [vmem:[%s2314_s3 + $0x190] sm:$0xff]   ;;  %v1795_v50 = vld [vmem:[%s2314_s3 + $0x38] sm:$0xff]  }
  0x12   :  { %1565 = vmatpush3.bf16.msra.mxu0 %v1781_v16  ;;  %v1801_v51 = vld [vmem:[%s2314_s3 + $0x140] sm:$0xff]   ;;  %v1818_v52 = vld [vmem:[%s2314_s3 + $0x1d8] sm:$0xff]   ;;  %v1808_v56 = vld [vmem:[%s2314_s3 + $0x148] sm:$0xff]  }
  0x13   :  { %1681 = vmatpush3.bf16.msra.mxu1 %v1760_v5  ;;  %1566 = vmatprep.subr.bf16.mxu0 %v1784_v19  ;;  %v1797_v53 = vld [vmem:[%s2315_s1] ss:$36 sps:$4 sm:$0xff]   ;;  %v1819_v54 = vld [vmem:[%s2314_s3 + $0x198] sm:$0xff]   ;;  %v1825_v59 = vld [vmem:[%s2315_s1 + $0x4c] ss:$36 sps:$4 sm:$0xff]  }
  0x14   :  { %1682 = vmatprep.subr.bf16.mxu1 %v1761_v8  ;;  %v1805_v55 = vld [vmem:[%s2314_s3 + $0x100] sm:$0xff]   ;;  %v1809_v60 = vld [vmem:[%s2314_s3 + $0x108] sm:$0xff]   ;;  %v1812_v61 = vld [vmem:[%s2314_s3 + $0x150] sm:$0xff]  }
  0x15   :  { %v1822_v57 = vld [vmem:[%s2314_s3 + $0x1e0] sm:$0xff]   ;;  %v1828_v62 = vld [vmem:[%s2315_s1 + $0x48] ss:$36 sps:$4 sm:$0xff]   ;;  %v1813_v0 = vld [vmem:[%s2314_s3 + $0x110] sm:$0xff]  }
  0x16   :  { %1567 = vmatpush3.bf16.msra.mxu0 %v1785_v20  ;;  %v1823_v58 = vld [vmem:[%s2314_s3 + $0x1a0] sm:$0xff]   ;;  %v1829_v63 = vld [vmem:[%s2314_s3 + $0x1e8] sm:$0xff]   ;;  %v1830_v1 = vld [vmem:[%s2315_s1 + $0x54] ss:$36 sps:$4 sm:$0xff]  }
  0x17   :  { %1683 = vmatpush3.bf16.msra.mxu1 %v1761_v8  ;;  %1568 = vmatprep.subr.bf16.mxu0 %v1788_v23  ;;  %v1832_v2 = vld [vmem:[%s2314_s3 + $0x1a8] sm:$0xff]   ;;  %v1833_v3 = vld [vmem:[%s2315_s1 + $0x50] ss:$36 sps:$4 sm:$0xff]   ;;  %v1816_v4 = vld [vmem:[%s2314_s3 + $0x158] sm:$0xff]  }
  0x18   :  { %1684 = vmatprep.subr.bf16.mxu1 %v1762_v11  ;;  %v1817_v5 = vld [vmem:[%s2314_s3 + $0x118] sm:$0xff]   ;;  %v1836_v6 = vld [vmem:[%s2314_s3 + $0x1f0] sm:$0xff]   ;;  %v1820_v8 = vld [vmem:[%s2314_s3 + $0x160] sm:$0xff]  }
  0x19   :  { %v1837_v7 = vld [vmem:[%s2314_s3 + $0x1b0] sm:$0xff]   ;;  %v1821_v9 = vld [vmem:[%s2314_s3 + $0x120] sm:$0xff]   ;;  %v1840_v10 = vld [vmem:[%s2314_s3 + $0x1f8] sm:$0xff]  }
  0x1a   :  { %1569 = vmatpush3.bf16.msra.mxu0 %v1789_v24  ;;  %v1843_v12 = vld [vmem:[%s2315_s1 + $0x14] ss:$36 sps:$4 sm:$0xff]   ;;  %v1848_v15 = vld [vmem:[%s2315_s1 + $0x1c] ss:$36 sps:$4 sm:$0xff]   ;;  %v1827_v16 = vld [vmem:[%s2314_s3 + $0x128] sm:$0xff]  }
  0x1b   :  { %1685 = vmatpush3.bf16.msra.mxu1 %v1762_v11  ;;  %1570 = vmatprep.subr.bf16.mxu0 %v1792_v27  ;;  %v1824_v11 = vld [vmem:[%s2314_s3 + $0x168] sm:$0xff]   ;;  %v1844_v13 = vld [vmem:[%s2314_s3 + $0x1b8] sm:$0xff]   ;;  %v1845_v23 = vld [vmem:[%s2314_s3 + $0x200] sm:$0xff]  }
  0x1c   :  { %1686 = vmatprep.subr.bf16.mxu1 %v1763_v14  ;;  %v1854_v19 = vld [vmem:[%s2315_s1 + $0x64] ss:$36 sps:$4 sm:$0xff]   ;;  %v1838_v20 = vld [vmem:[%s2314_s3 + $0x178] sm:$0xff]   ;;  %v1841_v24 = vld [vmem:[%s2315_s1 + $0x10] ss:$36 sps:$4 sm:$0xff]  }
  0x1d   :  { %v1853_v27 = vld [vmem:[%s2314_s3 + $0x210] sm:$0xff]  }
  0x1e   :  { %1571 = vmatpush3.bf16.msra.mxu0 %v1793_v28  ;;  %v1852_v28 = vld [vmem:[%s2315_s1 + $0x58] ss:$36 sps:$4 sm:$0xff]   ;;  %v1866_v38 = vld [vmem:[%s2316_s5 + $0x10] sm:$0xff]  }
  0x1f   :  { %1687 = vmatpush3.bf16.msra.mxu1 %v1763_v14  ;;  %1572 = vmatprep.subr.bf16.mxu0 %v1796_v31  ;;  %v1846_v14 = vld [vmem:[%s2315_s1 + $0x18] ss:$36 sps:$4 sm:$0xff]   ;;  %v1858_v31 = vld [vmem:[%s2314_s3 + $0x220] sm:$0xff]  }
  0x20   :  { %1530 = vmatprep.subr.bf16.mxu1 %v1766_v17  ;;  %v1834_v17 = vld [vmem:[%s2314_s3 + $0x170] sm:$0xff]  }
  0x22   :  { %1689 = vmatmul.mubr.bf16.vlgmr.msra.gmra.mrb[0].mxu1 %v1765_v18  ;;  %1573 = vmatpush3.bf16.msra.mxu0 %v1800_v34  ;;  %v1835_v18 = vld [vmem:[%s2314_s3 + $0x130] sm:$0xff]   ;;  %v1861_v34 = vld [vmem:[%s2314_s3 + $0x238] sm:$0xff]  }
  0x23   :  { %1531 = vmatpush3.bf16.msra.mxu1 %v1767_v21  ;;  %900 = vmatprep.mubr.bf16.mxu1 %v1799_v33  ;;  %v1856_v21 = vld [vmem:[%s2315_s1 + $0x60] ss:$36 sps:$4 sm:$0xff]   ;;  %v1860_v33 = vld [vmem:[%s2314_s3 + $0x230] sm:$0xff]  }
  0x24   :  { %1532 = vmatprep.subr.bf16.mxu1 %v1770_v22  ;;  %1614 = vmatprep.subr.bf16.mxu0 %v1806_v40  ;;  %v1839_v22 = vld [vmem:[%s2314_s3 + $0x138] sm:$0xff]   ;;  %v1868_v40 = vld [vmem:[%s2316_s5 + $0x20] sm:$0xff]  }
  0x25   :  { %950 = vmatmul.mubr.bf16.vlgmr.msra.gmra.mrb[0].mxu0 %v1802_v37  ;;  %v1865_v37 = vld [vmem:[%s2316_s5 + $0x8] sm:$0xff]  }
  0x26   :  { %1615 = vmatpush3.bf16.msra.mxu0 %v1807_v41  ;;  %957 = vmatprep.mubr.bf16.mxu0 %v1830_v1  ;;  %v1869_v41 = vld [vmem:[%s2316_s5 + $0x28] sm:$0xff]  }
  0x27   :  { %1533 = vmatpush3.bf16.msra.mxu1 %v1771_v25  ;;  %1616 = vmatprep.subr.bf16.mxu0 %v1810_v44  ;;  %v1850_v25 = vld [vmem:[%s2315_s1 + $0x5c] ss:$36 sps:$4 sm:$0xff]  }
  0x28   :  { %1534 = vmatprep.subr.bf16.mxu1 %v1774_v26  ;;  %v1849_v26 = vld [vmem:[%s2314_s3 + $0x208] sm:$0xff]   ;;  %v2257_v44 = vld [vmem:[%s2317_s4] sm:$0xff]  }
  0x2a   :  { %1617 = vmatpush3.bf16.msra.mxu0 %v1811_v45  ;;  %v1383_v45 = vld [vmem:[%s2318_s6] ss:$0 sm:$0xff] }
  0x2b   :  { %1535 = vmatpush3.bf16.msra.mxu1 %v1775_v29  ;;  %1618 = vmatprep.subr.bf16.mxu0 %v1814_v48  ;;  %v1862_v29 = vld [vmem:[%s2315_s1 + $0x20] ss:$36 sps:$4 sm:$0xff]  }
  0x2c   :  { %1536 = vmatprep.subr.bf16.mxu1 %v1778_v30  ;;  %v1857_v30 = vld [vmem:[%s2314_s3 + $0x218] sm:$0xff]  }
  0x2d   :  { %958 = vmatmul.mubr.bf16.gmra.mrb[4].mxu0 %v1833_v3  ;;  %v1394_v3 = vld [vmem:[%s2319_s7] ss:$0 sm:$0xff] }
  0x2e   :  { %1619 = vmatpush3.bf16.msra.mxu0 %v1815_v49  ;;  %1047 = vmatprep.mubr.bf16.mxu0 %v1848_v15 }
  0x2f   :  { %1537 = vmatpush3.bf16.msra.mxu1 %v1779_v32  ;;  %1620 = vmatprep.subr.bf16.mxu0 %v1818_v52  ;;  %v1859_v32 = vld [vmem:[%s2314_s3 + $0x228] sm:$0xff]  }
  0x30   :  { %1538 = vmatprep.subr.bf16.mxu1 %v1782_v35  ;;  %v1863_v35 = vld [vmem:[%s2315_s1 + $0x68] ss:$36 sps:$4 sm:$0xff]  }
  0x32   :  { %1621 = vmatpush3.bf16.msra.mxu0 %v1819_v54 }
  0x33   :  { %1539 = vmatpush3.bf16.msra.mxu1 %v1783_v36  ;;  %1622 = vmatprep.subr.bf16.mxu0 %v1822_v57  ;;  %v1864_v36 = vld [vmem:[%s2316_s5] sm:$0xff]  }
  0x34   :  { %1540 = vmatprep.subr.bf16.mxu1 %v1786_v39  ;;  %v1867_v39 = vld [vmem:[%s2316_s5 + $0x18] sm:$0xff]  }
  0x36   :  { %1623 = vmatpush3.bf16.msra.mxu0 %v1823_v58 }
  0x37   :  { %1541 = vmatpush3.bf16.msra.mxu1 %v1787_v42  ;;  %1624 = vmatprep.subr.bf16.mxu0 %v1829_v63  ;;  %v1870_v42 = vld [vmem:[%s2316_s5 + $0x30] sm:$0xff]  }
  0x38   :  { %1542 = vmatprep.subr.bf16.mxu1 %v1790_v43  ;;  %v1871_v43 = vld [vmem:[%s2316_s5 + $0x38] sm:$0xff]  }
  0x3a   :  { %1625 = vmatpush3.bf16.msra.mxu0 %v1832_v2 }
  0x3b   :  { %1543 = vmatpush3.bf16.msra.mxu1 %v1791_v46  ;;  %1626 = vmatprep.subr.bf16.mxu0 %v1836_v6 }
  0x3c   :  { %1544 = vmatprep.subr.bf16.mxu1 %v1794_v47 }
  0x3e   :  { %1627 = vmatpush3.bf16.msra.mxu0 %v1837_v7 }
  0x3f   :  { %1545 = vmatpush3.bf16.msra.mxu1 %v1795_v50  ;;  %1628 = vmatprep.subr.bf16.mxu0 %v1840_v10 }
  0x40   :  { %1586 = vmatprep.subr.bf16.mxu1 %v1801_v51 }
  0x42   :  { %901 = vmatmul.mubr.bf16.vlgmr.msra.gmra.mrb[4].mxu1 %v1797_v53  ;;  %1629 = vmatpush3.bf16.msra.mxu0 %v1844_v13 }
  0x43   :  { %1587 = vmatpush3.bf16.msra.mxu1 %v1805_v55  ;;  %908 = vmatprep.mubr.bf16.mxu1 %v1825_v59 }
  0x44   :  { %1588 = vmatprep.subr.bf16.mxu1 %v1808_v56  ;;  %1712 = vmatprep.subr.bf16.mxu0 %v1864_v36 }
  0x45   :  { %1048 = vmatmul.mubr.bf16.vlgmr.msra.gmra.mrb[8].mxu0 %v1846_v14 }
  0x46   :  { %1055 = vmatprep.mubr.bf16.mxu0 %v1854_v19  ;;  %1713 = vmatpush3.bf16.msra.mxu0 %v1864_v36 }
  0x47   :  { %1589 = vmatpush3.bf16.msra.mxu1 %v1809_v60  ;;  %1714 = vmatprep.subr.bf16.mxu0 %v1865_v37 }
  0x48   :  { %1590 = vmatprep.subr.bf16.mxu1 %v1812_v61 }
  0x4a   :  { %909 = vmatmul.mubr.bf16.gmra.mrb[8].mxu1 %v1828_v62  ;;  %1715 = vmatpush3.bf16.msra.mxu0 %v1865_v37 }
  0x4b   :  { %1591 = vmatpush3.bf16.msra.mxu1 %v1813_v0  ;;  %998 = vmatprep.mubr.bf16.mxu1 %v1843_v12 }
  0x4c   :  { %1592 = vmatprep.subr.bf16.mxu1 %v1816_v4  ;;  %1716 = vmatprep.subr.bf16.mxu0 %v1866_v38 }
  0x4d   :  { %1056 = vmatmul.mubr.bf16.gmra.mrb[12].mxu0 %v1856_v21 }
  0x4e   :  { %1717 = vmatpush3.bf16.msra.mxu0 %v1866_v38 }
  0x4f   :  { %1593 = vmatpush3.bf16.msra.mxu1 %v1817_v5  ;;  %1718 = vmatprep.subr.bf16.mxu0 %v1867_v39 }
  0x50   :  { %1594 = vmatprep.subr.bf16.mxu1 %v1820_v8 }
  0x52   :  { %1719 = vmatpush3.bf16.msra.mxu0 %v1867_v39 }
  0x53   :  { %1595 = vmatpush3.bf16.msra.mxu1 %v1821_v9  ;;  %1720 = vmatprep.subr.bf16.mxu0 %v1868_v40 }
  0x54   :  { %1596 = vmatprep.subr.bf16.mxu1 %v1824_v11 }
  0x56   :  { %1721 = vmatpush3.bf16.msra.mxu0 %v1868_v40 }
  0x57   :  { %1597 = vmatpush3.bf16.msra.mxu1 %v1827_v16  ;;  %1722 = vmatprep.subr.bf16.mxu0 %v1869_v41 }
  0x58   :  { %1598 = vmatprep.subr.bf16.mxu1 %v1834_v17 }
  0x5a   :  { %1723 = vmatpush3.bf16.msra.mxu0 %v1869_v41 }
  0x5b   :  { %1599 = vmatpush3.bf16.msra.mxu1 %v1835_v18  ;;  %1724 = vmatprep.subr.bf16.mxu0 %v1870_v42 }
  0x5c   :  { %1600 = vmatprep.subr.bf16.mxu1 %v1838_v20 }
  0x5e   :  { %1725 = vmatpush3.bf16.msra.mxu0 %v1870_v42 }
  0x5f   :  { %1601 = vmatpush3.bf16.msra.mxu1 %v1839_v22  ;;  %1726 = vmatprep.subr.bf16.mxu0 %v1871_v43 }
  0x60   :  { %1692 = vmatprep.subr.bf16.mxu1 %v1845_v23 }
  0x62   :  { %999 = vmatmul.mubr.bf16.vlgmr.msra.gmra.mrb[12].mxu1 %v1841_v24  ;;  %1727 = vmatpush3.bf16.msra.mxu0 %v1871_v43 }
  0x63   :  { %1693 = vmatpush3.bf16.msra.mxu1 %v1845_v23  ;;  %1006 = vmatprep.mubr.bf16.mxu1 %v1850_v25 }
  0x64   :  { %1694 = vmatprep.subr.bf16.mxu1 %v1849_v26  ;;  %1732 = vmatprep.subr.bf16.mxu0 %v2257_v44 }
  0x67   :  { %1695 = vmatpush3.bf16.msra.mxu1 %v1849_v26 }
  0x68   :  { %1696 = vmatprep.subr.bf16.mxu1 %v1853_v27 }
  0x6a   :  { %1007 = vmatmul.mubr.bf16.gmra.mrb[16].mxu1 %v1852_v28 }
  0x6b   :  { %1697 = vmatpush3.bf16.msra.mxu1 %v1853_v27  ;;  %1708 = vmatprep.mubr.bf16.mxu1 %v1862_v29 }
  0x6c   :  { %1698 = vmatprep.subr.bf16.mxu1 %v1857_v30 }
  0x6f   :  { %1699 = vmatpush3.bf16.msra.mxu1 %v1857_v30 }
  0x70   :  { %1700 = vmatprep.subr.bf16.mxu1 %v1858_v31 }
  0x73   :  { %1701 = vmatpush3.bf16.msra.mxu1 %v1858_v31 }
  0x74   :  { %1702 = vmatprep.subr.bf16.mxu1 %v1859_v32 }
  0x77   :  { %1703 = vmatpush3.bf16.msra.mxu1 %v1859_v32 }
  0x78   :  { %1704 = vmatprep.subr.bf16.mxu1 %v1860_v33 }
  0x7b   :  { %1705 = vmatpush3.bf16.msra.mxu1 %v1860_v33 }
  0x7c   :  { %1706 = vmatprep.subr.bf16.mxu1 %v1861_v34 }
  0x7f   :  { %1707 = vmatpush3.bf16.msra.mxu1 %v1861_v34 }
  0x82   :  { %1709 = vmatmul.mubr.bf16.vlgmr.msra.gmra.mrb[20].mxu1 %v1863_v35 }
  0xf5   :  { %v1690_v46 = vpop.f32.mrb[0].mxu1 }
  0xf6   :  { %v163_v47 = vadd.f32 %v1690_v46, %v1383_v45  ;;  %v154_v48 = vpop.f32.mrb[1].mxu1 }
  0xf7   :  { %v155_v49 = vadd.f32 %v1383_v45, %v154_v48  ;;  %v1691_v50 = vpop.f32.mrb[2].mxu1 }
  0xf8   :  { %v171_v51 = vmax.f32 %v163_v47, 0.0  ;;  %v166_v52 = vadd.f32 %v1691_v50, %v1383_v45  ;;  %v157_v53 = vpop.f32.mrb[3].mxu1  ;;  %v1574_v60 = vpop.f32.mrb[0].mxu0 }
  0xf9   :  { %v158_v54 = vadd.f32 %v1383_v45, %v157_v53  ;;  %v169_v56 = vmax.f32 %v155_v49, 0.0  ;;  %v1575_v61 = vpop.f32.mrb[1].mxu0 }
  0xfa   :  { %v172_v55 = vmax.f32 %v166_v52, 0.0  ;;  %v1576_v62 = vadd.f32 %v1575_v61, %v1574_v60  ;;  %v1577_v63 = vpop.f32.mrb[2].mxu0 }
  0xfb   :  { %v170_v57 = vmax.f32 %v158_v54, 0.0  ;;  %v1578_v0 = vpop.f32.mrb[3].mxu0 }
  0xfc   :  { %v2263_v58 = vpack.c.bf16 %v172_v55, %v171_v51  ;;  %v1579_v1 = vadd.f32 %v1578_v0, %v1577_v63 }
  0xfd   :  { %v2265_v59 = vpack.c.bf16 %v170_v57, %v169_v56 }
 0x100   :  { %v1580_v12 = vpop.f32.mrb[4].mxu0 }
 0x101   :  { %v1581_v15 = vpop.f32.mrb[5].mxu0 }
 0x102   :  { %v1582_v17 = vadd.f32 %v1581_v15, %v1580_v12  ;;  %v1583_v18 = vpop.f32.mrb[6].mxu0  ;;  %v1874_v15 = vld [vmem:[%s2317_s4 + $0x10] sm:$0xff]  }
 0x103   :  { %v1584_v21 = vpop.f32.mrb[7].mxu0 }
 0x104   :  { %v1585_v23 = vadd.f32 %v1584_v21, %v1583_v18  ;;  %v1879_v18 = vld [vmem:[%s2317_s4 + $0x38] sm:$0xff]  }
 0x115   :  { %v1546_v2 = vpop.f32.mrb[4].mxu1 }
 0x116   :  { %v1547_v4 = vpop.f32.mrb[5].mxu1 }
 0x117   :  { %v1548_v5 = vadd.f32 %v1547_v4, %v1546_v2  ;;  %v1549_v6 = vpop.f32.mrb[6].mxu1 }
 0x118   :  { %v1550_v7 = vpop.f32.mrb[7].mxu1  ;;  %v1630_v29 = vpop.f32.mrb[8].mxu0 }
 0x119   :  { %v903_v8 = vadd.f32 %v1548_v5, %v1394_v3  ;;  %v1551_v9 = vadd.f32 %v1550_v7, %v1549_v6  ;;  %v1631_v30 = vpop.f32.mrb[9].mxu0 }
 0x11a   :  { %v1632_v31 = vadd.f32 %v1631_v30, %v1630_v29  ;;  %v1633_v32 = vpop.f32.mrb[10].mxu0 }
 0x11b   :  { %v906_v10 = vadd.f32 %v1551_v9, %v1394_v3  ;;  %v952_v11 = vadd.f32 %v1576_v62, %v903_v8  ;;  %v1634_v33 = vpop.f32.mrb[11].mxu0 }
 0x11c   :  { %v1635_v34 = vadd.f32 %v1634_v33, %v1633_v32 }
 0x11d   :  { %v955_v13 = vadd.f32 %v1579_v1, %v906_v10  ;;  %v1552_v14 = vpop.f32.mrb[8].mxu1 }
 0x11e   :  { %v1553_v16 = vpop.f32.mrb[9].mxu1 }
 0x11f   :  { %v1554_v19 = vadd.f32 %v1553_v16, %v1552_v14  ;;  %v1555_v20 = vpop.f32.mrb[10].mxu1  ;;  %v1873_v14 = vld [vmem:[%s2317_s4 + $0x8] sm:$0xff]   ;;  %v1875_v16 = vld [vmem:[%s2317_s4 + $0x18] sm:$0xff]  }
 0x120   :  { %v1556_v22 = vpop.f32.mrb[11].mxu1  ;;  %v1636_v35 = vpop.f32.mrb[12].mxu0 }
 0x121   :  { %v911_v24 = vadd.f32 %v1554_v19, %v1394_v3  ;;  %v1557_v25 = vadd.f32 %v1556_v22, %v1555_v20  ;;  %v1637_v36 = vpop.f32.mrb[13].mxu0  ;;  %v1349_v19 = vld [vmem:[%s2320_s8 + $0x10] sm:$0xff]  ;;  %v1347_v20 = vld [vmem:[%s2320_s8] sm:$0xff]  ;;  %v1350_v22 = vld [vmem:[%s2320_s8 + $0x18] sm:$0xff] }
 0x122   :  { %v1638_v37 = vadd.f32 %v1637_v36, %v1636_v35  ;;  %v1639_v38 = vpop.f32.mrb[14].mxu0 }
 0x123   :  { %v914_v26 = vadd.f32 %v1557_v25, %v1394_v3  ;;  %v960_v27 = vadd.f32 %v1582_v17, %v911_v24  ;;  %v1640_v39 = vpop.f32.mrb[15].mxu0  ;;  %v1876_v17 = vld [vmem:[%s2317_s4 + $0x20] sm:$0xff]   ;;  %v1348_v25 = vld [vmem:[%s2320_s8 + $0x8] sm:$0xff] }
 0x124   :  { %v1641_v40 = vadd.f32 %v1640_v39, %v1639_v38 }
 0x125   :  { %v963_v28 = vadd.f32 %v1585_v23, %v914_v26 }
 0x135   :  { %v1602_v41 = vpop.f32.mrb[12].mxu1 }
 0x136   :  { %v1603_v42 = vpop.f32.mrb[13].mxu1 }
 0x137   :  { %v1604_v43 = vadd.f32 %v1603_v42, %v1602_v41  ;;  %v1605_v45 = vpop.f32.mrb[14].mxu1 }
 0x138   :  { %v1606_v46 = vpop.f32.mrb[15].mxu1 }
 0x139   :  { %v1001_v47 = vadd.f32 %v1604_v43, %v952_v11  ;;  %v1607_v48 = vadd.f32 %v1606_v46, %v1605_v45 }
 0x13b   :  { %v1004_v49 = vadd.f32 %v1607_v48, %v955_v13  ;;  %v1050_v50 = vadd.f32 %v1632_v31, %v1001_v47 }
 0x13d   :  { %v1608_v51 = vpop.f32.mrb[16].mxu1  ;;  %v1053_v52 = vadd.f32 %v1635_v34, %v1004_v49 }
 0x13e   :  { %v1609_v53 = vpop.f32.mrb[17].mxu1 }
 0x13f   :  { %v1610_v54 = vadd.f32 %v1609_v53, %v1608_v51  ;;  %v1611_v55 = vpop.f32.mrb[18].mxu1 }
 0x140   :  { %v1612_v56 = vpop.f32.mrb[19].mxu1 }
 0x141   :  { %v1009_v57 = vadd.f32 %v1610_v54, %v960_v27  ;;  %v1613_v60 = vadd.f32 %v1612_v56, %v1611_v55 }
 0x143   :  { %v1012_v61 = vadd.f32 %v1613_v60, %v963_v28  ;;  %v1058_v62 = vadd.f32 %v1638_v37, %v1009_v57 }
 0x145   :  { %v1061_v63 = vadd.f32 %v1641_v40, %v1012_v61 }
 0x155   :  { %v1710_v0 = vpop.f32.mrb[20].mxu1 }
 0x156   :  { %v1107_v1 = vadd.f32 %v1710_v0, %v1058_v62  ;;  %v1098_v2 = vpop.f32.mrb[21].mxu1 }
 0x157   :  { %v1099_v3 = vadd.f32 %v1098_v2, %v1050_v50  ;;  %v1711_v4 = vpop.f32.mrb[22].mxu1 }
 0x158   :  { %v1110_v5 = vadd.f32 %v1711_v4, %v1061_v63  ;;  %v1101_v6 = vpop.f32.mrb[23].mxu1  ;;  %v1115_v8 = vmax.f32 %v1107_v1, 0.0 }
 0x159   :  { %v1102_v7 = vadd.f32 %v1101_v6, %v1053_v52  ;;  %v1113_v10 = vmax.f32 %v1099_v3, 0.0 }
 0x15a   :  { %v1116_v9 = vmax.f32 %v1110_v5, 0.0 }
 0x15b   :  { %v1114_v11 = vmax.f32 %v1102_v7, 0.0 }
 0x15c   :  { %v1136_v12 = vpack.c.bf16 %v1116_v9, %v1115_v8 }
 0x15d   :  { %v1135_v13 = vpack.c.bf16 %v1114_v11, %v1113_v10 }
 0x15f   :  { %1728 = vmatprep.mubr.bf16.mxu0 %v1135_v13 }
 0x160   :  { %1729 = vmatmul.mubr.bf16.vlgmr.msra.gmra.mrb[16].mxu0 %v1136_v12 }
 0x161   :  { %1733 = vmatpush3.bf16.msra.mxu0 %v2257_v44  ;;  %1748 = vmatprep.mubr.bf16.mxu0 %v2265_v59  ;;  %v1877_v44 = vld [vmem:[%s2317_s4 + $0x28] sm:$0xff]   ;;  %v1878_v59 = vld [vmem:[%s2317_s4 + $0x30] sm:$0xff]  }
 0x162   :  { %1734 = vmatprep.subr.bf16.mxu0 %v1873_v14 }
 0x165   :  { %1735 = vmatpush3.bf16.msra.mxu0 %v1873_v14 }
 0x166   :  { %1736 = vmatprep.subr.bf16.mxu0 %v1874_v15 }
 0x169   :  { %1737 = vmatpush3.bf16.msra.mxu0 %v1874_v15 }
 0x16a   :  { %1738 = vmatprep.subr.bf16.mxu0 %v1875_v16 }
 0x16d   :  { %1739 = vmatpush3.bf16.msra.mxu0 %v1875_v16 }
 0x16e   :  { %1740 = vmatprep.subr.bf16.mxu0 %v1876_v17 }
 0x171   :  { %1741 = vmatpush3.bf16.msra.mxu0 %v1876_v17 }
 0x172   :  { %1742 = vmatprep.subr.bf16.mxu0 %v1877_v44 }
 0x175   :  { %1743 = vmatpush3.bf16.msra.mxu0 %v1877_v44 }
 0x176   :  { %1744 = vmatprep.subr.bf16.mxu0 %v1878_v59 }
 0x179   :  { %1745 = vmatpush3.bf16.msra.mxu0 %v1878_v59 }
 0x17a   :  { %1746 = vmatprep.subr.bf16.mxu0 %v1879_v18 }
 0x17d   :  { %1747 = vmatpush3.bf16.msra.mxu0 %v1879_v18 }
 0x180   :  { %1749 = vmatmul.mubr.bf16.vlgmr.msra.gmra.mrb[16].mxu0 %v2263_v58 }
 0x253   :  { %v1750_v21 = vpop.f32.mrb[16].mxu0 }
 0x254   :  { %v1353_v23 = vadd.f32 %v1750_v21, %v1349_v19  ;;  %v1332_v24 = vpop.f32.mrb[17].mxu0 }
 0x255   :  { %v1351_v58 = vadd.f32 %v1347_v20, %v1332_v24  ;;  %v1751_v26 = vpop.f32.mrb[18].mxu0 }
 0x256   :  { %v1354_v27 = vadd.f32 %v1751_v26, %v1350_v22  ;;  %v1335_v28 = vpop.f32.mrb[19].mxu0  ;;  %v1357_v30 = vmax.f32 %v1353_v23, 0.0 }
 0x257   :  { %v1352_v29 = vadd.f32 %v1348_v25, %v1335_v28  ;;  %v1355_v32 = vmax.f32 %v1351_v58, 0.0 }
 0x258   :  { %v1358_v31 = vmax.f32 %v1354_v27, 0.0 }
 0x259   :  { %v1356_v33 = vmax.f32 %v1352_v29, 0.0 }
 0x25a   :  { %v1517_v34 = vpack.c.bf16 %v1358_v31, %v1357_v30 }
 0x25b   :  { %v1512_v35 = vpack.c.bf16 %v1356_v33, %v1355_v32 }
 0x25c   :  { %1519 = vst [vmem:[%s2321_s9 + $0x8] sm:$0xff] %v1517_v34  }
 0x25d   :  { %1513 = vst [vmem:[%s2321_s9] sm:$0xff] %v1512_v35  }

// kernel: _lambda_.10
= control target key start
LH: loop header
LB: loop body
LE: loop exit
PB: predicated region body
PF: predicated region fallthrough
CT: control target
= control target key end

     0   :  { %s618_s1 = inlined_call_operand.vmem [shape: bf16[128,128], index: 1, kind: input, shape index: {}]   ;;  %s619_s0 = inlined_call_operand.vmem [shape: bf16[128,128], index: 0, kind: input, shape index: {}]   ;;  %s620_s2 = inlined_call_operand.vmem [shape: f32[1,128], index: 2, kind: input, shape index: {}]   ;;  %s621_s3 = inlined_call_operand.vmem [shape: bf16[128,128], index: 3, kind: output, shape index: {}]  }
   0x1   :  { %v507_v0 = vld [vmem:[%s618_s1] sm:$0xff]   ;;  %v508_v1 = vld [vmem:[%s618_s1 + $0x8] sm:$0xff]   ;;  %v509_v2 = vld [vmem:[%s618_s1 + $0x10] sm:$0xff]  }
   0x2   :  { %459 = vmatprep.subr.bf16.mxu0 %v507_v0  ;;  %491 = vmatprep.subr.bf16.mxu1 %v507_v0  ;;  %v510_v3 = vld [vmem:[%s618_s1 + $0x18] sm:$0xff]   ;;  %v515_v4 = vld [vmem:[%s619_s0] sm:$0xff]   ;;  %v512_v7 = vld [vmem:[%s618_s1 + $0x28] sm:$0xff]  }
   0x3   :  { %460 = vmatpush3.bf16.msra.mxu0 %v507_v0  ;;  %499 = vmatpush3.bf16.msra.mxu1 %v507_v0  ;;  %v516_v5 = vld [vmem:[%s619_s0 + $0x20] sm:$0xff]   ;;  %v513_v8 = vld [vmem:[%s618_s1 + $0x30] sm:$0xff]   ;;  %v514_v9 = vld [vmem:[%s618_s1 + $0x38] sm:$0xff]  }
   0x4   :  { %461 = vmatprep.subr.bf16.mxu0 %v508_v1  ;;  %492 = vmatprep.subr.bf16.mxu1 %v508_v1  ;;  %v511_v6 = vld [vmem:[%s618_s1 + $0x20] sm:$0xff]   ;;  %v517_v10 = vld [vmem:[%s619_s0 + $0x8] sm:$0xff]   ;;  %v519_v12 = vld [vmem:[%s619_s0 + $0x10] sm:$0xff]  }
   0x5   :  { %475 = vmatprep.mubr.bf16.mxu0 %v515_v4  ;;  %483 = vmatprep.mubr.bf16.mxu1 %v516_v5  ;;  %v518_v11 = vld [vmem:[%s619_s0 + $0x28] sm:$0xff]   ;;  %v520_v13 = vld [vmem:[%s619_s0 + $0x30] sm:$0xff]   ;;  %v521_v14 = vld [vmem:[%s619_s0 + $0x18] sm:$0xff]  }
   0x6   :  { %v522_v15 = vld [vmem:[%s619_s0 + $0x38] sm:$0xff]   ;;  %v347_v16 = vld [vmem:[%s620_s2] ss:$0 sm:$0xff] }
   0x7   :  { %462 = vmatpush3.bf16.msra.mxu0 %v508_v1  ;;  %500 = vmatpush3.bf16.msra.mxu1 %v508_v1 }
   0x8   :  { %463 = vmatprep.subr.bf16.mxu0 %v509_v2  ;;  %493 = vmatprep.subr.bf16.mxu1 %v509_v2 }
   0xb   :  { %464 = vmatpush3.bf16.msra.mxu0 %v509_v2  ;;  %501 = vmatpush3.bf16.msra.mxu1 %v509_v2 }
   0xc   :  { %465 = vmatprep.subr.bf16.mxu0 %v510_v3  ;;  %494 = vmatprep.subr.bf16.mxu1 %v510_v3 }
   0xf   :  { %466 = vmatpush3.bf16.msra.mxu0 %v510_v3  ;;  %502 = vmatpush3.bf16.msra.mxu1 %v510_v3 }
  0x10   :  { %467 = vmatprep.subr.bf16.mxu0 %v511_v6  ;;  %495 = vmatprep.subr.bf16.mxu1 %v511_v6 }
  0x13   :  { %468 = vmatpush3.bf16.msra.mxu0 %v511_v6  ;;  %503 = vmatpush3.bf16.msra.mxu1 %v511_v6 }
  0x14   :  { %469 = vmatprep.subr.bf16.mxu0 %v512_v7  ;;  %496 = vmatprep.subr.bf16.mxu1 %v512_v7 }
  0x17   :  { %470 = vmatpush3.bf16.msra.mxu0 %v512_v7  ;;  %504 = vmatpush3.bf16.msra.mxu1 %v512_v7 }
  0x18   :  { %471 = vmatprep.subr.bf16.mxu0 %v513_v8  ;;  %497 = vmatprep.subr.bf16.mxu1 %v513_v8 }
  0x1b   :  { %472 = vmatpush3.bf16.msra.mxu0 %v513_v8  ;;  %505 = vmatpush3.bf16.msra.mxu1 %v513_v8 }
  0x1c   :  { %473 = vmatprep.subr.bf16.mxu0 %v514_v9  ;;  %498 = vmatprep.subr.bf16.mxu1 %v514_v9 }
  0x1f   :  { %474 = vmatpush3.bf16.msra.mxu0 %v514_v9  ;;  %506 = vmatpush3.bf16.msra.mxu1 %v514_v9 }
  0x22   :  { %476 = vmatmul.mubr.bf16.vlgmr.msra.gmra.mrb[0].mxu0 %v517_v10  ;;  %484 = vmatmul.mubr.bf16.vlgmr.msra.gmra.mrb[0].mxu1 %v518_v11 }
  0x23   :  { %479 = vmatprep.mubr.bf16.mxu0 %v519_v12  ;;  %487 = vmatprep.mubr.bf16.mxu1 %v520_v13 }
  0x2a   :  { %480 = vmatmul.mubr.bf16.gmra.mrb[4].mxu0 %v521_v14  ;;  %488 = vmatmul.mubr.bf16.gmra.mrb[4].mxu1 %v522_v15 }
  0xf5   :  { %v477_v17 = vpop.f32.mrb[0].mxu0  ;;  %v485_v18 = vpop.f32.mrb[0].mxu1 }
  0xf6   :  { %v193_v19 = vadd.f32 %v477_v17, %v347_v16  ;;  %v225_v20 = vadd.f32 %v485_v18, %v347_v16  ;;  %v184_v21 = vpop.f32.mrb[1].mxu0  ;;  %v216_v22 = vpop.f32.mrb[1].mxu1 }
  0xf7   :  { %v185_v23 = vadd.f32 %v347_v16, %v184_v21  ;;  %v217_v24 = vadd.f32 %v347_v16, %v216_v22  ;;  %v478_v25 = vpop.f32.mrb[2].mxu0  ;;  %v486_v26 = vpop.f32.mrb[2].mxu1 }
  0xf8   :  { %v196_v27 = vadd.f32 %v478_v25, %v347_v16  ;;  %v228_v28 = vadd.f32 %v486_v26, %v347_v16  ;;  %v187_v29 = vpop.f32.mrb[3].mxu0  ;;  %v219_v30 = vpop.f32.mrb[3].mxu1  ;;  %v249_v33 = vmax.f32 %v193_v19, 0.0  ;;  %v257_v34 = vmax.f32 %v225_v20, 0.0 }
  0xf9   :  { %v188_v31 = vadd.f32 %v347_v16, %v187_v29  ;;  %v220_v32 = vadd.f32 %v347_v16, %v219_v30  ;;  %v247_v37 = vmax.f32 %v185_v23, 0.0  ;;  %v255_v38 = vmax.f32 %v217_v24, 0.0 }
  0xfa   :  { %v250_v35 = vmax.f32 %v196_v27, 0.0  ;;  %v258_v36 = vmax.f32 %v228_v28, 0.0 }
  0xfb   :  { %v248_v39 = vmax.f32 %v188_v31, 0.0  ;;  %v256_v40 = vmax.f32 %v220_v32, 0.0 }
  0xfc   :  { %v404_v41 = vpack.c.bf16 %v250_v35, %v249_v33  ;;  %v424_v42 = vpack.c.bf16 %v258_v36, %v257_v34 }
  0xfd   :  { %v399_v43 = vpack.c.bf16 %v248_v39, %v247_v37  ;;  %v419_v44 = vpack.c.bf16 %v256_v40, %v255_v38  ;;  %v481_v45 = vpop.f32.mrb[4].mxu0  ;;  %v489_v46 = vpop.f32.mrb[4].mxu1 }
  0xfe   :  { %436 = vst [vmem:[%s621_s3 + $0x8] sm:$0xff] %v404_v41   ;;  %440 = vst [vmem:[%s621_s3 + $0x28] sm:$0xff] %v424_v42   ;;  %v209_v47 = vadd.f32 %v481_v45, %v347_v16  ;;  %v241_v48 = vadd.f32 %v489_v46, %v347_v16  ;;  %v200_v49 = vpop.f32.mrb[5].mxu0  ;;  %v232_v50 = vpop.f32.mrb[5].mxu1 }
  0xff   :  { %400 = vst [vmem:[%s621_s3] sm:$0xff] %v399_v43   ;;  %439 = vst [vmem:[%s621_s3 + $0x20] sm:$0xff] %v419_v44   ;;  %v201_v51 = vadd.f32 %v347_v16, %v200_v49  ;;  %v233_v52 = vadd.f32 %v347_v16, %v232_v50  ;;  %v482_v53 = vpop.f32.mrb[6].mxu0  ;;  %v490_v54 = vpop.f32.mrb[6].mxu1 }
 0x100   :  { %v212_v55 = vadd.f32 %v482_v53, %v347_v16  ;;  %v244_v56 = vadd.f32 %v490_v54, %v347_v16  ;;  %v203_v57 = vpop.f32.mrb[7].mxu0  ;;  %v235_v58 = vpop.f32.mrb[7].mxu1  ;;  %v253_v61 = vmax.f32 %v209_v47, 0.0  ;;  %v261_v62 = vmax.f32 %v241_v48, 0.0 }
 0x101   :  { %v204_v59 = vadd.f32 %v347_v16, %v203_v57  ;;  %v236_v60 = vadd.f32 %v347_v16, %v235_v58  ;;  %v251_v1 = vmax.f32 %v201_v51, 0.0  ;;  %v259_v2 = vmax.f32 %v233_v52, 0.0 }
 0x102   :  { %v254_v63 = vmax.f32 %v212_v55, 0.0  ;;  %v262_v0 = vmax.f32 %v244_v56, 0.0 }
 0x103   :  { %v252_v3 = vmax.f32 %v204_v59, 0.0  ;;  %v260_v4 = vmax.f32 %v236_v60, 0.0 }
 0x104   :  { %v414_v5 = vpack.c.bf16 %v254_v63, %v253_v61  ;;  %v434_v6 = vpack.c.bf16 %v262_v0, %v261_v62 }
 0x105   :  { %v409_v7 = vpack.c.bf16 %v252_v3, %v251_v1  ;;  %v429_v8 = vpack.c.bf16 %v260_v4, %v259_v2 }
 0x106   :  { %438 = vst [vmem:[%s621_s3 + $0x18] sm:$0xff] %v414_v5   ;;  %442 = vst [vmem:[%s621_s3 + $0x38] sm:$0xff] %v434_v6  }
 0x107   :  { %437 = vst [vmem:[%s621_s3 + $0x10] sm:$0xff] %v409_v7   ;;  %441 = vst [vmem:[%s621_s3 + $0x30] sm:$0xff] %v429_v8  }

// kernel: _lambda_.11
= control target key start
LH: loop header
LB: loop body
LE: loop exit
PB: predicated region body
PF: predicated region fallthrough
CT: control target
= control target key end

     0   :  { %s5601_s1 = inlined_call_operand.vmem [shape: bf16[2304,128], index: 1, kind: input, shape index: {}]   ;;  %s5602_s0 = inlined_call_operand.vmem [shape: bf16[128,2304], index: 0, kind: input, shape index: {}]   ;;  %s5603_s3 = inlined_call_operand.vmem [shape: f32[1,128], index: 3, kind: input, shape index: {}]   ;;  %s5604_s2 = inlined_call_operand.vmem [shape: bf16[128,128], index: 2, kind: input, shape index: {}]   ;;  %s5605_s4 = inlined_call_operand.vmem [shape: f32[1,128], index: 4, kind: input, shape index: {}]   ;;  %s5606_s5 = inlined_call_operand.vmem [shape: f32[128,128], index: 5, kind: output, shape index: {}]  }
   0x1   :  { %v4051_v0 = vld [vmem:[%s5601_s1 + $0x40] sm:$0xff]   ;;  %v4055_v4 = vld [vmem:[%s5601_s1 + $0x48] sm:$0xff]   ;;  %v4059_v8 = vld [vmem:[%s5601_s1 + $0x50] sm:$0xff]  }
   0x2   :  { %v4052_v1 = vld [vmem:[%s5601_s1] sm:$0xff]   ;;  %3427 = vmatprep.subr.bf16.mxu0 %v4051_v0  ;;  %v4056_v5 = vld [vmem:[%s5601_s1 + $0x8] sm:$0xff]   ;;  %v4060_v9 = vld [vmem:[%s5601_s1 + $0x10] sm:$0xff]  }
   0x3   :  { %v4053_v2 = vld [vmem:[%s5601_s1 + $0xc0] sm:$0xff]   ;;  %3428 = vmatpush3.bf16.msra.mxu0 %v4052_v1  ;;  %v4057_v6 = vld [vmem:[%s5601_s1 + $0xc8] sm:$0xff]   ;;  %v4061_v10 = vld [vmem:[%s5601_s1 + $0xd0] sm:$0xff]  }
   0x4   :  { %v4054_v3 = vld [vmem:[%s5601_s1 + $0x80] sm:$0xff]   ;;  %3491 = vmatprep.subr.bf16.mxu1 %v4053_v2  ;;  %3429 = vmatprep.subr.bf16.mxu0 %v4055_v4  ;;  %v4058_v7 = vld [vmem:[%s5601_s1 + $0x88] sm:$0xff]   ;;  %v4062_v11 = vld [vmem:[%s5601_s1 + $0x90] sm:$0xff]  }
   0x5   :  { %3492 = vmatpush3.bf16.msra.mxu1 %v4054_v3  ;;  %v4063_v12 = vld [vmem:[%s5601_s1 + $0x58] sm:$0xff]   ;;  %v4067_v16 = vld [vmem:[%s5601_s1 + $0x60] sm:$0xff]   ;;  %v4071_v20 = vld [vmem:[%s5601_s1 + $0x68] sm:$0xff]  }
   0x6   :  { %3493 = vmatprep.subr.bf16.mxu1 %v4057_v6  ;;  %v4064_v13 = vld [vmem:[%s5601_s1 + $0x18] sm:$0xff]   ;;  %v4068_v17 = vld [vmem:[%s5601_s1 + $0x20] sm:$0xff]   ;;  %v4072_v21 = vld [vmem:[%s5601_s1 + $0x28] sm:$0xff]  }
   0x7   :  { %3430 = vmatpush3.bf16.msra.mxu0 %v4056_v5  ;;  %v4065_v14 = vld [vmem:[%s5601_s1 + $0xd8] sm:$0xff]   ;;  %v4069_v18 = vld [vmem:[%s5601_s1 + $0xe0] sm:$0xff]   ;;  %v4073_v22 = vld [vmem:[%s5601_s1 + $0xe8] sm:$0xff]  }
   0x8   :  { %3431 = vmatprep.subr.bf16.mxu0 %v4059_v8  ;;  %v4066_v15 = vld [vmem:[%s5601_s1 + $0x98] sm:$0xff]   ;;  %v4070_v19 = vld [vmem:[%s5601_s1 + $0xa0] sm:$0xff]   ;;  %v4074_v23 = vld [vmem:[%s5601_s1 + $0xa8] sm:$0xff]  }
   0x9   :  { %3494 = vmatpush3.bf16.msra.mxu1 %v4058_v7  ;;  %v4075_v24 = vld [vmem:[%s5601_s1 + $0x70] sm:$0xff]   ;;  %v4079_v28 = vld [vmem:[%s5601_s1 + $0x78] sm:$0xff]   ;;  %v4082_v31 = vld [vmem:[%s5602_s0] ss:$72 sps:$4 sm:$0xff]  }
   0xa   :  { %3495 = vmatprep.subr.bf16.mxu1 %v4061_v10  ;;  %v4076_v25 = vld [vmem:[%s5601_s1 + $0x30] sm:$0xff]   ;;  %v4080_v29 = vld [vmem:[%s5601_s1 + $0x38] sm:$0xff]   ;;  %v4084_v32 = vld [vmem:[%s5602_s0 + $0x4] ss:$72 sps:$4 sm:$0xff]  }
   0xb   :  { %3432 = vmatpush3.bf16.msra.mxu0 %v4060_v9  ;;  %v4077_v26 = vld [vmem:[%s5601_s1 + $0xf0] sm:$0xff]   ;;  %v4081_v30 = vld [vmem:[%s5601_s1 + $0xf8] sm:$0xff]   ;;  %2076 = vmatprep.mubr.bf16.mxu0 %v4084_v32  ;;  %v4086_v34 = vld [vmem:[%s5601_s1 + $0x140] sm:$0xff]  }
   0xc   :  { %3433 = vmatprep.subr.bf16.mxu0 %v4063_v12  ;;  %v4078_v27 = vld [vmem:[%s5601_s1 + $0xb0] sm:$0xff]   ;;  %v4085_v33 = vld [vmem:[%s5601_s1 + $0xb8] sm:$0xff]   ;;  %v4090_v37 = vld [vmem:[%s5601_s1 + $0x100] sm:$0xff]  }
   0xd   :  { %3496 = vmatpush3.bf16.msra.mxu1 %v4062_v11  ;;  %v4087_v35 = vld [vmem:[%s5602_s0 + $0x8] ss:$72 sps:$4 sm:$0xff]   ;;  %v4089_v36 = vld [vmem:[%s5602_s0 + $0xc] ss:$72 sps:$4 sm:$0xff]   ;;  %v4095_v41 = vld [vmem:[%s5602_s0 + $0x9c] ss:$72 sps:$4 sm:$0xff]  }
   0xe   :  { %3497 = vmatprep.subr.bf16.mxu1 %v4065_v14  ;;  %2173 = vmatprep.mubr.bf16.mxu1 %v4089_v36  ;;  %v4091_v38 = vld [vmem:[%s5602_s0 + $0x94] ss:$72 sps:$4 sm:$0xff]   ;;  %v4093_v39 = vld [vmem:[%s5602_s0 + $0x90] ss:$72 sps:$4 sm:$0xff]   ;;  %v4094_v40 = vld [vmem:[%s5601_s1 + $0x148] sm:$0xff]  }
   0xf   :  { %3434 = vmatpush3.bf16.msra.mxu0 %v4064_v13  ;;  %v4097_v42 = vld [vmem:[%s5601_s1 + $0x108] sm:$0xff]   ;;  %v4098_v43 = vld [vmem:[%s5602_s0 + $0x98] ss:$72 sps:$4 sm:$0xff]   ;;  %v4102_v45 = vld [vmem:[%s5601_s1 + $0x150] sm:$0xff]  }
  0x10   :  { %3435 = vmatprep.subr.bf16.mxu0 %v4067_v16  ;;  %v4099_v44 = vld [vmem:[%s5602_s0 + $0x124] ss:$72 sps:$4 sm:$0xff]   ;;  %v4105_v47 = vld [vmem:[%s5601_s1 + $0x110] sm:$0xff]   ;;  %v4101_v48 = vld [vmem:[%s5602_s0 + $0x120] ss:$72 sps:$4 sm:$0xff]  }
  0x11   :  { %3498 = vmatpush3.bf16.msra.mxu1 %v4066_v15  ;;  %v4103_v46 = vld [vmem:[%s5602_s0 + $0x12c] ss:$72 sps:$4 sm:$0xff]   ;;  %v4110_v50 = vld [vmem:[%s5601_s1 + $0x158] sm:$0xff]   ;;  %v4106_v51 = vld [vmem:[%s5602_s0 + $0x128] ss:$72 sps:$4 sm:$0xff]  }
  0x12   :  { %3499 = vmatprep.subr.bf16.mxu1 %v4069_v18  ;;  %v4107_v49 = vld [vmem:[%s5602_s0 + $0x1b4] ss:$72 sps:$4 sm:$0xff]   ;;  %v4118_v54 = vld [vmem:[%s5601_s1 + $0x160] sm:$0xff]   ;;  %v4109_v55 = vld [vmem:[%s5602_s0 + $0x1b0] ss:$72 sps:$4 sm:$0xff]  }
  0x13   :  { %3436 = vmatpush3.bf16.msra.mxu0 %v4068_v17  ;;  %v4113_v52 = vld [vmem:[%s5601_s1 + $0x118] sm:$0xff]   ;;  %v4121_v56 = vld [vmem:[%s5601_s1 + $0x120] sm:$0xff]   ;;  %v4125_v61 = vld [vmem:[%s5601_s1 + $0x1c8] sm:$0xff]  }
  0x14   :  { %3437 = vmatprep.subr.bf16.mxu0 %v4071_v20  ;;  %v4111_v53 = vld [vmem:[%s5602_s0 + $0x1bc] ss:$72 sps:$4 sm:$0xff]   ;;  %v4114_v58 = vld [vmem:[%s5602_s0 + $0x1b8] ss:$72 sps:$4 sm:$0xff]   ;;  %v4119_v62 = vld [vmem:[%s5602_s0 + $0x24c] ss:$72 sps:$4 sm:$0xff]  }
  0x15   :  { %3500 = vmatpush3.bf16.msra.mxu1 %v4070_v19  ;;  %v4115_v57 = vld [vmem:[%s5602_s0 + $0x244] ss:$72 sps:$4 sm:$0xff]   ;;  %v4117_v1 = vld [vmem:[%s5602_s0 + $0x240] ss:$72 sps:$4 sm:$0xff]   ;;  %v4126_v2 = vld [vmem:[%s5602_s0 + $0x2d4] ss:$72 sps:$4 sm:$0xff]  }
  0x16   :  { %3501 = vmatprep.subr.bf16.mxu1 %v4073_v22  ;;  %v4123_v59 = vld [vmem:[%s5601_s1 + $0x1c0] sm:$0xff]   ;;  %v4128_v63 = vld [vmem:[%s5601_s1 + $0x188] sm:$0xff]   ;;  %v4135_v5 = vld [vmem:[%s5601_s1 + $0x1d0] sm:$0xff]  }
  0x17   :  { %3438 = vmatpush3.bf16.msra.mxu0 %v4072_v21  ;;  %v4124_v60 = vld [vmem:[%s5601_s1 + $0x180] sm:$0xff]   ;;  %v4130_v0 = vld [vmem:[%s5601_s1 + $0x168] sm:$0xff]   ;;  %v4136_v6 = vld [vmem:[%s5601_s1 + $0x190] sm:$0xff]  }
  0x18   :  { %3439 = vmatprep.subr.bf16.mxu0 %v4075_v24  ;;  %v4133_v3 = vld [vmem:[%s5601_s1 + $0x128] sm:$0xff]   ;;  %v4137_v7 = vld [vmem:[%s5601_s1 + $0x1d8] sm:$0xff]   ;;  %v4142_v10 = vld [vmem:[%s5601_s1 + $0x170] sm:$0xff]  }
  0x19   :  { %3502 = vmatpush3.bf16.msra.mxu1 %v4074_v23  ;;  %v4122_v4 = vld [vmem:[%s5602_s0 + $0x248] ss:$72 sps:$4 sm:$0xff]   ;;  %v4131_v8 = vld [vmem:[%s5602_s0 + $0x2dc] ss:$72 sps:$4 sm:$0xff]   ;;  %v4134_v12 = vld [vmem:[%s5602_s0 + $0x2d8] ss:$72 sps:$4 sm:$0xff]  }
  0x1a   :  { %3503 = vmatprep.subr.bf16.mxu1 %v4077_v26  ;;  %v4140_v9 = vld [vmem:[%s5601_s1 + $0x198] sm:$0xff]   ;;  %v4138_v13 = vld [vmem:[%s5602_s0 + $0x364] ss:$72 sps:$4 sm:$0xff]   ;;  %v4145_v14 = vld [vmem:[%s5601_s1 + $0x130] sm:$0xff]  }
  0x1b   :  { %3440 = vmatpush3.bf16.msra.mxu0 %v4076_v25  ;;  %v4129_v11 = vld [vmem:[%s5602_s0 + $0x2d0] ss:$72 sps:$4 sm:$0xff]   ;;  %v4143_v15 = vld [vmem:[%s5602_s0 + $0x36c] ss:$72 sps:$4 sm:$0xff]   ;;  %v4147_v16 = vld [vmem:[%s5601_s1 + $0x1e0] sm:$0xff]  }
  0x1c   :  { %3441 = vmatprep.subr.bf16.mxu0 %v4079_v28  ;;  %v4148_v17 = vld [vmem:[%s5601_s1 + $0x1a0] sm:$0xff]   ;;  %v4149_v18 = vld [vmem:[%s5601_s1 + $0x1e8] sm:$0xff]   ;;  %v4154_v21 = vld [vmem:[%s5601_s1 + $0x178] sm:$0xff]  }
  0x1d   :  { %3504 = vmatpush3.bf16.msra.mxu1 %v4078_v27  ;;  %v4141_v19 = vld [vmem:[%s5602_s0 + $0x360] ss:$72 sps:$4 sm:$0xff]   ;;  %v4150_v22 = vld [vmem:[%s5602_s0 + $0x3f4] ss:$72 sps:$4 sm:$0xff]  }
  0x1e   :  { %3505 = vmatprep.subr.bf16.mxu1 %v4081_v30  ;;  %v4152_v20 = vld [vmem:[%s5601_s1 + $0x1a8] sm:$0xff]   ;;  %v4157_v24 = vld [vmem:[%s5601_s1 + $0x138] sm:$0xff]   ;;  %v4159_v26 = vld [vmem:[%s5601_s1 + $0x1f0] sm:$0xff]  }
  0x1f   :  { %3442 = vmatpush3.bf16.msra.mxu0 %v4080_v29  ;;  %v4146_v23 = vld [vmem:[%s5602_s0 + $0x368] ss:$72 sps:$4 sm:$0xff]   ;;  %v4155_v25 = vld [vmem:[%s5602_s0 + $0x3fc] ss:$72 sps:$4 sm:$0xff]  }
  0x20   :  { %3555 = vmatprep.subr.bf16.mxu0 %v4086_v34  ;;  %v4160_v27 = vld [vmem:[%s5601_s1 + $0x1b0] sm:$0xff]   ;;  %v4161_v28 = vld [vmem:[%s5601_s1 + $0x1f8] sm:$0xff]   ;;  %v4170_v36 = vld [vmem:[%s5601_s1 + $0x200] sm:$0xff]  }
  0x21   :  { %3506 = vmatpush3.bf16.msra.mxu1 %v4085_v33  ;;  %v4153_v29 = vld [vmem:[%s5602_s0 + $0x3f0] ss:$72 sps:$4 sm:$0xff]   ;;  %v4164_v32 = vld [vmem:[%s5602_s0 + $0x14] ss:$72 sps:$4 sm:$0xff]  }
  0x22   :  { %2077 = vmatmul.mubr.bf16.vlgmr.msra.gmra.mrb[0].mxu0 %v4082_v31  ;;  %3619 = vmatprep.subr.bf16.mxu1 %v4123_v59  ;;  %v4165_v30 = vld [vmem:[%s5601_s1 + $0x1b8] sm:$0xff]   ;;  %v4166_v31 = vld [vmem:[%s5601_s1 + $0x240] sm:$0xff]   ;;  %v4210_v59 = vld [vmem:[%s5601_s1 + $0x268] sm:$0xff]  }
  0x23   :  { %3556 = vmatpush3.bf16.msra.mxu0 %v4090_v37  ;;  %2084 = vmatprep.mubr.bf16.mxu0 %v4091_v38  ;;  %v4158_v33 = vld [vmem:[%s5602_s0 + $0x3f8] ss:$72 sps:$4 sm:$0xff]   ;;  %v4169_v34 = vld [vmem:[%s5602_s0 + $0x1c] ss:$72 sps:$4 sm:$0xff]   ;;  %v4174_v38 = vld [vmem:[%s5601_s1 + $0x248] sm:$0xff]  }
  0x24   :  { %2174 = vmatmul.mubr.bf16.vlgmr.msra.gmra.mrb[0].mxu1 %v4087_v35  ;;  %3557 = vmatprep.subr.bf16.mxu0 %v4094_v40  ;;  %v4162_v35 = vld [vmem:[%s5602_s0 + $0x10] ss:$72 sps:$4 sm:$0xff]   ;;  %v4171_v37 = vld [vmem:[%s5602_s0 + $0xa4] ss:$72 sps:$4 sm:$0xff]  }
  0x25   :  { %2181 = vmatprep.mubr.bf16.mxu1 %v4095_v41  ;;  %3620 = vmatpush3.bf16.msra.mxu1 %v4124_v60  ;;  %v4175_v40 = vld [vmem:[%s5602_s0 + $0xac] ss:$72 sps:$4 sm:$0xff]  }
  0x26   :  { %3621 = vmatprep.subr.bf16.mxu1 %v4125_v61  ;;  %v4177_v41 = vld [vmem:[%s5601_s1 + $0x208] sm:$0xff]  }
  0x27   :  { %3558 = vmatpush3.bf16.msra.mxu0 %v4097_v42  ;;  %v4182_v42 = vld [vmem:[%s5601_s1 + $0x250] sm:$0xff]   ;;  %v4213_v61 = vld [vmem:[%s5601_s1 + $0x228] sm:$0xff]  }
  0x28   :  { %3559 = vmatprep.subr.bf16.mxu0 %v4102_v45  ;;  %v4185_v45 = vld [vmem:[%s5601_s1 + $0x210] sm:$0xff]  }
  0x29   :  { %3622 = vmatpush3.bf16.msra.mxu1 %v4128_v63  ;;  %v4191_v60 = vld [vmem:[%s5602_s0 + $0x1cc] ss:$72 sps:$4 sm:$0xff]  }
  0x2a   :  { %2085 = vmatmul.mubr.bf16.gmra.mrb[4].mxu0 %v4093_v39  ;;  %3623 = vmatprep.subr.bf16.mxu1 %v4135_v5  ;;  %v4167_v39 = vld [vmem:[%s5602_s0 + $0x18] ss:$72 sps:$4 sm:$0xff]   ;;  %v4195_v63 = vld [vmem:[%s5602_s0 + $0x254] ss:$72 sps:$4 sm:$0xff]  }
  0x2b   :  { %2092 = vmatprep.mubr.bf16.mxu0 %v4099_v44  ;;  %3560 = vmatpush3.bf16.msra.mxu0 %v4105_v47  ;;  %v4179_v44 = vld [vmem:[%s5602_s0 + $0x134] ss:$72 sps:$4 sm:$0xff]   ;;  %v4178_v47 = vld [vmem:[%s5602_s0 + $0xa8] ss:$72 sps:$4 sm:$0xff]  }
  0x2c   :  { %2182 = vmatmul.mubr.bf16.gmra.mrb[4].mxu1 %v4098_v43  ;;  %3561 = vmatprep.subr.bf16.mxu0 %v4110_v50  ;;  %v4173_v43 = vld [vmem:[%s5602_s0 + $0xa0] ss:$72 sps:$4 sm:$0xff]   ;;  %v4220_v5 = vld [vmem:[%s5601_s1 + $0x298] sm:$0xff]  }
  0x2d   :  { %2189 = vmatprep.mubr.bf16.mxu1 %v4103_v46  ;;  %3624 = vmatpush3.bf16.msra.mxu1 %v4136_v6  ;;  %v4190_v46 = vld [vmem:[%s5601_s1 + $0x258] sm:$0xff]   ;;  %v4198_v50 = vld [vmem:[%s5601_s1 + $0x260] sm:$0xff]   ;;  %v4222_v6 = vld [vmem:[%s5601_s1 + $0x270] sm:$0xff]  }
  0x2e   :  { %3625 = vmatprep.subr.bf16.mxu1 %v4137_v7  ;;  %v4197_v7 = vld [vmem:[%s5602_s0 + $0x250] ss:$72 sps:$4 sm:$0xff]  }
  0x2f   :  { %3562 = vmatpush3.bf16.msra.mxu0 %v4113_v52  ;;  %v4203_v52 = vld [vmem:[%s5601_s1 + $0x2c0] sm:$0xff]  }
  0x30   :  { %3563 = vmatprep.subr.bf16.mxu0 %v4118_v54  ;;  %v4204_v54 = vld [vmem:[%s5601_s1 + $0x280] sm:$0xff]  }
  0x31   :  { %3626 = vmatpush3.bf16.msra.mxu1 %v4140_v9  ;;  %v4206_v9 = vld [vmem:[%s5602_s0 + $0x2e4] ss:$72 sps:$4 sm:$0xff]  }
  0x32   :  { %2093 = vmatmul.mubr.bf16.gmra.mrb[8].mxu0 %v4101_v48  ;;  %3627 = vmatprep.subr.bf16.mxu1 %v4147_v16  ;;  %v4183_v48 = vld [vmem:[%s5602_s0 + $0x13c] ss:$72 sps:$4 sm:$0xff]  }
  0x33   :  { %2100 = vmatprep.mubr.bf16.mxu0 %v4107_v49  ;;  %3564 = vmatpush3.bf16.msra.mxu0 %v4121_v56  ;;  %v4193_v49 = vld [vmem:[%s5601_s1 + $0x218] sm:$0xff]   ;;  %v4201_v56 = vld [vmem:[%s5601_s1 + $0x220] sm:$0xff]  }
  0x34   :  { %2190 = vmatmul.mubr.bf16.gmra.mrb[8].mxu1 %v4106_v51  ;;  %3565 = vmatprep.subr.bf16.mxu0 %v4130_v0  ;;  %v4181_v51 = vld [vmem:[%s5602_s0 + $0x130] ss:$72 sps:$4 sm:$0xff]  }
  0x35   :  { %2197 = vmatprep.mubr.bf16.mxu1 %v4111_v53  ;;  %3628 = vmatpush3.bf16.msra.mxu1 %v4148_v17  ;;  %v4187_v53 = vld [vmem:[%s5602_s0 + $0x1c4] ss:$72 sps:$4 sm:$0xff]   ;;  %v4215_v0 = vld [vmem:[%s5601_s1 + $0x2d0] sm:$0xff]   ;;  %v4234_v16 = vld [vmem:[%s5601_s1 + $0x278] sm:$0xff]  }
  0x36   :  { %3629 = vmatprep.subr.bf16.mxu1 %v4149_v18  ;;  %v4209_v17 = vld [vmem:[%s5602_s0 + $0x2e0] ss:$72 sps:$4 sm:$0xff]   ;;  %v4218_v18 = vld [vmem:[%s5602_s0 + $0x374] ss:$72 sps:$4 sm:$0xff]  }
  0x37   :  { %3566 = vmatpush3.bf16.msra.mxu0 %v4133_v3  ;;  %v4194_v3 = vld [vmem:[%s5602_s0 + $0x1c8] ss:$72 sps:$4 sm:$0xff]  }
  0x38   :  { %3567 = vmatprep.subr.bf16.mxu0 %v4142_v10  ;;  %v4227_v10 = vld [vmem:[%s5601_s1 + $0x2e0] sm:$0xff]  }
  0x39   :  { %3630 = vmatpush3.bf16.msra.mxu1 %v4152_v20  ;;  %v4239_v20 = vld [vmem:[%s5601_s1 + $0x2f0] sm:$0xff]  }
  0x3a   :  { %2101 = vmatmul.mubr.bf16.gmra.mrb[12].mxu0 %v4109_v55  ;;  %3631 = vmatprep.subr.bf16.mxu1 %v4159_v26  ;;  %v4205_v55 = vld [vmem:[%s5601_s1 + $0x2c8] sm:$0xff]   ;;  %v4246_v26 = vld [vmem:[%s5601_s1 + $0x340] sm:$0xff]  }
  0x3b   :  { %2108 = vmatprep.mubr.bf16.mxu0 %v4115_v57  ;;  %3568 = vmatpush3.bf16.msra.mxu0 %v4145_v14  ;;  %v4186_v57 = vld [vmem:[%s5602_s0 + $0x138] ss:$72 sps:$4 sm:$0xff]   ;;  %v4232_v14 = vld [vmem:[%s5601_s1 + $0x2a8] sm:$0xff]  }
  0x3c   :  { %2198 = vmatmul.mubr.bf16.gmra.mrb[12].mxu1 %v4114_v58  ;;  %3569 = vmatprep.subr.bf16.mxu0 %v4154_v21  ;;  %v4208_v58 = vld [vmem:[%s5601_s1 + $0x288] sm:$0xff]   ;;  %v4240_v21 = vld [vmem:[%s5601_s1 + $0x2b0] sm:$0xff]  }
  0x3d   :  { %2205 = vmatprep.mubr.bf16.mxu1 %v4119_v62  ;;  %3632 = vmatpush3.bf16.msra.mxu1 %v4160_v27  ;;  %v4189_v62 = vld [vmem:[%s5602_s0 + $0x1c0] ss:$72 sps:$4 sm:$0xff]   ;;  %v4221_v27 = vld [vmem:[%s5602_s0 + $0x370] ss:$72 sps:$4 sm:$0xff]  }
  0x3e   :  { %3633 = vmatprep.subr.bf16.mxu1 %v4161_v28  ;;  %v4230_v28 = vld [vmem:[%s5602_s0 + $0x404] ss:$72 sps:$4 sm:$0xff]  }
  0x3f   :  { %3570 = vmatpush3.bf16.msra.mxu0 %v4157_v24  ;;  %v4223_v24 = vld [vmem:[%s5602_s0 + $0x37c] ss:$72 sps:$4 sm:$0xff]  }
  0x40   :  { %3683 = vmatprep.subr.bf16.mxu0 %v4166_v31  ;;  %v4233_v31 = vld [vmem:[%s5602_s0 + $0x400] ss:$72 sps:$4 sm:$0xff]  }
  0x41   :  { %3634 = vmatpush3.bf16.msra.mxu1 %v4165_v30  ;;  %v4235_v30 = vld [vmem:[%s5602_s0 + $0x40c] ss:$72 sps:$4 sm:$0xff]  }
  0x42   :  { %2109 = vmatmul.mubr.bf16.gmra.mrb[16].mxu0 %v4117_v1  ;;  %3747 = vmatprep.subr.bf16.mxu1 %v4203_v52  ;;  %v4216_v1 = vld [vmem:[%s5601_s1 + $0x290] sm:$0xff]  }
  0x43   :  { %2116 = vmatprep.mubr.bf16.mxu0 %v4126_v2  ;;  %v4217_v2 = vld [vmem:[%s5601_s1 + $0x2d8] sm:$0xff]   ;;  %v4263_v52 = vld [vmem:[%s5602_s0 + $0x14c] ss:$72 sps:$4 sm:$0xff]  }
  0x44   :  { %2206 = vmatmul.mubr.bf16.gmra.mrb[16].mxu1 %v4122_v4  ;;  %v4199_v4 = vld [vmem:[%s5602_s0 + $0x25c] ss:$72 sps:$4 sm:$0xff]  }
  0x45   :  { %2213 = vmatprep.mubr.bf16.mxu1 %v4131_v8  ;;  %v4225_v8 = vld [vmem:[%s5601_s1 + $0x230] sm:$0xff]  }
  0x4a   :  { %2117 = vmatmul.mubr.bf16.gmra.mrb[20].mxu0 %v4129_v11  ;;  %v4228_v11 = vld [vmem:[%s5601_s1 + $0x2a0] sm:$0xff]  }
  0x4b   :  { %2124 = vmatprep.mubr.bf16.mxu0 %v4138_v13  ;;  %v4202_v13 = vld [vmem:[%s5602_s0 + $0x258] ss:$72 sps:$4 sm:$0xff]  }
  0x4c   :  { %2214 = vmatmul.mubr.bf16.gmra.mrb[20].mxu1 %v4134_v12  ;;  %v4229_v12 = vld [vmem:[%s5601_s1 + $0x2e8] sm:$0xff]  }
  0x4d   :  { %2221 = vmatprep.mubr.bf16.mxu1 %v4143_v15  ;;  %v4211_v15 = vld [vmem:[%s5602_s0 + $0x2ec] ss:$72 sps:$4 sm:$0xff]  }
  0x52   :  { %2125 = vmatmul.mubr.bf16.gmra.mrb[24].mxu0 %v4141_v19  ;;  %v4237_v19 = vld [vmem:[%s5601_s1 + $0x238] sm:$0xff]  }
  0x53   :  { %2132 = vmatprep.mubr.bf16.mxu0 %v4150_v22  ;;  %v4241_v22 = vld [vmem:[%s5601_s1 + $0x2f8] sm:$0xff]  }
  0x54   :  { %2222 = vmatmul.mubr.bf16.gmra.mrb[24].mxu1 %v4146_v23  ;;  %v4214_v23 = vld [vmem:[%s5602_s0 + $0x2e8] ss:$72 sps:$4 sm:$0xff]  }
  0x55   :  { %2229 = vmatprep.mubr.bf16.mxu1 %v4155_v25  ;;  %v4245_v25 = vld [vmem:[%s5601_s1 + $0x2b8] sm:$0xff]  }
  0x5a   :  { %2133 = vmatmul.mubr.bf16.gmra.mrb[28].mxu0 %v4153_v29  ;;  %v4226_v29 = vld [vmem:[%s5602_s0 + $0x378] ss:$72 sps:$4 sm:$0xff]  }
  0x5b   :  { %2270 = vmatprep.mubr.bf16.mxu0 %v4164_v32  ;;  %v4244_v32 = vld [vmem:[%s5602_s0 + $0x24] ss:$72 sps:$4 sm:$0xff]  }
  0x5c   :  { %2230 = vmatmul.mubr.bf16.gmra.mrb[28].mxu1 %v4158_v33  ;;  %v4238_v33 = vld [vmem:[%s5602_s0 + $0x408] ss:$72 sps:$4 sm:$0xff]  }
  0x5d   :  { %2367 = vmatprep.mubr.bf16.mxu1 %v4169_v34  ;;  %v4249_v34 = vld [vmem:[%s5602_s0 + $0x2c] ss:$72 sps:$4 sm:$0xff]  }
  0x62   :  { %2271 = vmatmul.mubr.bf16.vlgmr.msra.gmra.mrb[32].mxu0 %v4162_v35  ;;  %v4242_v35 = vld [vmem:[%s5602_s0 + $0x20] ss:$72 sps:$4 sm:$0xff]  }
  0x63   :  { %3684 = vmatpush3.bf16.msra.mxu0 %v4170_v36  ;;  %2278 = vmatprep.mubr.bf16.mxu0 %v4171_v37  ;;  %v4250_v36 = vld [vmem:[%s5601_s1 + $0x300] sm:$0xff]   ;;  %v4247_v37 = vld [vmem:[%s5602_s0 + $0x28] ss:$72 sps:$4 sm:$0xff]  }
  0x64   :  { %3685 = vmatprep.subr.bf16.mxu0 %v4174_v38  ;;  %2368 = vmatmul.mubr.bf16.vlgmr.msra.gmra.mrb[32].mxu1 %v4167_v39  ;;  %v4251_v38 = vld [vmem:[%s5602_s0 + $0xb4] ss:$72 sps:$4 sm:$0xff]   ;;  %v4254_v39 = vld [vmem:[%s5601_s1 + $0x348] sm:$0xff]  }
  0x65   :  { %2375 = vmatprep.mubr.bf16.mxu1 %v4175_v40  ;;  %3748 = vmatpush3.bf16.msra.mxu1 %v4204_v54  ;;  %v4255_v40 = vld [vmem:[%s5602_s0 + $0xbc] ss:$72 sps:$4 sm:$0xff]  }
  0x66   :  { %3749 = vmatprep.subr.bf16.mxu1 %v4205_v55  ;;  %v4278_v54 = vld [vmem:[%s5601_s1 + $0x360] sm:$0xff]   ;;  %v4295_v55 = vld [vmem:[%s5601_s1 + $0x3d0] sm:$0xff]  }
  0x67   :  { %3686 = vmatpush3.bf16.msra.mxu0 %v4177_v41  ;;  %v4257_v41 = vld [vmem:[%s5601_s1 + $0x308] sm:$0xff]  }
  0x68   :  { %3687 = vmatprep.subr.bf16.mxu0 %v4182_v42  ;;  %v4283_v42 = vld [vmem:[%s5601_s1 + $0x3c0] sm:$0xff]  }
  0x69   :  { %3750 = vmatpush3.bf16.msra.mxu1 %v4208_v58  ;;  %v4261_v58 = vld [vmem:[%s5602_s0 + $0x140] ss:$72 sps:$4 sm:$0xff]  }
  0x6a   :  { %2279 = vmatmul.mubr.bf16.gmra.mrb[36].mxu0 %v4173_v43  ;;  %3751 = vmatprep.subr.bf16.mxu1 %v4215_v0  ;;  %v4284_v43 = vld [vmem:[%s5601_s1 + $0x380] sm:$0xff]   ;;  %v4290_v0 = vld [vmem:[%s5601_s1 + $0x368] sm:$0xff]  }
  0x6b   :  { %2286 = vmatprep.mubr.bf16.mxu0 %v4179_v44  ;;  %3688 = vmatpush3.bf16.msra.mxu0 %v4185_v45  ;;  %v4285_v44 = vld [vmem:[%s5601_s1 + $0x3c8] sm:$0xff]   ;;  %v4253_v45 = vld [vmem:[%s5602_s0 + $0xb0] ss:$72 sps:$4 sm:$0xff]  }
  0x6c   :  { %3689 = vmatprep.subr.bf16.mxu0 %v4190_v46  ;;  %2376 = vmatmul.mubr.bf16.gmra.mrb[36].mxu1 %v4178_v47  ;;  %v4262_v46 = vld [vmem:[%s5601_s1 + $0x350] sm:$0xff]   ;;  %v4259_v47 = vld [vmem:[%s5602_s0 + $0x144] ss:$72 sps:$4 sm:$0xff]  }
  0x6d   :  { %2383 = vmatprep.mubr.bf16.mxu1 %v4183_v48  ;;  %3752 = vmatpush3.bf16.msra.mxu1 %v4216_v1  ;;  %v4288_v48 = vld [vmem:[%s5601_s1 + $0x388] sm:$0xff]  }
  0x6e   :  { %3753 = vmatprep.subr.bf16.mxu1 %v4217_v2  ;;  %v4293_v1 = vld [vmem:[%s5601_s1 + $0x328] sm:$0xff]   ;;  %v4302_v2 = vld [vmem:[%s5601_s1 + $0x370] sm:$0xff]  }
  0x6f   :  { %3690 = vmatpush3.bf16.msra.mxu0 %v4193_v49  ;;  %v4258_v49 = vld [vmem:[%s5602_s0 + $0xb8] ss:$72 sps:$4 sm:$0xff]  }
  0x70   :  { %3691 = vmatprep.subr.bf16.mxu0 %v4198_v50  ;;  %v4265_v50 = vld [vmem:[%s5601_s1 + $0x310] sm:$0xff]  }
  0x71   :  { %3754 = vmatpush3.bf16.msra.mxu1 %v4220_v5  ;;  %v4308_v5 = vld [vmem:[%s5601_s1 + $0x3a0] sm:$0xff]  }
  0x72   :  { %2287 = vmatmul.mubr.bf16.gmra.mrb[40].mxu0 %v4181_v51  ;;  %3755 = vmatprep.subr.bf16.mxu1 %v4227_v10  ;;  %v4270_v51 = vld [vmem:[%s5601_s1 + $0x358] sm:$0xff]  }
  0x73   :  { %2294 = vmatprep.mubr.bf16.mxu0 %v4187_v53  ;;  %3692 = vmatpush3.bf16.msra.mxu0 %v4201_v56  ;;  %v4273_v53 = vld [vmem:[%s5601_s1 + $0x318] sm:$0xff]   ;;  %v4296_v56 = vld [vmem:[%s5601_s1 + $0x390] sm:$0xff]  }
  0x74   :  { %3693 = vmatprep.subr.bf16.mxu0 %v4210_v59  ;;  %2384 = vmatmul.mubr.bf16.gmra.mrb[40].mxu1 %v4186_v57  ;;  %v4297_v57 = vld [vmem:[%s5601_s1 + $0x3d8] sm:$0xff]  }
  0x75   :  { %2391 = vmatprep.mubr.bf16.mxu1 %v4191_v60  ;;  %3756 = vmatpush3.bf16.msra.mxu1 %v4228_v11  ;;  %v4267_v59 = vld [vmem:[%s5602_s0 + $0x1d4] ss:$72 sps:$4 sm:$0xff]   ;;  %v4274_v11 = vld [vmem:[%s5602_s0 + $0x1d8] ss:$72 sps:$4 sm:$0xff]  }
  0x76   :  { %3757 = vmatprep.subr.bf16.mxu1 %v4229_v12  ;;  %v4300_v60 = vld [vmem:[%s5601_s1 + $0x398] sm:$0xff]   ;;  %v4279_v12 = vld [vmem:[%s5602_s0 + $0x26c] ss:$72 sps:$4 sm:$0xff]  }
  0x77   :  { %3694 = vmatpush3.bf16.msra.mxu0 %v4213_v61  ;;  %v4266_v61 = vld [vmem:[%s5602_s0 + $0x148] ss:$72 sps:$4 sm:$0xff]   ;;  %v4314_v10 = vld [vmem:[%s5601_s1 + $0x378] sm:$0xff]  }
  0x78   :  { %3695 = vmatprep.subr.bf16.mxu0 %v4222_v6  ;;  %v4309_v6 = vld [vmem:[%s5601_s1 + $0x3e8] sm:$0xff]  }
  0x79   :  { %3758 = vmatpush3.bf16.msra.mxu1 %v4232_v14  ;;  %v4319_v14 = vld [vmem:[%s5601_s1 + $0x3f0] sm:$0xff]  }
  0x7a   :  { %2295 = vmatmul.mubr.bf16.gmra.mrb[44].mxu0 %v4189_v62  ;;  %3759 = vmatprep.subr.bf16.mxu1 %v4239_v20  ;;  %v4281_v62 = vld [vmem:[%s5601_s1 + $0x320] sm:$0xff]   ;;  %v4325_v20 = vld [vmem:[%s5601_s1 + $0x3b8] sm:$0xff]  }
  0x7b   :  { %2302 = vmatprep.mubr.bf16.mxu0 %v4195_v63  ;;  %3696 = vmatpush3.bf16.msra.mxu0 %v4225_v8  ;;  %v4271_v63 = vld [vmem:[%s5602_s0 + $0x1dc] ss:$72 sps:$4 sm:$0xff]   ;;  %v4305_v8 = vld [vmem:[%s5601_s1 + $0x330] sm:$0xff]  }
  0x7c   :  { %2392 = vmatmul.mubr.bf16.gmra.mrb[44].mxu1 %v4194_v3  ;;  %3697 = vmatprep.subr.bf16.mxu0 %v4234_v16  ;;  %v4307_v3 = vld [vmem:[%s5601_s1 + $0x3e0] sm:$0xff]   ;;  %v4321_v16 = vld [vmem:[%s5601_s1 + $0x3f8] sm:$0xff]  }
  0x7d   :  { %2399 = vmatprep.mubr.bf16.mxu1 %v4199_v4  ;;  %3760 = vmatpush3.bf16.msra.mxu1 %v4240_v21  ;;  %v4269_v4 = vld [vmem:[%s5602_s0 + $0x1d0] ss:$72 sps:$4 sm:$0xff]   ;;  %v4326_v21 = vld [vmem:[%s5601_s1 + $0x440] sm:$0xff]  }
  0x7e   :  { %3761 = vmatprep.subr.bf16.mxu1 %v4241_v22  ;;  %v4291_v22 = vld [vmem:[%s5602_s0 + $0x2fc] ss:$72 sps:$4 sm:$0xff]  }
  0x7f   :  { %3698 = vmatpush3.bf16.msra.mxu0 %v4237_v19  ;;  %v4286_v19 = vld [vmem:[%s5602_s0 + $0x2f4] ss:$72 sps:$4 sm:$0xff]  }
  0x80   :  { %3811 = vmatprep.subr.bf16.mxu0 %v4246_v26  ;;  %v4303_v26 = vld [vmem:[%s5602_s0 + $0x38c] ss:$72 sps:$4 sm:$0xff]  }
  0x81   :  { %3762 = vmatpush3.bf16.msra.mxu1 %v4245_v25  ;;  %v4294_v25 = vld [vmem:[%s5602_s0 + $0x2f8] ss:$72 sps:$4 sm:$0xff]  }
  0x82   :  { %2303 = vmatmul.mubr.bf16.gmra.mrb[48].mxu0 %v4197_v7  ;;  %3875 = vmatprep.subr.bf16.mxu1 %v4283_v42  ;;  %v4275_v7 = vld [vmem:[%s5602_s0 + $0x264] ss:$72 sps:$4 sm:$0xff]   ;;  %v4342_v42 = vld [vmem:[%s5601_s1 + $0x450] sm:$0xff]  }
  0x83   :  { %2310 = vmatprep.mubr.bf16.mxu0 %v4206_v9  ;;  %v4312_v9 = vld [vmem:[%s5601_s1 + $0x3a8] sm:$0xff]  }
  0x84   :  { %2400 = vmatmul.mubr.bf16.gmra.mrb[48].mxu1 %v4202_v13  ;;  %v4317_v13 = vld [vmem:[%s5601_s1 + $0x338] sm:$0xff]  }
  0x85   :  { %2407 = vmatprep.mubr.bf16.mxu1 %v4211_v15  ;;  %v4320_v15 = vld [vmem:[%s5601_s1 + $0x3b0] sm:$0xff]  }
  0x8a   :  { %2311 = vmatmul.mubr.bf16.gmra.mrb[52].mxu0 %v4209_v17  ;;  %v4277_v17 = vld [vmem:[%s5602_s0 + $0x260] ss:$72 sps:$4 sm:$0xff]  }
  0x8b   :  { %2318 = vmatprep.mubr.bf16.mxu0 %v4218_v18  ;;  %v4282_v18 = vld [vmem:[%s5602_s0 + $0x268] ss:$72 sps:$4 sm:$0xff]  }
  0x8c   :  { %2408 = vmatmul.mubr.bf16.gmra.mrb[52].mxu1 %v4214_v23  ;;  %v4289_v23 = vld [vmem:[%s5602_s0 + $0x2f0] ss:$72 sps:$4 sm:$0xff]  }
  0x8d   :  { %2415 = vmatprep.mubr.bf16.mxu1 %v4223_v24  ;;  %v4298_v24 = vld [vmem:[%s5602_s0 + $0x384] ss:$72 sps:$4 sm:$0xff]  }
  0x92   :  { %2319 = vmatmul.mubr.bf16.gmra.mrb[56].mxu0 %v4221_v27  ;;  %v4301_v27 = vld [vmem:[%s5602_s0 + $0x380] ss:$72 sps:$4 sm:$0xff]  }
  0x93   :  { %2326 = vmatprep.mubr.bf16.mxu0 %v4230_v28  ;;  %v4310_v28 = vld [vmem:[%s5602_s0 + $0x414] ss:$72 sps:$4 sm:$0xff]  }
  0x94   :  { %2416 = vmatmul.mubr.bf16.gmra.mrb[56].mxu1 %v4226_v29  ;;  %v4306_v29 = vld [vmem:[%s5602_s0 + $0x388] ss:$72 sps:$4 sm:$0xff]  }
  0x95   :  { %2423 = vmatprep.mubr.bf16.mxu1 %v4235_v30  ;;  %v4315_v30 = vld [vmem:[%s5602_s0 + $0x41c] ss:$72 sps:$4 sm:$0xff]  }
  0x9a   :  { %2327 = vmatmul.mubr.bf16.gmra.mrb[60].mxu0 %v4233_v31  ;;  %v4313_v31 = vld [vmem:[%s5602_s0 + $0x410] ss:$72 sps:$4 sm:$0xff]  }
  0x9b   :  { %2464 = vmatprep.mubr.bf16.mxu0 %v4244_v32  ;;  %v4324_v32 = vld [vmem:[%s5602_s0 + $0x34] ss:$72 sps:$4 sm:$0xff]  }
  0x9c   :  { %2424 = vmatmul.mubr.bf16.gmra.mrb[60].mxu1 %v4238_v33  ;;  %v4318_v33 = vld [vmem:[%s5602_s0 + $0x418] ss:$72 sps:$4 sm:$0xff]  }
  0x9d   :  { %2561 = vmatprep.mubr.bf16.mxu1 %v4249_v34  ;;  %v4329_v34 = vld [vmem:[%s5602_s0 + $0x3c] ss:$72 sps:$4 sm:$0xff]  }
  0xa2   :  { %2465 = vmatmul.mubr.bf16.vlgmr.msra.gmra.mrb[64].mxu0 %v4242_v35  ;;  %v4322_v35 = vld [vmem:[%s5602_s0 + $0x30] ss:$72 sps:$4 sm:$0xff]  }
  0xa3   :  { %3812 = vmatpush3.bf16.msra.mxu0 %v4250_v36  ;;  %2472 = vmatprep.mubr.bf16.mxu0 %v4251_v38  ;;  %v4330_v36 = vld [vmem:[%s5601_s1 + $0x400] sm:$0xff]   ;;  %v4334_v38 = vld [vmem:[%s5601_s1 + $0x448] sm:$0xff]  }
  0xa4   :  { %3813 = vmatprep.subr.bf16.mxu0 %v4254_v39  ;;  %2562 = vmatmul.mubr.bf16.vlgmr.msra.gmra.mrb[64].mxu1 %v4247_v37  ;;  %v4331_v37 = vld [vmem:[%s5602_s0 + $0xc4] ss:$72 sps:$4 sm:$0xff]   ;;  %v4327_v39 = vld [vmem:[%s5602_s0 + $0x38] ss:$72 sps:$4 sm:$0xff]  }
  0xa5   :  { %2569 = vmatprep.mubr.bf16.mxu1 %v4255_v40  ;;  %3876 = vmatpush3.bf16.msra.mxu1 %v4284_v43  ;;  %v4335_v40 = vld [vmem:[%s5602_s0 + $0xcc] ss:$72 sps:$4 sm:$0xff]   ;;  %v4333_v43 = vld [vmem:[%s5602_s0 + $0xc0] ss:$72 sps:$4 sm:$0xff]  }
  0xa6   :  { %3877 = vmatprep.subr.bf16.mxu1 %v4285_v44  ;;  %v4339_v44 = vld [vmem:[%s5602_s0 + $0x154] ss:$72 sps:$4 sm:$0xff]  }
  0xa7   :  { %3814 = vmatpush3.bf16.msra.mxu0 %v4257_v41  ;;  %v4337_v41 = vld [vmem:[%s5601_s1 + $0x408] sm:$0xff]  }
  0xa8   :  { %3815 = vmatprep.subr.bf16.mxu0 %v4262_v46  ;;  %v4350_v46 = vld [vmem:[%s5601_s1 + $0x458] sm:$0xff]  }
  0xa9   :  { %3878 = vmatpush3.bf16.msra.mxu1 %v4288_v48  ;;  %v4343_v48 = vld [vmem:[%s5602_s0 + $0x15c] ss:$72 sps:$4 sm:$0xff]  }
  0xaa   :  { %2473 = vmatmul.mubr.bf16.gmra.mrb[68].mxu0 %v4253_v45  ;;  %3879 = vmatprep.subr.bf16.mxu1 %v4295_v55  ;;  %v4345_v45 = vld [vmem:[%s5601_s1 + $0x410] sm:$0xff]   ;;  %v4346_v55 = vld [vmem:[%s5602_s0 + $0x158] ss:$72 sps:$4 sm:$0xff]  }
  0xab   :  { %2480 = vmatprep.mubr.bf16.mxu0 %v4259_v47  ;;  %3816 = vmatpush3.bf16.msra.mxu0 %v4265_v50  ;;  %v4338_v47 = vld [vmem:[%s5602_s0 + $0xc8] ss:$72 sps:$4 sm:$0xff]   ;;  %v4358_v50 = vld [vmem:[%s5601_s1 + $0x460] sm:$0xff]  }
  0xac   :  { %3817 = vmatprep.subr.bf16.mxu0 %v4270_v51  ;;  %2570 = vmatmul.mubr.bf16.gmra.mrb[68].mxu1 %v4258_v49  ;;  %v4353_v49 = vld [vmem:[%s5601_s1 + $0x418] sm:$0xff]  }
  0xad   :  { %2577 = vmatprep.mubr.bf16.mxu1 %v4263_v52  ;;  %3880 = vmatpush3.bf16.msra.mxu1 %v4296_v56  ;;  %v4341_v51 = vld [vmem:[%s5602_s0 + $0x150] ss:$72 sps:$4 sm:$0xff]   ;;  %v4347_v52 = vld [vmem:[%s5602_s0 + $0x1e4] ss:$72 sps:$4 sm:$0xff]  }
  0xae   :  { %3881 = vmatprep.subr.bf16.mxu1 %v4297_v57  ;;  %v4351_v56 = vld [vmem:[%s5602_s0 + $0x1ec] ss:$72 sps:$4 sm:$0xff]  }
  0xaf   :  { %3818 = vmatpush3.bf16.msra.mxu0 %v4273_v53  ;;  %v4361_v53 = vld [vmem:[%s5601_s1 + $0x420] sm:$0xff]   ;;  %v4369_v57 = vld [vmem:[%s5601_s1 + $0x428] sm:$0xff]  }
  0xb0   :  { %3819 = vmatprep.subr.bf16.mxu0 %v4278_v54  ;;  %v4366_v54 = vld [vmem:[%s5601_s1 + $0x468] sm:$0xff]  }
  0xb1   :  { %3882 = vmatpush3.bf16.msra.mxu1 %v4300_v60  ;;  %v5205_v60 = vld [vmem:[%s5603_s3] ss:$0 sm:$0xff] }
  0xb2   :  { %2481 = vmatmul.mubr.bf16.gmra.mrb[72].mxu0 %v4261_v58  ;;  %3883 = vmatprep.subr.bf16.mxu1 %v4307_v3  ;;  %v4374_v58 = vld [vmem:[%s5601_s1 + $0x470] sm:$0xff]  }
  0xb3   :  { %2488 = vmatprep.mubr.bf16.mxu0 %v4267_v59  ;;  %3820 = vmatpush3.bf16.msra.mxu0 %v4281_v62  ;;  %v4349_v62 = vld [vmem:[%s5602_s0 + $0x1e0] ss:$72 sps:$4 sm:$0xff]  }
  0xb4   :  { %3821 = vmatprep.subr.bf16.mxu0 %v4290_v0  ;;  %2578 = vmatmul.mubr.bf16.gmra.mrb[72].mxu1 %v4266_v61 }
  0xb5   :  { %2585 = vmatprep.mubr.bf16.mxu1 %v4271_v63  ;;  %3884 = vmatpush3.bf16.msra.mxu1 %v4308_v5  ;;  %v4382_v5 = vld [vmem:[%s5601_s1 + $0x478] sm:$0xff]  }
  0xb6   :  { %3885 = vmatprep.subr.bf16.mxu1 %v4309_v6 }
  0xb7   :  { %3822 = vmatpush3.bf16.msra.mxu0 %v4293_v1  ;;  %v4355_v1 = vld [vmem:[%s5602_s0 + $0x274] ss:$72 sps:$4 sm:$0xff]  }
  0xb8   :  { %3823 = vmatprep.subr.bf16.mxu0 %v4302_v2  ;;  %v4377_v2 = vld [vmem:[%s5601_s1 + $0x430] sm:$0xff]  }
  0xb9   :  { %3886 = vmatpush3.bf16.msra.mxu1 %v4312_v9  ;;  %v4354_v9 = vld [vmem:[%s5602_s0 + $0x1e8] ss:$72 sps:$4 sm:$0xff]  }
  0xba   :  { %2489 = vmatmul.mubr.bf16.gmra.mrb[76].mxu0 %v4269_v4  ;;  %3887 = vmatprep.subr.bf16.mxu1 %v4319_v14 }
  0xbb   :  { %2496 = vmatprep.mubr.bf16.mxu0 %v4275_v7  ;;  %3824 = vmatpush3.bf16.msra.mxu0 %v4305_v8 }
  0xbc   :  { %3825 = vmatprep.subr.bf16.mxu0 %v4314_v10  ;;  %2586 = vmatmul.mubr.bf16.gmra.mrb[76].mxu1 %v4274_v11 }
  0xbd   :  { %2593 = vmatprep.mubr.bf16.mxu1 %v4279_v12  ;;  %3888 = vmatpush3.bf16.msra.mxu1 %v4320_v15  ;;  %v4359_v12 = vld [vmem:[%s5602_s0 + $0x27c] ss:$72 sps:$4 sm:$0xff]  }
  0xbe   :  { %3889 = vmatprep.subr.bf16.mxu1 %v4321_v16  ;;  %v4385_v15 = vld [vmem:[%s5601_s1 + $0x438] sm:$0xff]  }
  0xbf   :  { %3826 = vmatpush3.bf16.msra.mxu0 %v4317_v13 }
  0xc0   :  { %3939 = vmatprep.subr.bf16.mxu0 %v4326_v21  ;;  %v4357_v21 = vld [vmem:[%s5602_s0 + $0x270] ss:$72 sps:$4 sm:$0xff]  }
  0xc1   :  { %3890 = vmatpush3.bf16.msra.mxu1 %v4325_v20 }
  0xc2   :  { %2497 = vmatmul.mubr.bf16.gmra.mrb[80].mxu0 %v4277_v17 }
  0xc3   :  { %2504 = vmatprep.mubr.bf16.mxu0 %v4286_v19 }
  0xc4   :  { %2594 = vmatmul.mubr.bf16.gmra.mrb[80].mxu1 %v4282_v18 }
  0xc5   :  { %2601 = vmatprep.mubr.bf16.mxu1 %v4291_v22 }
  0xca   :  { %2505 = vmatmul.mubr.bf16.gmra.mrb[84].mxu0 %v4289_v23 }
  0xcb   :  { %2512 = vmatprep.mubr.bf16.mxu0 %v4298_v24  ;;  %v4363_v24 = vld [vmem:[%s5602_s0 + $0x304] ss:$72 sps:$4 sm:$0xff]  }
  0xcc   :  { %2602 = vmatmul.mubr.bf16.gmra.mrb[84].mxu1 %v4294_v25 }
  0xcd   :  { %2609 = vmatprep.mubr.bf16.mxu1 %v4303_v26 }
  0xd2   :  { %2513 = vmatmul.mubr.bf16.gmra.mrb[88].mxu0 %v4301_v27 }
  0xd3   :  { %2520 = vmatprep.mubr.bf16.mxu0 %v4310_v28 }
  0xd4   :  { %2610 = vmatmul.mubr.bf16.gmra.mrb[88].mxu1 %v4306_v29 }
  0xd5   :  { %2617 = vmatprep.mubr.bf16.mxu1 %v4315_v30  ;;  %v4362_v30 = vld [vmem:[%s5602_s0 + $0x278] ss:$72 sps:$4 sm:$0xff]  }
  0xda   :  { %2521 = vmatmul.mubr.bf16.gmra.mrb[92].mxu0 %v4313_v31 }
  0xdb   :  { %2658 = vmatprep.mubr.bf16.mxu0 %v4324_v32 }
  0xdc   :  { %2618 = vmatmul.mubr.bf16.gmra.mrb[92].mxu1 %v4318_v33  ;;  %v4367_v33 = vld [vmem:[%s5602_s0 + $0x30c] ss:$72 sps:$4 sm:$0xff]  }
  0xdd   :  { %2755 = vmatprep.mubr.bf16.mxu1 %v4329_v34 }
  0xe2   :  { %2659 = vmatmul.mubr.bf16.vlgmr.msra.gmra.mrb[96].mxu0 %v4322_v35 }
  0xe3   :  { %3940 = vmatpush3.bf16.msra.mxu0 %v4330_v36  ;;  %2666 = vmatprep.mubr.bf16.mxu0 %v4331_v37 }
  0xe4   :  { %3941 = vmatprep.subr.bf16.mxu0 %v4334_v38  ;;  %2756 = vmatmul.mubr.bf16.vlgmr.msra.gmra.mrb[96].mxu1 %v4327_v39 }
  0xe5   :  { %2763 = vmatprep.mubr.bf16.mxu1 %v4335_v40 }
  0xe7   :  { %3942 = vmatpush3.bf16.msra.mxu0 %v4337_v41  ;;  %v4365_v41 = vld [vmem:[%s5602_s0 + $0x300] ss:$72 sps:$4 sm:$0xff]  }
  0xe8   :  { %3943 = vmatprep.subr.bf16.mxu0 %v4342_v42 }
  0xea   :  { %2667 = vmatmul.mubr.bf16.gmra.mrb[100].mxu0 %v4333_v43 }
  0xeb   :  { %2674 = vmatprep.mubr.bf16.mxu0 %v4339_v44  ;;  %3944 = vmatpush3.bf16.msra.mxu0 %v4345_v45  ;;  %v4371_v44 = vld [vmem:[%s5602_s0 + $0x394] ss:$72 sps:$4 sm:$0xff]  }
  0xec   :  { %3945 = vmatprep.subr.bf16.mxu0 %v4350_v46  ;;  %2764 = vmatmul.mubr.bf16.gmra.mrb[100].mxu1 %v4338_v47 }
  0xed   :  { %2771 = vmatprep.mubr.bf16.mxu1 %v4343_v48 }
  0xef   :  { %3946 = vmatpush3.bf16.msra.mxu0 %v4353_v49 }
  0xf0   :  { %3947 = vmatprep.subr.bf16.mxu0 %v4358_v50  ;;  %v4370_v50 = vld [vmem:[%s5602_s0 + $0x308] ss:$72 sps:$4 sm:$0xff]  }
  0xf2   :  { %2675 = vmatmul.mubr.bf16.gmra.mrb[104].mxu0 %v4341_v51 }
  0xf3   :  { %2682 = vmatprep.mubr.bf16.mxu0 %v4347_v52  ;;  %3948 = vmatpush3.bf16.msra.mxu0 %v4361_v53  ;;  %v4375_v53 = vld [vmem:[%s5602_s0 + $0x39c] ss:$72 sps:$4 sm:$0xff]  }
  0xf4   :  { %3949 = vmatprep.subr.bf16.mxu0 %v4366_v54  ;;  %2772 = vmatmul.mubr.bf16.gmra.mrb[104].mxu1 %v4346_v55 }
  0xf5   :  { %v3443_v59 = vpop.f32.mrb[0].mxu0  ;;  %2779 = vmatprep.mubr.bf16.mxu1 %v4351_v56 }
  0xf6   :  { %v3444_v61 = vpop.f32.mrb[1].mxu0 }
  0xf7   :  { %v3445_v63 = vadd.f32 %v3444_v61, %v3443_v59  ;;  %v3446_v0 = vpop.f32.mrb[2].mxu0  ;;  %3950 = vmatpush3.bf16.msra.mxu0 %v4369_v57  ;;  %v3507_v3 = vpop.f32.mrb[0].mxu1 }
  0xf8   :  { %v3447_v4 = vpop.f32.mrb[3].mxu0  ;;  %3951 = vmatprep.subr.bf16.mxu0 %v4374_v58  ;;  %v3508_v8 = vpop.f32.mrb[1].mxu1 }
  0xf9   :  { %v2079_v6 = vadd.f32 %v3445_v63, %v5205_v60  ;;  %v3448_v7 = vadd.f32 %v3447_v4, %v3446_v0  ;;  %v3509_v10 = vadd.f32 %v3508_v8, %v3507_v3  ;;  %v3510_v11 = vpop.f32.mrb[2].mxu1 }
  0xfa   :  { %2683 = vmatmul.mubr.bf16.gmra.mrb[108].mxu0 %v4349_v62  ;;  %v3511_v14 = vpop.f32.mrb[3].mxu1  ;;  %v4373_v62 = vld [vmem:[%s5602_s0 + $0x390] ss:$72 sps:$4 sm:$0xff]  }
  0xfb   :  { %v2082_v13 = vadd.f32 %v3448_v7, %v5205_v60  ;;  %2690 = vmatprep.mubr.bf16.mxu0 %v4355_v1  ;;  %3952 = vmatpush3.bf16.msra.mxu0 %v4377_v2  ;;  %v5230_v16 = vadd.f32 %v3509_v10, %v2079_v6  ;;  %v3512_v17 = vadd.f32 %v3511_v14, %v3510_v11  ;;  %v4379_v1 = vld [vmem:[%s5602_s0 + $0x424] ss:$72 sps:$4 sm:$0xff]   ;;  %v4378_v7 = vld [vmem:[%s5602_s0 + $0x398] ss:$72 sps:$4 sm:$0xff]  }
  0xfc   :  { %3953 = vmatprep.subr.bf16.mxu0 %v4382_v5  ;;  %2780 = vmatmul.mubr.bf16.gmra.mrb[108].mxu1 %v4354_v9  ;;  %v4383_v10 = vld [vmem:[%s5602_s0 + $0x42c] ss:$72 sps:$4 sm:$0xff]  }
  0xfd   :  { %v3449_v18 = vpop.f32.mrb[4].mxu0  ;;  %v5232_v19 = vadd.f32 %v3512_v17, %v2082_v13  ;;  %2787 = vmatprep.mubr.bf16.mxu1 %v4359_v12 }
  0xfe   :  { %v3450_v20 = vpop.f32.mrb[5].mxu0 }
  0xff   :  { %v3451_v22 = vadd.f32 %v3450_v20, %v3449_v18  ;;  %v3452_v23 = vpop.f32.mrb[6].mxu0  ;;  %3954 = vmatpush3.bf16.msra.mxu0 %v4385_v15  ;;  %v3513_v25 = vpop.f32.mrb[4].mxu1  ;;  %v4381_v20 = vld [vmem:[%s5602_s0 + $0x420] ss:$72 sps:$4 sm:$0xff]  }
 0x100   :  { %v3453_v26 = vpop.f32.mrb[7].mxu0  ;;  %v3514_v29 = vpop.f32.mrb[5].mxu1 }
 0x101   :  { %v2087_v27 = vadd.f32 %v3451_v22, %v5205_v60  ;;  %v3454_v28 = vadd.f32 %v3453_v26, %v3452_v23  ;;  %v3515_v31 = vadd.f32 %v3514_v29, %v3513_v25  ;;  %v3516_v32 = vpop.f32.mrb[6].mxu1  ;;  %v4389_v23 = vld [vmem:[%s5602_s0 + $0x44] ss:$72 sps:$4 sm:$0xff]   ;;  %v4386_v29 = vld [vmem:[%s5602_s0 + $0x428] ss:$72 sps:$4 sm:$0xff]  }
 0x102   :  { %2691 = vmatmul.mubr.bf16.gmra.mrb[112].mxu0 %v4357_v21  ;;  %v3517_v35 = vpop.f32.mrb[7].mxu1 }
 0x103   :  { %v2090_v34 = vadd.f32 %v3454_v28, %v5205_v60  ;;  %2698 = vmatprep.mubr.bf16.mxu0 %v4363_v24  ;;  %v5248_v36 = vadd.f32 %v3515_v31, %v2087_v27  ;;  %v3518_v37 = vadd.f32 %v3517_v35, %v3516_v32 }
 0x104   :  { %2788 = vmatmul.mubr.bf16.gmra.mrb[112].mxu1 %v4362_v30 }
 0x105   :  { %v3455_v38 = vpop.f32.mrb[8].mxu0  ;;  %v5250_v39 = vadd.f32 %v3518_v37, %v2090_v34  ;;  %2795 = vmatprep.mubr.bf16.mxu1 %v4367_v33 }
 0x106   :  { %v3456_v40 = vpop.f32.mrb[9].mxu0 }
 0x107   :  { %v3457_v42 = vadd.f32 %v3456_v40, %v3455_v38  ;;  %v3458_v43 = vpop.f32.mrb[10].mxu0  ;;  %v3519_v45 = vpop.f32.mrb[8].mxu1 }
 0x108   :  { %v3459_v46 = vpop.f32.mrb[11].mxu0  ;;  %v3520_v49 = vpop.f32.mrb[9].mxu1 }
 0x109   :  { %v2095_v47 = vadd.f32 %v3457_v42, %v5205_v60  ;;  %v3460_v48 = vadd.f32 %v3459_v46, %v3458_v43  ;;  %v3521_v51 = vadd.f32 %v3520_v49, %v3519_v45  ;;  %v3522_v52 = vpop.f32.mrb[10].mxu1 }
 0x10a   :  { %2699 = vmatmul.mubr.bf16.gmra.mrb[116].mxu0 %v4365_v41  ;;  %v3523_v55 = vpop.f32.mrb[11].mxu1  ;;  %v4387_v41 = vld [vmem:[%s5602_s0 + $0x40] ss:$72 sps:$4 sm:$0xff]  }
 0x10b   :  { %v2098_v54 = vadd.f32 %v3460_v48, %v5205_v60  ;;  %2706 = vmatprep.mubr.bf16.mxu0 %v4371_v44  ;;  %v5266_v56 = vadd.f32 %v3521_v51, %v2095_v47  ;;  %v3524_v57 = vadd.f32 %v3523_v55, %v3522_v52  ;;  %v4390_v44 = vld [vmem:[%s5602_s0 + $0xd4] ss:$72 sps:$4 sm:$0xff]  }
 0x10c   :  { %2796 = vmatmul.mubr.bf16.gmra.mrb[116].mxu1 %v4370_v50 }
 0x10d   :  { %v3461_v58 = vpop.f32.mrb[12].mxu0  ;;  %v5268_v59 = vadd.f32 %v3524_v57, %v2098_v54  ;;  %2803 = vmatprep.mubr.bf16.mxu1 %v4375_v53 }
 0x10e   :  { %v3462_v61 = vpop.f32.mrb[13].mxu0 }
 0x10f   :  { %v3463_v63 = vadd.f32 %v3462_v61, %v3461_v58  ;;  %v3464_v0 = vpop.f32.mrb[14].mxu0  ;;  %v3525_v2 = vpop.f32.mrb[12].mxu1 }
 0x110   :  { %v3465_v3 = vpop.f32.mrb[15].mxu0  ;;  %v3526_v6 = vpop.f32.mrb[13].mxu1 }
 0x111   :  { %v2103_v4 = vadd.f32 %v3463_v63, %v5205_v60  ;;  %v3466_v5 = vadd.f32 %v3465_v3, %v3464_v0  ;;  %v3527_v8 = vadd.f32 %v3526_v6, %v3525_v2  ;;  %v3528_v9 = vpop.f32.mrb[14].mxu1 }
 0x112   :  { %2707 = vmatmul.mubr.bf16.gmra.mrb[120].mxu0 %v4373_v62  ;;  %v3529_v12 = vpop.f32.mrb[15].mxu1  ;;  %v4392_v62 = vld [vmem:[%s5602_s0 + $0xd0] ss:$72 sps:$4 sm:$0xff]  }
 0x113   :  { %v2106_v11 = vadd.f32 %v3466_v5, %v5205_v60  ;;  %2714 = vmatprep.mubr.bf16.mxu0 %v4379_v1  ;;  %v5284_v13 = vadd.f32 %v3527_v8, %v2103_v4  ;;  %v3530_v14 = vadd.f32 %v3529_v12, %v3528_v9  ;;  %v4393_v1 = vld [vmem:[%s5602_s0 + $0x164] ss:$72 sps:$4 sm:$0xff]  }
 0x114   :  { %2804 = vmatmul.mubr.bf16.gmra.mrb[120].mxu1 %v4378_v7 }
 0x115   :  { %v3467_v15 = vpop.f32.mrb[16].mxu0  ;;  %v5286_v17 = vadd.f32 %v3530_v14, %v2106_v11  ;;  %2811 = vmatprep.mubr.bf16.mxu1 %v4383_v10 }
 0x116   :  { %v3468_v18 = vpop.f32.mrb[17].mxu0 }
 0x117   :  { %v3469_v21 = vadd.f32 %v3468_v18, %v3467_v15  ;;  %v3470_v22 = vpop.f32.mrb[18].mxu0  ;;  %v3531_v24 = vpop.f32.mrb[16].mxu1 }
 0x118   :  { %v3471_v25 = vpop.f32.mrb[19].mxu0  ;;  %v3532_v28 = vpop.f32.mrb[17].mxu1 }
 0x119   :  { %v2111_v26 = vadd.f32 %v3469_v21, %v5205_v60  ;;  %v3472_v27 = vadd.f32 %v3471_v25, %v3470_v22  ;;  %v3533_v30 = vadd.f32 %v3532_v28, %v3531_v24  ;;  %v3534_v31 = vpop.f32.mrb[18].mxu1 }
 0x11a   :  { %2715 = vmatmul.mubr.bf16.gmra.mrb[124].mxu0 %v4381_v20  ;;  %v3535_v33 = vpop.f32.mrb[19].mxu1  ;;  %v4395_v20 = vld [vmem:[%s5602_s0 + $0x160] ss:$72 sps:$4 sm:$0xff]  }
 0x11b   :  { %v2114_v32 = vadd.f32 %v3472_v27, %v5205_v60  ;;  %2852 = vmatprep.mubr.bf16.mxu0 %v4389_v23  ;;  %v5299_v34 = vadd.f32 %v3533_v30, %v2111_v26  ;;  %v3536_v35 = vadd.f32 %v3535_v33, %v3534_v31  ;;  %v4396_v23 = vld [vmem:[%s5602_s0 + $0x1f4] ss:$72 sps:$4 sm:$0xff]  }
 0x11c   :  { %2812 = vmatmul.mubr.bf16.gmra.mrb[124].mxu1 %v4386_v29 }
 0x11d   :  { %v3473_v37 = vpop.f32.mrb[20].mxu0  ;;  %v5301_v38 = vadd.f32 %v3536_v35, %v2114_v32 }
 0x11e   :  { %v3474_v40 = vpop.f32.mrb[21].mxu0 }
 0x11f   :  { %v3475_v42 = vadd.f32 %v3474_v40, %v3473_v37  ;;  %v3476_v43 = vpop.f32.mrb[22].mxu0  ;;  %v3537_v45 = vpop.f32.mrb[20].mxu1 }
 0x120   :  { %v3477_v46 = vpop.f32.mrb[23].mxu0  ;;  %v3538_v49 = vpop.f32.mrb[21].mxu1 }
 0x121   :  { %v2119_v47 = vadd.f32 %v3475_v42, %v5205_v60  ;;  %v3478_v48 = vadd.f32 %v3477_v46, %v3476_v43  ;;  %v3539_v50 = vadd.f32 %v3538_v49, %v3537_v45  ;;  %v3540_v51 = vpop.f32.mrb[22].mxu1  ;;  %v4398_v42 = vld [vmem:[%s5602_s0 + $0x1f0] ss:$72 sps:$4 sm:$0xff]   ;;  %v4399_v45 = vld [vmem:[%s5602_s0 + $0x284] ss:$72 sps:$4 sm:$0xff]  }
 0x122   :  { %2853 = vmatmul.mubr.bf16.vlgmr.msra.gmra.mrb[128].mxu0 %v4387_v41  ;;  %v3541_v53 = vpop.f32.mrb[23].mxu1 }
 0x123   :  { %v2122_v52 = vadd.f32 %v3478_v48, %v5205_v60  ;;  %2860 = vmatprep.mubr.bf16.mxu0 %v4390_v44  ;;  %v5311_v54 = vadd.f32 %v3539_v50, %v2119_v47  ;;  %v3542_v55 = vadd.f32 %v3541_v53, %v3540_v51 }
 0x125   :  { %v3479_v57 = vpop.f32.mrb[24].mxu0  ;;  %v5313_v58 = vadd.f32 %v3542_v55, %v2122_v52 }
 0x126   :  { %v3480_v61 = vpop.f32.mrb[25].mxu0 }
 0x127   :  { %v3481_v63 = vadd.f32 %v3480_v61, %v3479_v57  ;;  %v3482_v0 = vpop.f32.mrb[26].mxu0  ;;  %v3543_v2 = vpop.f32.mrb[24].mxu1 }
 0x128   :  { %v3483_v3 = vpop.f32.mrb[27].mxu0  ;;  %v3544_v6 = vpop.f32.mrb[25].mxu1 }
 0x129   :  { %v2127_v4 = vadd.f32 %v3481_v63, %v5205_v60  ;;  %v3484_v5 = vadd.f32 %v3483_v3, %v3482_v0  ;;  %v3545_v7 = vadd.f32 %v3544_v6, %v3543_v2  ;;  %v3546_v8 = vpop.f32.mrb[26].mxu1  ;;  %v4402_v2 = vld [vmem:[%s5602_s0 + $0x314] ss:$72 sps:$4 sm:$0xff]  }
 0x12a   :  { %2861 = vmatmul.mubr.bf16.gmra.mrb[132].mxu0 %v4392_v62  ;;  %v3547_v10 = vpop.f32.mrb[27].mxu1 }
 0x12b   :  { %v2130_v9 = vadd.f32 %v3484_v5, %v5205_v60  ;;  %2868 = vmatprep.mubr.bf16.mxu0 %v4393_v1  ;;  %v5323_v11 = vadd.f32 %v3545_v7, %v2127_v4  ;;  %v3548_v12 = vadd.f32 %v3547_v10, %v3546_v8 }
 0x12d   :  { %v3485_v14 = vpop.f32.mrb[28].mxu0  ;;  %v5325_v15 = vadd.f32 %v3548_v12, %v2130_v9 }
 0x12e   :  { %v3486_v18 = vpop.f32.mrb[29].mxu0 }
 0x12f   :  { %v3487_v21 = vadd.f32 %v3486_v18, %v3485_v14  ;;  %v3488_v22 = vpop.f32.mrb[30].mxu0  ;;  %v3549_v24 = vpop.f32.mrb[28].mxu1 }
 0x130   :  { %v3489_v25 = vpop.f32.mrb[31].mxu0  ;;  %v3550_v28 = vpop.f32.mrb[29].mxu1 }
 0x131   :  { %v2135_v26 = vadd.f32 %v3487_v21, %v5205_v60  ;;  %v3490_v27 = vadd.f32 %v3489_v25, %v3488_v22  ;;  %v3551_v29 = vadd.f32 %v3550_v28, %v3549_v24  ;;  %v3552_v30 = vpop.f32.mrb[30].mxu1  ;;  %v4405_v24 = vld [vmem:[%s5602_s0 + $0x3a4] ss:$72 sps:$4 sm:$0xff]  }
 0x132   :  { %2869 = vmatmul.mubr.bf16.gmra.mrb[136].mxu0 %v4395_v20  ;;  %v3553_v32 = vpop.f32.mrb[31].mxu1 }
 0x133   :  { %v2138_v31 = vadd.f32 %v3490_v27, %v5205_v60  ;;  %2876 = vmatprep.mubr.bf16.mxu0 %v4396_v23  ;;  %v5335_v33 = vadd.f32 %v3551_v29, %v2135_v26  ;;  %v3554_v35 = vadd.f32 %v3553_v32, %v3552_v30 }
 0x135   :  { %v3571_v37 = vpop.f32.mrb[32].mxu0  ;;  %v5337_v40 = vadd.f32 %v3554_v35, %v2138_v31 }
 0x136   :  { %v3572_v41 = vpop.f32.mrb[33].mxu0 }
 0x137   :  { %v3573_v43 = vadd.f32 %v3572_v41, %v3571_v37  ;;  %v3574_v44 = vpop.f32.mrb[34].mxu0  ;;  %v3635_v60 = vpop.f32.mrb[32].mxu1 }
 0x138   :  { %v3575_v46 = vpop.f32.mrb[35].mxu0  ;;  %v3636_v49 = vpop.f32.mrb[33].mxu1 }
 0x139   :  { %v2273_v47 = vadd.f32 %v3573_v43, %v5230_v16  ;;  %v3576_v48 = vadd.f32 %v3575_v46, %v3574_v44  ;;  %v3637_v50 = vadd.f32 %v3636_v49, %v3635_v60  ;;  %v3638_v51 = vpop.f32.mrb[34].mxu1  ;;  %v4401_v16 = vld [vmem:[%s5602_s0 + $0x280] ss:$72 sps:$4 sm:$0xff]   ;;  %v4408_v60 = vld [vmem:[%s5602_s0 + $0x434] ss:$72 sps:$4 sm:$0xff]  }
 0x13a   :  { %2877 = vmatmul.mubr.bf16.gmra.mrb[140].mxu0 %v4398_v42  ;;  %v3639_v53 = vpop.f32.mrb[35].mxu1 }
 0x13b   :  { %v2276_v52 = vadd.f32 %v3576_v48, %v5232_v19  ;;  %2884 = vmatprep.mubr.bf16.mxu0 %v4399_v45  ;;  %v5347_v55 = vadd.f32 %v3637_v50, %v2273_v47  ;;  %v3640_v57 = vadd.f32 %v3639_v53, %v3638_v51 }
 0x13d   :  { %v3577_v61 = vpop.f32.mrb[36].mxu0  ;;  %v5349_v62 = vadd.f32 %v3640_v57, %v2276_v52 }
 0x13e   :  { %v3578_v63 = vpop.f32.mrb[37].mxu0 }
 0x13f   :  { %v3579_v0 = vadd.f32 %v3578_v63, %v3577_v61  ;;  %v3580_v1 = vpop.f32.mrb[38].mxu0  ;;  %v3641_v19 = vpop.f32.mrb[36].mxu1 }
 0x140   :  { %v3581_v3 = vpop.f32.mrb[39].mxu0  ;;  %v3642_v6 = vpop.f32.mrb[37].mxu1 }
 0x141   :  { %v2281_v4 = vadd.f32 %v3579_v0, %v5248_v36  ;;  %v3582_v5 = vadd.f32 %v3581_v3, %v3580_v1  ;;  %v3643_v7 = vadd.f32 %v3642_v6, %v3641_v19  ;;  %v3644_v8 = vpop.f32.mrb[38].mxu1  ;;  %v4404_v36 = vld [vmem:[%s5602_s0 + $0x310] ss:$72 sps:$4 sm:$0xff]  }
 0x142   :  { %2885 = vmatmul.mubr.bf16.gmra.mrb[144].mxu0 %v4401_v16  ;;  %v3645_v10 = vpop.f32.mrb[39].mxu1 }
 0x143   :  { %v2284_v9 = vadd.f32 %v3582_v5, %v5250_v39  ;;  %2892 = vmatprep.mubr.bf16.mxu0 %v4402_v2  ;;  %v5359_v12 = vadd.f32 %v3643_v7, %v2281_v4  ;;  %v3646_v14 = vadd.f32 %v3645_v10, %v3644_v8 }
 0x145   :  { %v3583_v18 = vpop.f32.mrb[40].mxu0  ;;  %v5361_v20 = vadd.f32 %v3646_v14, %v2284_v9 }
 0x146   :  { %v3584_v21 = vpop.f32.mrb[41].mxu0 }
 0x147   :  { %v3585_v22 = vadd.f32 %v3584_v21, %v3583_v18  ;;  %v3586_v23 = vpop.f32.mrb[42].mxu0  ;;  %v3647_v39 = vpop.f32.mrb[40].mxu1 }
 0x148   :  { %v3587_v25 = vpop.f32.mrb[43].mxu0  ;;  %v3648_v28 = vpop.f32.mrb[41].mxu1 }
 0x149   :  { %v2289_v26 = vadd.f32 %v3585_v22, %v5266_v56  ;;  %v3588_v27 = vadd.f32 %v3587_v25, %v3586_v23  ;;  %v3649_v29 = vadd.f32 %v3648_v28, %v3647_v39  ;;  %v3650_v30 = vpop.f32.mrb[42].mxu1  ;;  %v4407_v56 = vld [vmem:[%s5602_s0 + $0x3a0] ss:$72 sps:$4 sm:$0xff]  }
 0x14a   :  { %2893 = vmatmul.mubr.bf16.gmra.mrb[148].mxu0 %v4404_v36  ;;  %v3651_v32 = vpop.f32.mrb[43].mxu1 }
 0x14b   :  { %v2292_v31 = vadd.f32 %v3588_v27, %v5268_v59  ;;  %2900 = vmatprep.mubr.bf16.mxu0 %v4405_v24  ;;  %v5371_v35 = vadd.f32 %v3649_v29, %v2289_v26  ;;  %v3652_v37 = vadd.f32 %v3651_v32, %v3650_v30 }
 0x14d   :  { %v3589_v41 = vpop.f32.mrb[44].mxu0  ;;  %v5373_v42 = vadd.f32 %v3652_v37, %v2292_v31  ;;  %v4411_v37 = vld [vmem:[%s5604_s2] sm:$0xff]  }
 0x14e   :  { %v3590_v43 = vpop.f32.mrb[45].mxu0  ;;  %4019 = vmatprep.subr.bf16.mxu1 %v4411_v37 }
 0x14f   :  { %v3591_v44 = vadd.f32 %v3590_v43, %v3589_v41  ;;  %v3592_v45 = vpop.f32.mrb[46].mxu0  ;;  %v3653_v59 = vpop.f32.mrb[44].mxu1  ;;  %4020 = vmatpush3.bf16.msra.mxu1 %v4411_v37 }
 0x150   :  { %v3593_v46 = vpop.f32.mrb[47].mxu0  ;;  %v3654_v49 = vpop.f32.mrb[45].mxu1 }
 0x151   :  { %v2297_v47 = vadd.f32 %v3591_v44, %v5284_v13  ;;  %v3594_v48 = vadd.f32 %v3593_v46, %v3592_v45  ;;  %v3655_v50 = vadd.f32 %v3654_v49, %v3653_v59  ;;  %v3656_v51 = vpop.f32.mrb[46].mxu1  ;;  %v4410_v13 = vld [vmem:[%s5602_s0 + $0x430] ss:$72 sps:$4 sm:$0xff]  }
 0x152   :  { %2901 = vmatmul.mubr.bf16.gmra.mrb[152].mxu0 %v4407_v56  ;;  %v3657_v53 = vpop.f32.mrb[47].mxu1 }
 0x153   :  { %v2300_v52 = vadd.f32 %v3594_v48, %v5286_v17  ;;  %2908 = vmatprep.mubr.bf16.mxu0 %v4408_v60  ;;  %v5383_v57 = vadd.f32 %v3655_v50, %v2297_v47  ;;  %v3658_v61 = vadd.f32 %v3657_v53, %v3656_v51 }
 0x155   :  { %v3595_v63 = vpop.f32.mrb[48].mxu0  ;;  %v5385_v16 = vadd.f32 %v3658_v61, %v2300_v52  ;;  %v4412_v52 = vld [vmem:[%s5604_s2 + $0x8] sm:$0xff]  }
 0x156   :  { %v3596_v0 = vpop.f32.mrb[49].mxu0  ;;  %4021 = vmatprep.subr.bf16.mxu1 %v4412_v52 }
 0x157   :  { %v3597_v1 = vadd.f32 %v3596_v0, %v3595_v63  ;;  %v3598_v2 = vpop.f32.mrb[50].mxu0  ;;  %v3659_v19 = vpop.f32.mrb[48].mxu1  ;;  %4022 = vmatpush3.bf16.msra.mxu1 %v4412_v52 }
 0x158   :  { %v3599_v3 = vpop.f32.mrb[51].mxu0  ;;  %v3660_v5 = vpop.f32.mrb[49].mxu1 }
 0x159   :  { %v2305_v4 = vadd.f32 %v3597_v1, %v5299_v34  ;;  %v3600_v17 = vadd.f32 %v3599_v3, %v3598_v2  ;;  %v3661_v6 = vadd.f32 %v3660_v5, %v3659_v19  ;;  %v3662_v7 = vpop.f32.mrb[50].mxu1 }
 0x15a   :  { %2909 = vmatmul.mubr.bf16.gmra.mrb[156].mxu0 %v4410_v13  ;;  %v3663_v9 = vpop.f32.mrb[51].mxu1 }
 0x15b   :  { %v2308_v8 = vadd.f32 %v3600_v17, %v5301_v38  ;;  %v5392_v10 = vadd.f32 %v3661_v6, %v2305_v4  ;;  %v3664_v14 = vadd.f32 %v3663_v9, %v3662_v7  ;;  %v4414_v9 = vld [vmem:[%s5604_s2 + $0x18] sm:$0xff]  }
 0x15d   :  { %v3601_v18 = vpop.f32.mrb[52].mxu0  ;;  %v5394_v21 = vadd.f32 %v3664_v14, %v2308_v8 }
 0x15e   :  { %v3602_v36 = vpop.f32.mrb[53].mxu0 }
 0x15f   :  { %v3603_v22 = vadd.f32 %v3602_v36, %v3601_v18  ;;  %v3604_v23 = vpop.f32.mrb[54].mxu0  ;;  %v3665_v24 = vpop.f32.mrb[52].mxu1 }
 0x160   :  { %v3605_v39 = vpop.f32.mrb[55].mxu0  ;;  %v3666_v26 = vpop.f32.mrb[53].mxu1 }
 0x161   :  { %v2313_v34 = vadd.f32 %v3603_v22, %v5311_v54  ;;  %v3606_v25 = vadd.f32 %v3605_v39, %v3604_v23  ;;  %v3667_v27 = vadd.f32 %v3666_v26, %v3665_v24  ;;  %v3668_v28 = vpop.f32.mrb[54].mxu1 }
 0x162   :  { %v3669_v29 = vpop.f32.mrb[55].mxu1 }
 0x163   :  { %v2316_v38 = vadd.f32 %v3606_v25, %v5313_v58  ;;  %v5398_v30 = vadd.f32 %v3667_v27, %v2313_v34  ;;  %v3670_v31 = vadd.f32 %v3669_v29, %v3668_v28 }
 0x165   :  { %v3607_v32 = vpop.f32.mrb[56].mxu0  ;;  %v5403_v41 = vadd.f32 %v3670_v31, %v2316_v38 }
 0x166   :  { %v3608_v43 = vpop.f32.mrb[57].mxu0 }
 0x167   :  { %v3609_v56 = vadd.f32 %v3608_v43, %v3607_v32  ;;  %v3610_v54 = vpop.f32.mrb[58].mxu0  ;;  %v3671_v44 = vpop.f32.mrb[56].mxu1  ;;  %v4416_v32 = vld [vmem:[%s5604_s2 + $0x28] sm:$0xff]  }
 0x168   :  { %v3611_v45 = vpop.f32.mrb[59].mxu0  ;;  %v3672_v59 = vpop.f32.mrb[57].mxu1 }
 0x169   :  { %v2321_v58 = vadd.f32 %v3609_v56, %v5323_v11  ;;  %v3612_v60 = vadd.f32 %v3611_v45, %v3610_v54  ;;  %v3673_v46 = vadd.f32 %v3672_v59, %v3671_v44  ;;  %v3674_v47 = vpop.f32.mrb[58].mxu1 }
 0x16a   :  { %v3675_v49 = vpop.f32.mrb[59].mxu1 }
 0x16b   :  { %v2324_v48 = vadd.f32 %v3612_v60, %v5325_v15  ;;  %v5407_v50 = vadd.f32 %v3673_v46, %v2321_v58  ;;  %v3676_v51 = vadd.f32 %v3675_v49, %v3674_v47  ;;  %v4413_v15 = vld [vmem:[%s5604_s2 + $0x10] sm:$0xff]  }
 0x16c   :  { %4023 = vmatprep.subr.bf16.mxu1 %v4413_v15 }
 0x16d   :  { %v3613_v53 = vpop.f32.mrb[60].mxu0  ;;  %v5412_v61 = vadd.f32 %v3676_v51, %v2324_v48  ;;  %4024 = vmatpush3.bf16.msra.mxu1 %v4413_v15 }
 0x16e   :  { %v3614_v63 = vpop.f32.mrb[61].mxu0  ;;  %4025 = vmatprep.subr.bf16.mxu1 %v4414_v9 }
 0x16f   :  { %v3615_v11 = vadd.f32 %v3614_v63, %v3613_v53  ;;  %v3616_v0 = vpop.f32.mrb[62].mxu0  ;;  %v3677_v13 = vpop.f32.mrb[60].mxu1  ;;  %v4418_v53 = vld [vmem:[%s5604_s2 + $0x38] sm:$0xff]  }
 0x170   :  { %v3617_v1 = vpop.f32.mrb[63].mxu0  ;;  %v3678_v3 = vpop.f32.mrb[61].mxu1 }
 0x171   :  { %v2329_v2 = vadd.f32 %v3615_v11, %v5335_v33  ;;  %v3618_v19 = vadd.f32 %v3617_v1, %v3616_v0  ;;  %v3679_v4 = vadd.f32 %v3678_v3, %v3677_v13  ;;  %v3680_v17 = vpop.f32.mrb[62].mxu1  ;;  %4026 = vmatpush3.bf16.msra.mxu1 %v4414_v9 }
 0x172   :  { %v3681_v6 = vpop.f32.mrb[63].mxu1 }
 0x173   :  { %v2332_v5 = vadd.f32 %v3618_v19, %v5337_v40  ;;  %v5419_v7 = vadd.f32 %v3679_v4, %v2329_v2  ;;  %v3682_v8 = vadd.f32 %v3681_v6, %v3680_v17  ;;  %v4415_v40 = vld [vmem:[%s5604_s2 + $0x20] sm:$0xff]  }
 0x174   :  { %4027 = vmatprep.subr.bf16.mxu1 %v4415_v40 }
 0x175   :  { %v3699_v14 = vpop.f32.mrb[64].mxu0  ;;  %v5424_v18 = vadd.f32 %v3682_v8, %v2332_v5  ;;  %4028 = vmatpush3.bf16.msra.mxu1 %v4415_v40 }
 0x176   :  { %v3700_v33 = vpop.f32.mrb[65].mxu0  ;;  %4029 = vmatprep.subr.bf16.mxu1 %v4416_v32 }
 0x177   :  { %v3701_v36 = vadd.f32 %v3700_v33, %v3699_v14  ;;  %v3702_v22 = vpop.f32.mrb[66].mxu0  ;;  %v3763_v23 = vpop.f32.mrb[64].mxu1 }
 0x178   :  { %v3703_v24 = vpop.f32.mrb[67].mxu0  ;;  %v3764_v25 = vpop.f32.mrb[65].mxu1 }
 0x179   :  { %v2467_v39 = vadd.f32 %v3701_v36, %v5347_v55  ;;  %v3704_v34 = vadd.f32 %v3703_v24, %v3702_v22  ;;  %v3765_v26 = vadd.f32 %v3764_v25, %v3763_v23  ;;  %v3766_v27 = vpop.f32.mrb[66].mxu1  ;;  %4030 = vmatpush3.bf16.msra.mxu1 %v4416_v32 }
 0x17a   :  { %v3767_v38 = vpop.f32.mrb[67].mxu1 }
 0x17b   :  { %v2470_v28 = vadd.f32 %v3704_v34, %v5349_v62  ;;  %v5431_v29 = vadd.f32 %v3765_v26, %v2467_v39  ;;  %v3768_v31 = vadd.f32 %v3767_v38, %v3766_v27  ;;  %v4417_v62 = vld [vmem:[%s5604_s2 + $0x30] sm:$0xff]  }
 0x17c   :  { %4031 = vmatprep.subr.bf16.mxu1 %v4417_v62 }
 0x17d   :  { %v3705_v37 = vpop.f32.mrb[68].mxu0  ;;  %v5436_v43 = vadd.f32 %v3768_v31, %v2470_v28  ;;  %4032 = vmatpush3.bf16.msra.mxu1 %v4417_v62 }
 0x17e   :  { %v3706_v55 = vpop.f32.mrb[69].mxu0  ;;  %4033 = vmatprep.subr.bf16.mxu1 %v4418_v53 }
 0x17f   :  { %v3707_v56 = vadd.f32 %v3706_v55, %v3705_v37  ;;  %v3708_v54 = vpop.f32.mrb[70].mxu0  ;;  %v3769_v44 = vpop.f32.mrb[68].mxu1 }
 0x180   :  { %v3709_v45 = vpop.f32.mrb[71].mxu0  ;;  %v3770_v59 = vpop.f32.mrb[69].mxu1 }
 0x181   :  { %v2475_v58 = vadd.f32 %v3707_v56, %v5359_v12  ;;  %v3710_v60 = vadd.f32 %v3709_v45, %v3708_v54  ;;  %v3771_v46 = vadd.f32 %v3770_v59, %v3769_v44  ;;  %v3772_v47 = vpop.f32.mrb[70].mxu1  ;;  %4034 = vmatpush3.bf16.msra.mxu1 %v4418_v53 }
 0x182   :  { %v3773_v49 = vpop.f32.mrb[71].mxu1 }
 0x183   :  { %v2478_v48 = vadd.f32 %v3710_v60, %v5361_v20  ;;  %v5443_v51 = vadd.f32 %v3771_v46, %v2475_v58  ;;  %v3774_v52 = vadd.f32 %v3773_v49, %v3772_v47 }
 0x185   :  { %v3711_v63 = vpop.f32.mrb[72].mxu0  ;;  %v5448_v11 = vadd.f32 %v3774_v52, %v2478_v48 }
 0x186   :  { %v3712_v12 = vpop.f32.mrb[73].mxu0 }
 0x187   :  { %v3713_v0 = vadd.f32 %v3712_v12, %v3711_v63  ;;  %v3714_v13 = vpop.f32.mrb[74].mxu0  ;;  %v3775_v1 = vpop.f32.mrb[72].mxu1 }
 0x188   :  { %v3715_v15 = vpop.f32.mrb[75].mxu0  ;;  %v3776_v19 = vpop.f32.mrb[73].mxu1 }
 0x189   :  { %v2483_v20 = vadd.f32 %v3713_v0, %v5371_v35  ;;  %v3716_v2 = vadd.f32 %v3715_v15, %v3714_v13  ;;  %v3777_v3 = vadd.f32 %v3776_v19, %v3775_v1  ;;  %v3778_v4 = vpop.f32.mrb[74].mxu1 }
 0x18a   :  { %v3779_v5 = vpop.f32.mrb[75].mxu1 }
 0x18b   :  { %v2486_v17 = vadd.f32 %v3716_v2, %v5373_v42  ;;  %v5452_v6 = vadd.f32 %v3777_v3, %v2483_v20  ;;  %v3780_v8 = vadd.f32 %v3779_v5, %v3778_v4 }
 0x18d   :  { %v3717_v9 = vpop.f32.mrb[76].mxu0  ;;  %v5454_v14 = vadd.f32 %v3780_v8, %v2486_v17 }
 0x18e   :  { %v3718_v33 = vpop.f32.mrb[77].mxu0 }
 0x18f   :  { %v3719_v36 = vadd.f32 %v3718_v33, %v3717_v9  ;;  %v3720_v22 = vpop.f32.mrb[78].mxu0  ;;  %v3781_v23 = vpop.f32.mrb[76].mxu1 }
 0x190   :  { %v3721_v24 = vpop.f32.mrb[79].mxu0  ;;  %v3782_v39 = vpop.f32.mrb[77].mxu1 }
 0x191   :  { %v2491_v35 = vadd.f32 %v3719_v36, %v5383_v57  ;;  %v3722_v40 = vadd.f32 %v3721_v24, %v3720_v22  ;;  %v3783_v34 = vadd.f32 %v3782_v39, %v3781_v23  ;;  %v3784_v25 = vpop.f32.mrb[78].mxu1 }
 0x192   :  { %v3785_v26 = vpop.f32.mrb[79].mxu1 }
 0x193   :  { %v2494_v42 = vadd.f32 %v3722_v40, %v5385_v16  ;;  %v5458_v27 = vadd.f32 %v3783_v34, %v2491_v35  ;;  %v3786_v28 = vadd.f32 %v3785_v26, %v3784_v25 }
 0x195   :  { %v3723_v38 = vpop.f32.mrb[80].mxu0  ;;  %v5460_v31 = vadd.f32 %v3786_v28, %v2494_v42 }
 0x196   :  { %v3724_v32 = vpop.f32.mrb[81].mxu0 }
 0x197   :  { %v3725_v37 = vadd.f32 %v3724_v32, %v3723_v38  ;;  %v3726_v55 = vpop.f32.mrb[82].mxu0  ;;  %v3787_v56 = vpop.f32.mrb[80].mxu1 }
 0x198   :  { %v3727_v54 = vpop.f32.mrb[83].mxu0  ;;  %v3788_v45 = vpop.f32.mrb[81].mxu1 }
 0x199   :  { %v2499_v57 = vadd.f32 %v3725_v37, %v5392_v10  ;;  %v3728_v44 = vadd.f32 %v3727_v54, %v3726_v55  ;;  %v3789_v62 = vadd.f32 %v3788_v45, %v3787_v56  ;;  %v3790_v58 = vpop.f32.mrb[82].mxu1 }
 0x19a   :  { %v3791_v60 = vpop.f32.mrb[83].mxu1 }
 0x19b   :  { %v2502_v16 = vadd.f32 %v3728_v44, %v5394_v21  ;;  %v5464_v59 = vadd.f32 %v3789_v62, %v2499_v57  ;;  %v3792_v46 = vadd.f32 %v3791_v60, %v3790_v58 }
 0x19d   :  { %v3729_v47 = vpop.f32.mrb[84].mxu0  ;;  %v5466_v48 = vadd.f32 %v3792_v46, %v2502_v16 }
 0x19e   :  { %v3730_v49 = vpop.f32.mrb[85].mxu0 }
 0x19f   :  { %v3731_v52 = vadd.f32 %v3730_v49, %v3729_v47  ;;  %v3732_v53 = vpop.f32.mrb[86].mxu0  ;;  %v3793_v63 = vpop.f32.mrb[84].mxu1 }
 0x1a0   :  { %v3733_v12 = vpop.f32.mrb[87].mxu0  ;;  %v3794_v13 = vpop.f32.mrb[85].mxu1 }
 0x1a1   :  { %v2507_v10 = vadd.f32 %v3731_v52, %v5398_v30  ;;  %v3734_v0 = vadd.f32 %v3733_v12, %v3732_v53  ;;  %v3795_v1 = vadd.f32 %v3794_v13, %v3793_v63  ;;  %v3796_v15 = vpop.f32.mrb[86].mxu1 }
 0x1a2   :  { %v3797_v20 = vpop.f32.mrb[87].mxu1 }
 0x1a3   :  { %v2510_v21 = vadd.f32 %v3734_v0, %v5403_v41  ;;  %v5470_v2 = vadd.f32 %v3795_v1, %v2507_v10  ;;  %v3798_v19 = vadd.f32 %v3797_v20, %v3796_v15 }
 0x1a5   :  { %v3735_v3 = vpop.f32.mrb[88].mxu0  ;;  %v5472_v4 = vadd.f32 %v3798_v19, %v2510_v21 }
 0x1a6   :  { %v3736_v17 = vpop.f32.mrb[89].mxu0 }
 0x1a7   :  { %v3737_v5 = vadd.f32 %v3736_v17, %v3735_v3  ;;  %v3738_v8 = vpop.f32.mrb[90].mxu0  ;;  %v3799_v9 = vpop.f32.mrb[88].mxu1 }
 0x1a8   :  { %v3739_v33 = vpop.f32.mrb[91].mxu0  ;;  %v3800_v22 = vpop.f32.mrb[89].mxu1 }
 0x1a9   :  { %v2515_v30 = vadd.f32 %v3737_v5, %v5407_v50  ;;  %v3740_v36 = vadd.f32 %v3739_v33, %v3738_v8  ;;  %v3801_v23 = vadd.f32 %v3800_v22, %v3799_v9  ;;  %v3802_v24 = vpop.f32.mrb[90].mxu1 }
 0x1aa   :  { %v3803_v35 = vpop.f32.mrb[91].mxu1 }
 0x1ab   :  { %v2518_v41 = vadd.f32 %v3740_v36, %v5412_v61  ;;  %v5476_v40 = vadd.f32 %v3801_v23, %v2515_v30  ;;  %v3804_v39 = vadd.f32 %v3803_v35, %v3802_v24 }
 0x1ad   :  { %v3741_v34 = vpop.f32.mrb[92].mxu0  ;;  %v5478_v25 = vadd.f32 %v3804_v39, %v2518_v41 }
 0x1ae   :  { %v3742_v42 = vpop.f32.mrb[93].mxu0 }
 0x1af   :  { %v3743_v26 = vadd.f32 %v3742_v42, %v3741_v34  ;;  %v3744_v28 = vpop.f32.mrb[94].mxu0  ;;  %v3805_v38 = vpop.f32.mrb[92].mxu1 }
 0x1b0   :  { %v3745_v32 = vpop.f32.mrb[95].mxu0  ;;  %v3806_v55 = vpop.f32.mrb[93].mxu1 }
 0x1b1   :  { %v2523_v50 = vadd.f32 %v3743_v26, %v5419_v7  ;;  %v3746_v37 = vadd.f32 %v3745_v32, %v3744_v28  ;;  %v3807_v56 = vadd.f32 %v3806_v55, %v3805_v38  ;;  %v3808_v54 = vpop.f32.mrb[94].mxu1 }
 0x1b2   :  { %v3809_v57 = vpop.f32.mrb[95].mxu1 }
 0x1b3   :  { %v2526_v61 = vadd.f32 %v3746_v37, %v5424_v18  ;;  %v5482_v44 = vadd.f32 %v3807_v56, %v2523_v50  ;;  %v3810_v45 = vadd.f32 %v3809_v57, %v3808_v54 }
 0x1b5   :  { %v3827_v62 = vpop.f32.mrb[96].mxu0  ;;  %v5484_v58 = vadd.f32 %v3810_v45, %v2526_v61 }
 0x1b6   :  { %v3828_v16 = vpop.f32.mrb[97].mxu0 }
 0x1b7   :  { %v3829_v60 = vadd.f32 %v3828_v16, %v3827_v62  ;;  %v3830_v46 = vpop.f32.mrb[98].mxu0  ;;  %v3891_v47 = vpop.f32.mrb[96].mxu1 }
 0x1b8   :  { %v3831_v49 = vpop.f32.mrb[99].mxu0  ;;  %v3892_v53 = vpop.f32.mrb[97].mxu1 }
 0x1b9   :  { %v2661_v7 = vadd.f32 %v3829_v60, %v5431_v29  ;;  %v3832_v52 = vadd.f32 %v3831_v49, %v3830_v46  ;;  %v3893_v63 = vadd.f32 %v3892_v53, %v3891_v47  ;;  %v3894_v12 = vpop.f32.mrb[98].mxu1 }
 0x1ba   :  { %v3895_v10 = vpop.f32.mrb[99].mxu1 }
 0x1bb   :  { %v2664_v18 = vadd.f32 %v3832_v52, %v5436_v43  ;;  %v5488_v0 = vadd.f32 %v3893_v63, %v2661_v7  ;;  %v3896_v13 = vadd.f32 %v3895_v10, %v3894_v12 }
 0x1bd   :  { %v3833_v1 = vpop.f32.mrb[100].mxu0  ;;  %v5490_v15 = vadd.f32 %v3896_v13, %v2664_v18 }
 0x1be   :  { %v3834_v21 = vpop.f32.mrb[101].mxu0 }
 0x1bf   :  { %v3835_v20 = vadd.f32 %v3834_v21, %v3833_v1  ;;  %v3836_v19 = vpop.f32.mrb[102].mxu0  ;;  %v3897_v3 = vpop.f32.mrb[100].mxu1 }
 0x1c0   :  { %v3837_v17 = vpop.f32.mrb[103].mxu0  ;;  %v3898_v8 = vpop.f32.mrb[101].mxu1 }
 0x1c1   :  { %v2669_v29 = vadd.f32 %v3835_v20, %v5443_v51  ;;  %v3838_v5 = vadd.f32 %v3837_v17, %v3836_v19  ;;  %v3899_v9 = vadd.f32 %v3898_v8, %v3897_v3  ;;  %v3900_v33 = vpop.f32.mrb[102].mxu1 }
 0x1c2   :  { %v3901_v30 = vpop.f32.mrb[103].mxu1 }
 0x1c3   :  { %v2672_v43 = vadd.f32 %v3838_v5, %v5448_v11  ;;  %v5494_v36 = vadd.f32 %v3899_v9, %v2669_v29  ;;  %v3902_v22 = vadd.f32 %v3901_v30, %v3900_v33 }
 0x1c5   :  { %v3839_v23 = vpop.f32.mrb[104].mxu0  ;;  %v5496_v24 = vadd.f32 %v3902_v22, %v2672_v43 }
 0x1c6   :  { %v3840_v41 = vpop.f32.mrb[105].mxu0 }
 0x1c7   :  { %v3841_v35 = vadd.f32 %v3840_v41, %v3839_v23  ;;  %v3842_v39 = vpop.f32.mrb[106].mxu0  ;;  %v3903_v34 = vpop.f32.mrb[104].mxu1 }
 0x1c8   :  { %v3843_v42 = vpop.f32.mrb[107].mxu0  ;;  %v3904_v28 = vpop.f32.mrb[105].mxu1 }
 0x1c9   :  { %v2677_v51 = vadd.f32 %v3841_v35, %v5452_v6  ;;  %v3844_v26 = vadd.f32 %v3843_v42, %v3842_v39  ;;  %v3905_v38 = vadd.f32 %v3904_v28, %v3903_v34  ;;  %v3906_v32 = vpop.f32.mrb[106].mxu1 }
 0x1ca   :  { %v3907_v50 = vpop.f32.mrb[107].mxu1 }
 0x1cb   :  { %v2680_v11 = vadd.f32 %v3844_v26, %v5454_v14  ;;  %v5500_v37 = vadd.f32 %v3905_v38, %v2677_v51  ;;  %v3908_v55 = vadd.f32 %v3907_v50, %v3906_v32 }
 0x1cd   :  { %v3845_v56 = vpop.f32.mrb[108].mxu0  ;;  %v5502_v54 = vadd.f32 %v3908_v55, %v2680_v11 }
 0x1ce   :  { %v3846_v61 = vpop.f32.mrb[109].mxu0 }
 0x1cf   :  { %v3847_v57 = vadd.f32 %v3846_v61, %v3845_v56  ;;  %v3848_v45 = vpop.f32.mrb[110].mxu0  ;;  %v3909_v62 = vpop.f32.mrb[108].mxu1 }
 0x1d0   :  { %v3849_v16 = vpop.f32.mrb[111].mxu0  ;;  %v3910_v46 = vpop.f32.mrb[109].mxu1 }
 0x1d1   :  { %v2685_v6 = vadd.f32 %v3847_v57, %v5458_v27  ;;  %v3850_v60 = vadd.f32 %v3849_v16, %v3848_v45  ;;  %v3911_v47 = vadd.f32 %v3910_v46, %v3909_v62  ;;  %v3912_v49 = vpop.f32.mrb[110].mxu1 }
 0x1d2   :  { %v3913_v7 = vpop.f32.mrb[111].mxu1 }
 0x1d3   :  { %v2688_v14 = vadd.f32 %v3850_v60, %v5460_v31  ;;  %v5506_v52 = vadd.f32 %v3911_v47, %v2685_v6  ;;  %v3914_v53 = vadd.f32 %v3913_v7, %v3912_v49 }
 0x1d5   :  { %v3851_v63 = vpop.f32.mrb[112].mxu0  ;;  %v5508_v12 = vadd.f32 %v3914_v53, %v2688_v14 }
 0x1d6   :  { %v3852_v18 = vpop.f32.mrb[113].mxu0 }
 0x1d7   :  { %v3853_v10 = vadd.f32 %v3852_v18, %v3851_v63  ;;  %v3854_v13 = vpop.f32.mrb[114].mxu0  ;;  %v3915_v1 = vpop.f32.mrb[112].mxu1 }
 0x1d8   :  { %v3855_v21 = vpop.f32.mrb[115].mxu0  ;;  %v3916_v19 = vpop.f32.mrb[113].mxu1 }
 0x1d9   :  { %v2693_v27 = vadd.f32 %v3853_v10, %v5464_v59  ;;  %v3856_v20 = vadd.f32 %v3855_v21, %v3854_v13  ;;  %v3917_v3 = vadd.f32 %v3916_v19, %v3915_v1  ;;  %v3918_v17 = vpop.f32.mrb[114].mxu1 }
 0x1da   :  { %v3919_v29 = vpop.f32.mrb[115].mxu1 }
 0x1db   :  { %v2696_v31 = vadd.f32 %v3856_v20, %v5466_v48  ;;  %v5512_v5 = vadd.f32 %v3917_v3, %v2693_v27  ;;  %v3920_v8 = vadd.f32 %v3919_v29, %v3918_v17 }
 0x1dd   :  { %v3857_v9 = vpop.f32.mrb[116].mxu0  ;;  %v5514_v33 = vadd.f32 %v3920_v8, %v2696_v31 }
 0x1de   :  { %v3858_v43 = vpop.f32.mrb[117].mxu0 }
 0x1df   :  { %v3859_v30 = vadd.f32 %v3858_v43, %v3857_v9  ;;  %v3860_v22 = vpop.f32.mrb[118].mxu0  ;;  %v3921_v23 = vpop.f32.mrb[116].mxu1 }
 0x1e0   :  { %v3861_v41 = vpop.f32.mrb[119].mxu0  ;;  %v3922_v39 = vpop.f32.mrb[117].mxu1 }
 0x1e1   :  { %v2701_v59 = vadd.f32 %v3859_v30, %v5470_v2  ;;  %v3862_v35 = vadd.f32 %v3861_v41, %v3860_v22  ;;  %v3923_v34 = vadd.f32 %v3922_v39, %v3921_v23  ;;  %v3924_v42 = vpop.f32.mrb[118].mxu1 }
 0x1e2   :  { %v3925_v51 = vpop.f32.mrb[119].mxu1 }
 0x1e3   :  { %v2704_v48 = vadd.f32 %v3862_v35, %v5472_v4  ;;  %v5518_v26 = vadd.f32 %v3923_v34, %v2701_v59  ;;  %v3926_v28 = vadd.f32 %v3925_v51, %v3924_v42 }
 0x1e5   :  { %v3863_v38 = vpop.f32.mrb[120].mxu0  ;;  %v5520_v32 = vadd.f32 %v3926_v28, %v2704_v48 }
 0x1e6   :  { %v3864_v11 = vpop.f32.mrb[121].mxu0 }
 0x1e7   :  { %v3865_v50 = vadd.f32 %v3864_v11, %v3863_v38  ;;  %v3866_v55 = vpop.f32.mrb[122].mxu0  ;;  %v3927_v56 = vpop.f32.mrb[120].mxu1 }
 0x1e8   :  { %v3867_v61 = vpop.f32.mrb[123].mxu0  ;;  %v3928_v45 = vpop.f32.mrb[121].mxu1 }
 0x1e9   :  { %v2709_v2 = vadd.f32 %v3865_v50, %v5476_v40  ;;  %v3868_v57 = vadd.f32 %v3867_v61, %v3866_v55  ;;  %v3929_v62 = vadd.f32 %v3928_v45, %v3927_v56  ;;  %v3930_v16 = vpop.f32.mrb[122].mxu1 }
 0x1ea   :  { %v3931_v6 = vpop.f32.mrb[123].mxu1 }
 0x1eb   :  { %v2712_v4 = vadd.f32 %v3868_v57, %v5478_v25  ;;  %v5524_v60 = vadd.f32 %v3929_v62, %v2709_v2  ;;  %v3932_v46 = vadd.f32 %v3931_v6, %v3930_v16 }
 0x1ed   :  { %v3869_v47 = vpop.f32.mrb[124].mxu0  ;;  %v5526_v49 = vadd.f32 %v3932_v46, %v2712_v4 }
 0x1ee   :  { %v3870_v14 = vpop.f32.mrb[125].mxu0 }
 0x1ef   :  { %v3871_v7 = vadd.f32 %v3870_v14, %v3869_v47  ;;  %v3872_v53 = vpop.f32.mrb[126].mxu0  ;;  %v3933_v63 = vpop.f32.mrb[124].mxu1 }
 0x1f0   :  { %v3873_v18 = vpop.f32.mrb[127].mxu0  ;;  %v3934_v13 = vpop.f32.mrb[125].mxu1 }
 0x1f1   :  { %v2717_v40 = vadd.f32 %v3871_v7, %v5482_v44  ;;  %v3874_v10 = vadd.f32 %v3873_v18, %v3872_v53  ;;  %v3935_v1 = vadd.f32 %v3934_v13, %v3933_v63  ;;  %v3936_v21 = vpop.f32.mrb[126].mxu1 }
 0x1f2   :  { %v3937_v27 = vpop.f32.mrb[127].mxu1 }
 0x1f3   :  { %v2720_v25 = vadd.f32 %v3874_v10, %v5484_v58  ;;  %v5530_v20 = vadd.f32 %v3935_v1, %v2717_v40  ;;  %v3938_v19 = vadd.f32 %v3937_v27, %v3936_v21 }
 0x1f5   :  { %v3955_v3 = vpop.f32.mrb[128].mxu0  ;;  %v5532_v17 = vadd.f32 %v3938_v19, %v2720_v25 }
 0x1f6   :  { %v3956_v31 = vpop.f32.mrb[129].mxu0 }
 0x1f7   :  { %v3957_v29 = vadd.f32 %v3956_v31, %v3955_v3  ;;  %v3958_v8 = vpop.f32.mrb[130].mxu0 }
 0x1f8   :  { %v3959_v9 = vpop.f32.mrb[131].mxu0 }
 0x1f9   :  { %v2855_v43 = vadd.f32 %v3957_v29, %v5488_v0  ;;  %v3960_v44 = vadd.f32 %v3959_v9, %v3958_v8 }
 0x1fb   :  { %v2858_v30 = vadd.f32 %v3960_v44, %v5490_v15  ;;  %v2917_v22 = vmax.f32 %v2855_v43, 0.0 }
 0x1fd   :  { %v2918_v23 = vmax.f32 %v2858_v30, 0.0  ;;  %v3961_v41 = vpop.f32.mrb[132].mxu0 }
 0x1fe   :  { %v3962_v58 = vpop.f32.mrb[133].mxu0 }
 0x1ff   :  { %v3963_v59 = vadd.f32 %v3962_v58, %v3961_v41  ;;  %v3964_v35 = vpop.f32.mrb[134].mxu0  ;;  %v2933_v39 = vpack.c.bf16 %v2918_v23, %v2917_v22 }
 0x200   :  { %v3965_v34 = vpop.f32.mrb[135].mxu0 }
 0x201   :  { %v2863_v42 = vadd.f32 %v3963_v59, %v5494_v36  ;;  %v3966_v48 = vadd.f32 %v3965_v34, %v3964_v35  ;;  %4035 = vmatprep.mubr.bf16.mxu1 %v2933_v39 }
 0x203   :  { %v2866_v51 = vadd.f32 %v3966_v48, %v5496_v24  ;;  %v2919_v28 = vmax.f32 %v2863_v42, 0.0 }
 0x205   :  { %v2920_v38 = vmax.f32 %v2866_v51, 0.0  ;;  %v3967_v0 = vpop.f32.mrb[136].mxu0 }
 0x206   :  { %v3968_v11 = vpop.f32.mrb[137].mxu0 }
 0x207   :  { %v2934_v50 = vpack.c.bf16 %v2920_v38, %v2919_v28  ;;  %v3969_v15 = vadd.f32 %v3968_v11, %v3967_v0  ;;  %v3970_v55 = vpop.f32.mrb[138].mxu0 }
 0x208   :  { %v3971_v56 = vpop.f32.mrb[139].mxu0 }
 0x209   :  { %v2871_v61 = vadd.f32 %v3969_v15, %v5500_v37  ;;  %v3972_v2 = vadd.f32 %v3971_v56, %v3970_v55  ;;  %4036 = vmatmul.mubr.bf16.vlgmr.msra.gmra.mrb[128].mxu1 %v2934_v50 }
 0x20b   :  { %v2874_v57 = vadd.f32 %v3972_v2, %v5502_v54  ;;  %v2921_v45 = vmax.f32 %v2871_v61, 0.0 }
 0x20d   :  { %v2922_v36 = vmax.f32 %v2874_v57, 0.0  ;;  %v3973_v62 = vpop.f32.mrb[140].mxu0 }
 0x20e   :  { %v3974_v16 = vpop.f32.mrb[141].mxu0 }
 0x20f   :  { %v3975_v4 = vadd.f32 %v3974_v16, %v3973_v62  ;;  %v3976_v24 = vpop.f32.mrb[142].mxu0  ;;  %v2935_v6 = vpack.c.bf16 %v2922_v36, %v2921_v45 }
 0x210   :  { %v3977_v46 = vpop.f32.mrb[143].mxu0 }
 0x211   :  { %v2879_v47 = vadd.f32 %v3975_v4, %v5506_v52  ;;  %v3978_v14 = vadd.f32 %v3977_v46, %v3976_v24  ;;  %4039 = vmatprep.mubr.bf16.mxu1 %v2935_v6 }
 0x213   :  { %v2882_v7 = vadd.f32 %v3978_v14, %v5508_v12  ;;  %v2923_v53 = vmax.f32 %v2879_v47, 0.0 }
 0x215   :  { %v2924_v37 = vmax.f32 %v2882_v7, 0.0  ;;  %v3979_v63 = vpop.f32.mrb[144].mxu0 }
 0x216   :  { %v3980_v18 = vpop.f32.mrb[145].mxu0 }
 0x217   :  { %v3981_v40 = vadd.f32 %v3980_v18, %v3979_v63  ;;  %v3982_v54 = vpop.f32.mrb[146].mxu0  ;;  %v2936_v10 = vpack.c.bf16 %v2924_v37, %v2923_v53 }
 0x218   :  { %v3983_v13 = vpop.f32.mrb[147].mxu0 }
 0x219   :  { %v2887_v1 = vadd.f32 %v3981_v40, %v5512_v5  ;;  %v3984_v21 = vadd.f32 %v3983_v13, %v3982_v54  ;;  %4040 = vmatmul.mubr.bf16.gmra.mrb[132].mxu1 %v2936_v10 }
 0x21b   :  { %v2890_v25 = vadd.f32 %v3984_v21, %v5514_v33  ;;  %v2925_v27 = vmax.f32 %v2887_v1, 0.0 }
 0x21d   :  { %v2926_v52 = vmax.f32 %v2890_v25, 0.0  ;;  %v3985_v19 = vpop.f32.mrb[148].mxu0 }
 0x21e   :  { %v3986_v3 = vpop.f32.mrb[149].mxu0 }
 0x21f   :  { %v3987_v31 = vadd.f32 %v3986_v3, %v3985_v19  ;;  %v3988_v12 = vpop.f32.mrb[150].mxu0  ;;  %v2937_v29 = vpack.c.bf16 %v2926_v52, %v2925_v27 }
 0x220   :  { %v3989_v8 = vpop.f32.mrb[151].mxu0 }
 0x221   :  { %v2895_v9 = vadd.f32 %v3987_v31, %v5518_v26  ;;  %v3990_v43 = vadd.f32 %v3989_v8, %v3988_v12  ;;  %4043 = vmatprep.mubr.bf16.mxu1 %v2937_v29 }
 0x223   :  { %v2898_v44 = vadd.f32 %v3990_v43, %v5520_v32  ;;  %v2927_v30 = vmax.f32 %v2895_v9, 0.0 }
 0x225   :  { %v2928_v5 = vmax.f32 %v2898_v44, 0.0  ;;  %v3991_v22 = vpop.f32.mrb[152].mxu0 }
 0x226   :  { %v3992_v23 = vpop.f32.mrb[153].mxu0 }
 0x227   :  { %v3993_v41 = vadd.f32 %v3992_v23, %v3991_v22  ;;  %v3994_v33 = vpop.f32.mrb[154].mxu0  ;;  %v2938_v58 = vpack.c.bf16 %v2928_v5, %v2927_v30 }
 0x228   :  { %v3995_v59 = vpop.f32.mrb[155].mxu0 }
 0x229   :  { %v2903_v35 = vadd.f32 %v3993_v41, %v5524_v60  ;;  %v3996_v39 = vadd.f32 %v3995_v59, %v3994_v33  ;;  %4044 = vmatmul.mubr.bf16.gmra.mrb[136].mxu1 %v2938_v58 }
 0x22b   :  { %v2906_v34 = vadd.f32 %v3996_v39, %v5526_v49  ;;  %v2929_v42 = vmax.f32 %v2903_v35, 0.0  ;;  %v3418_v49 = vld [vmem:[%s5605_s4] ss:$0 sm:$0xff] }
 0x22d   :  { %v2930_v26 = vmax.f32 %v2906_v34, 0.0  ;;  %v3997_v48 = vpop.f32.mrb[156].mxu0 }
 0x22e   :  { %v3998_v51 = vpop.f32.mrb[157].mxu0 }
 0x22f   :  { %v3999_v28 = vadd.f32 %v3998_v51, %v3997_v48  ;;  %v4000_v32 = vpop.f32.mrb[158].mxu0  ;;  %v2939_v38 = vpack.c.bf16 %v2930_v26, %v2929_v42 }
 0x230   :  { %v4001_v0 = vpop.f32.mrb[159].mxu0 }
 0x231   :  { %v2911_v11 = vadd.f32 %v3999_v28, %v5530_v20  ;;  %v4002_v50 = vadd.f32 %v4001_v0, %v4000_v32  ;;  %4047 = vmatprep.mubr.bf16.mxu1 %v2939_v38 }
 0x233   :  { %v2914_v15 = vadd.f32 %v4002_v50, %v5532_v17  ;;  %v2931_v55 = vmax.f32 %v2911_v11, 0.0 }
 0x235   :  { %v2932_v60 = vmax.f32 %v2914_v15, 0.0 }
 0x237   :  { %v2940_v56 = vpack.c.bf16 %v2932_v60, %v2931_v55 }
 0x239   :  { %4048 = vmatmul.mubr.bf16.gmra.mrb[140].mxu1 %v2940_v56 }
 0x2dc   :  { %v4037_v61 = vpop.f32.mrb[128].mxu1 }
 0x2dd   :  { %v3055_v2 = vadd.f32 %v4037_v61, %v3418_v49  ;;  %v3046_v57 = vpop.f32.mrb[129].mxu1 }
 0x2de   :  { %v3047_v45 = vadd.f32 %v3418_v49, %v3046_v57  ;;  %v4038_v36 = vpop.f32.mrb[130].mxu1 }
 0x2df   :  { %3111 = vst [vmem:[%s5606_s5 + $0x10] sm:$0xff] %v3055_v2  ;;  %v3058_v20 = vadd.f32 %v4038_v36, %v3418_v49  ;;  %v3049_v62 = vpop.f32.mrb[131].mxu1 }
 0x2e0   :  { %3109 = vst [vmem:[%s5606_s5] sm:$0xff] %v3047_v45  ;;  %v3050_v17 = vadd.f32 %v3418_v49, %v3049_v62 }
 0x2e1   :  { %3112 = vst [vmem:[%s5606_s5 + $0x18] sm:$0xff] %v3058_v20 }
 0x2e2   :  { %3110 = vst [vmem:[%s5606_s5 + $0x8] sm:$0xff] %v3050_v17 }
 0x2ec   :  { %v4041_v16 = vpop.f32.mrb[132].mxu1 }
 0x2ed   :  { %v3071_v4 = vadd.f32 %v4041_v16, %v3418_v49  ;;  %v3062_v24 = vpop.f32.mrb[133].mxu1 }
 0x2ee   :  { %v3063_v6 = vadd.f32 %v3418_v49, %v3062_v24  ;;  %v4042_v46 = vpop.f32.mrb[134].mxu1 }
 0x2ef   :  { %3115 = vst [vmem:[%s5606_s5 + $0x30] sm:$0xff] %v3071_v4  ;;  %v3074_v47 = vadd.f32 %v4042_v46, %v3418_v49  ;;  %v3065_v14 = vpop.f32.mrb[135].mxu1 }
 0x2f0   :  { %3113 = vst [vmem:[%s5606_s5 + $0x20] sm:$0xff] %v3063_v6  ;;  %v3066_v7 = vadd.f32 %v3418_v49, %v3065_v14 }
 0x2f1   :  { %3116 = vst [vmem:[%s5606_s5 + $0x38] sm:$0xff] %v3074_v47 }
 0x2f2   :  { %3114 = vst [vmem:[%s5606_s5 + $0x28] sm:$0xff] %v3066_v7 }
 0x2fc   :  { %v4045_v53 = vpop.f32.mrb[136].mxu1 }
 0x2fd   :  { %v3087_v37 = vadd.f32 %v4045_v53, %v3418_v49  ;;  %v3078_v63 = vpop.f32.mrb[137].mxu1 }
 0x2fe   :  { %v3079_v18 = vadd.f32 %v3418_v49, %v3078_v63  ;;  %v4046_v40 = vpop.f32.mrb[138].mxu1 }
 0x2ff   :  { %3119 = vst [vmem:[%s5606_s5 + $0x50] sm:$0xff] %v3087_v37  ;;  %v3090_v54 = vadd.f32 %v4046_v40, %v3418_v49  ;;  %v3081_v10 = vpop.f32.mrb[139].mxu1 }
 0x300   :  { %3117 = vst [vmem:[%s5606_s5 + $0x40] sm:$0xff] %v3079_v18  ;;  %v3082_v13 = vadd.f32 %v3418_v49, %v3081_v10 }
 0x301   :  { %3120 = vst [vmem:[%s5606_s5 + $0x58] sm:$0xff] %v3090_v54 }
 0x302   :  { %3118 = vst [vmem:[%s5606_s5 + $0x48] sm:$0xff] %v3082_v13 }
 0x30c   :  { %v4049_v1 = vpop.f32.mrb[140].mxu1 }
 0x30d   :  { %v3103_v21 = vadd.f32 %v4049_v1, %v3418_v49  ;;  %v3094_v25 = vpop.f32.mrb[141].mxu1 }
 0x30e   :  { %v3095_v27 = vadd.f32 %v3418_v49, %v3094_v25  ;;  %v4050_v52 = vpop.f32.mrb[142].mxu1 }
 0x30f   :  { %3123 = vst [vmem:[%s5606_s5 + $0x70] sm:$0xff] %v3103_v21  ;;  %v3106_v19 = vadd.f32 %v4050_v52, %v3418_v49  ;;  %v3097_v3 = vpop.f32.mrb[143].mxu1 }
 0x310   :  { %3121 = vst [vmem:[%s5606_s5 + $0x60] sm:$0xff] %v3095_v27  ;;  %v3098_v31 = vadd.f32 %v3418_v49, %v3097_v3 }
 0x311   :  { %3124 = vst [vmem:[%s5606_s5 + $0x78] sm:$0xff] %v3106_v19 }
 0x312   :  { %3122 = vst [vmem:[%s5606_s5 + $0x68] sm:$0xff] %v3098_v31 }

</bundles_post_ra>
